<compile_context>
chip_gen: v6e
topology: v6e:2x2x1
jax: 0.10.0
libtpu: 0.0.40
codegen_flags: <defaults>
</compile_context>

<pallas_src>
import functools

import numpy as np
import jax
import jax.numpy as jnp
from jax.experimental import pallas as pl
from jax.experimental.pallas import tpu as pltpu

# Flip to jnp.bfloat16 on v6e / v7x for MXU density; epilogue stays f32.
MATMUL_DTYPE = jnp.float32


def _round_up(v, m):
    return (v + m - 1) // m * m


def _conv_geometry(h, w, kh, kw, pad):
    """Valid conv output size and the 8-aligned over-computed grid size."""
    h_valid = h + 2 * pad - kh + 1
    w_valid = w + 2 * pad - kw + 1
    assert h_valid >= 2 and w_valid >= 2, "input too small for LeNet"
    assert h_valid % 2 == 0 and w_valid % 2 == 0, "2x2 avg-pool needs even conv output"
    return h_valid, w_valid, _round_up(h_valid, 8), _round_up(w_valid, 8)


def _stable_sigmoid(x):
    # exp of a non-positive argument (EUP) + reciprocal; no inf intermediates.
    e = jnp.exp(-jnp.abs(x))
    s = e * pl.reciprocal(1.0 + e, approx=False)          # sigmoid(-|x|)
    return jnp.where(x >= 0.0, 1.0 - s, s)


def _pool_h_matrix(ho_in, h_valid, rows_out):
    """(rows_out, ho_in): 0.5-weighted 2x2-pool-over-H; extra rows are zero
    padding for the next stage."""
    assert rows_out >= h_valid // 2
    m = np.zeros((rows_out, ho_in), np.float32)
    for i in range(h_valid // 2):
        m[i, 2 * i] = 0.5
        m[i, 2 * i + 1] = 0.5
    return m


def _pool_w_matrix(wo_in, w_valid, co, groups_out):
    """(wo_in*co, groups_out*co): pool-over-W keeping channel packing; extra
    column groups are zero padding for the next stage."""
    assert groups_out >= w_valid // 2
    m = np.zeros((wo_in * co, groups_out * co), np.float32)
    for j in range(w_valid // 2):
        for o in range(co):
            m[(2 * j) * co + o, j * co + o] = 0.5
            m[(2 * j + 1) * co + o, j * co + o] = 0.5
    return m


# ----------------------------------------------------------------------------
# Single fused kernel: one image per grid step, whole LeNet forward in VMEM.
# ----------------------------------------------------------------------------

def _lenet_kernel(x_ref, w1_ref, b1_ref, ph1_ref, pw1_ref,
                  w2_ref, b2_ref, ph2_ref, pw2_ref,
                  fc1w_ref, fc1b_ref, fc2w_ref, fc2b_ref, fc3w_ref, fc3b_ref,
                  o_ref, *, kh, kw, ho1, wo1, ci1, ho2, wo2, ci2, h4):
    def conv_sigmoid_pool(x, w_ref, b_ref, ph_ref, pw_ref, ho, wo, ci):
        # x: (Hp, Wp*ci) padded slab; w_ref: (kh*kw, wo*ci, wo*co) block-diag.
        acc = jnp.zeros((ho, w_ref.shape[2]), jnp.float32)
        for i in range(kh):
            for j in range(kw):
                win = x[i:i + ho, j * ci:(j + wo) * ci]        # (ho, wo*ci)
                acc = acc + jnp.dot(win, w_ref[i * kw + j],
                                    preferred_element_type=jnp.float32)
        y = _stable_sigmoid(acc + b_ref[...])
        # Fused 2x2 average pool (+ drop of alignment padding, + zero padding
        # for the next stage) as two small MXU matmuls; stays in VMEM.
        pooled = jnp.dot(ph_ref[...], y, preferred_element_type=jnp.float32)
        return jnp.dot(pooled, pw_ref[...], preferred_element_type=jnp.float32)

    x1 = x_ref[0]                                              # (hp1, wp1*ci1)
    x2 = conv_sigmoid_pool(x1, w1_ref, b1_ref, ph1_ref, pw1_ref, ho1, wo1, ci1)
    a2 = conv_sigmoid_pool(x2.astype(MATMUL_DTYPE), w2_ref, b2_ref,
                           ph2_ref, pw2_ref, ho2, wo2, ci2)    # (h4, w4*c2)

    # fc1 applied per pooled row -> no sublane->lane flatten inside the kernel.
    h = fc1b_ref[...]
    for r in range(h4):
        h = h + jnp.dot(a2[r:r + 1, :].astype(fc1w_ref.dtype), fc1w_ref[r],
                        preferred_element_type=jnp.float32)
    h = _stable_sigmoid(h)
    h = _stable_sigmoid(jnp.dot(h.astype(fc2w_ref.dtype), fc2w_ref[...],
                                preferred_element_type=jnp.float32) + fc2b_ref[...])
    out = jnp.dot(h.astype(fc3w_ref.dtype), fc3w_ref[...],
                  preferred_element_type=jnp.float32) + fc3b_ref[...]
    o_ref[0] = out


# ----------------------------------------------------------------------------
# Parameters: PyTorch-layout init + one-time kernel-layout preparation.
# ----------------------------------------------------------------------------

def init_lenet_params(key, input_shape, num_label):
    """Random params in PyTorch nn.Module layout (Conv2d OIHW, Linear (out,in))."""
    channel, h, w = input_shape
    h4 = (h // 2 - 4) // 2
    w4 = (w // 2 - 4) // 2
    flat = 16 * h4 * w4                 # what LazyLinear(120) would see

    ks = jax.random.split(key, 10)
    s = 0.1
    return {
        "conv1_w": s * jax.random.normal(ks[0], (6, channel, 5, 5), jnp.float32),
        "conv1_b": s * jax.random.normal(ks[1], (6,), jnp.float32),
        "conv2_w": s * jax.random.normal(ks[2], (16, 6, 5, 5), jnp.float32),
        "conv2_b": s * jax.random.normal(ks[3], (16,), jnp.float32),
        "fc1_w": s * jax.random.normal(ks[4], (120, flat), jnp.float32),
        "fc1_b": s * jax.random.normal(ks[5], (120,), jnp.float32),
        "fc2_w": s * jax.random.normal(ks[6], (84, 120), jnp.float32),
        "fc2_b": s * jax.random.normal(ks[7], (84,), jnp.float32),
        "fc3_w": s * jax.random.normal(ks[8], (num_label, 84), jnp.float32),
        "fc3_b": s * jax.random.normal(ks[9], (84,), jnp.float32)[..., :0].reshape(0) if False
                  else s * jax.random.normal(ks[9], (num_label,), jnp.float32),
    }


def prepare_params(params, input_shape):
    """One-time layout prep so the jitted step has zero weight layout work."""
    channel, h, w = input_shape
    kh = kw = 5
    h1v, w1v, ho1, wo1 = _conv_geometry(h, w, kh, kw, pad=2)
    p1h, p1w = h1v // 2, w1v // 2
    h2v, w2v, ho2, wo2 = _conv_geometry(p1h, p1w, kh, kw, pad=0)
    hp2, wp2 = ho2 + kh - 1, wo2 + kw - 1
    h4, w4 = h2v // 2, w2v // 2
    c1 = params["conv1_w"].shape[0]     # 6
    c2 = params["conv2_w"].shape[0]     # 16

    def conv_block_diag(w_oihw, wo):
        co, ci, kh_, kw_ = w_oihw.shape
        taps = jnp.transpose(w_oihw, (2, 3, 1, 0)).reshape(kh_ * kw_, ci, co)
        eye = jnp.eye(wo, dtype=taps.dtype)
        bd = jnp.einsum("wv,tco->twcvo", eye, taps)
        return bd.reshape(kh_ * kw_, wo * ci, wo * co).astype(MATMUL_DTYPE)

    def tiled_bias(b, wo):
        return jnp.tile(b.reshape(1, -1), (1, wo)).astype(jnp.float32)

    # fc1: torch flatten order is (c, h, w); kernel produces rows h with lanes
    # packed (w, c).  Permute once into (h4, w4*c2, 120).
    fc1 = params["fc1_w"].reshape(-1, c2, h4, w4)
    fc1 = jnp.transpose(fc1, (2, 3, 1, 0)).reshape(h4, w4 * c2, -1)

    return {
        "conv1_w": conv_block_diag(params["conv1_w"], wo1),
        "conv1_b": tiled_bias(params["conv1_b"], wo1),
        # Stage-1 pool matrices also emit the zero padding conv2 needs.
        "pool1_h": jnp.asarray(_pool_h_matrix(ho1, h1v, hp2)),
        "pool1_w": jnp.asarray(_pool_w_matrix(wo1, w1v, c1, wp2)),
        "conv2_w": conv_block_diag(params["conv2_w"], wo2),
        "conv2_b": tiled_bias(params["conv2_b"], wo2),
        "pool2_h": jnp.asarray(_pool_h_matrix(ho2, h2v, h4)),
        "pool2_w": jnp.asarray(_pool_w_matrix(wo2, w2v, c2, w4)),
        "fc1_w": fc1.astype(MATMUL_DTYPE),
        "fc1_b": params["fc1_b"].reshape(1, -1).astype(jnp.float32),
        "fc2_w": params["fc2_w"].T.astype(MATMUL_DTYPE),
        "fc2_b": params["fc2_b"].reshape(1, -1).astype(jnp.float32),
        "fc3_w": params["fc3_w"].T.astype(MATMUL_DTYPE),
        "fc3_b": params["fc3_b"].reshape(1, -1).astype(jnp.float32),
    }


# ----------------------------------------------------------------------------
# Jitted forward: exactly ONE pallas_call per step.
# ----------------------------------------------------------------------------

@jax.jit
def lenet_forward(params, x_nchw):
    """Matches LeNet.forward; `params` must come from prepare_params()."""
    n, c, h, w = x_nchw.shape
    kh = kw = 5
    h1v, w1v, ho1, wo1 = _conv_geometry(h, w, kh, kw, pad=2)
    hp1, wp1 = ho1 + kh - 1, wo1 + kw - 1
    p1h, p1w = h1v // 2, w1v // 2
    h2v, w2v, ho2, wo2 = _conv_geometry(p1h, p1w, kh, kw, pad=0)
    h4 = h2v // 2
    c1 = params["conv1_b"].shape[1] // wo1
    num_label = params["fc3_b"].shape[1]

    # Only per-step layout work: NCHW -> NHWC, conv padding + 8-alignment
    # padding, then lane-pack W*C.  Everything else happens inside the kernel.
    x = jnp.transpose(x_nchw, (0, 2, 3, 1))
    x = jnp.pad(x, ((0, 0), (2, hp1 - h - 2), (2, wp1 - w - 2), (0, 0)))
    x = x.reshape(n, hp1, wp1 * c).astype(MATMUL_DTYPE)

    kernel = functools.partial(
        _lenet_kernel, kh=kh, kw=kw,
        ho1=ho1, wo1=wo1, ci1=c, ho2=ho2, wo2=wo2, ci2=c1, h4=h4)

    out = pl.pallas_call(
        kernel,
        out_shape=jax.ShapeDtypeStruct((n, 1, num_label), jnp.float32),
        grid=(n,),
        in_specs=[
            pl.BlockSpec((1, hp1, wp1 * c), lambda b: (b, 0, 0)),
            pl.BlockSpec(params["conv1_w"].shape, lambda b: (0, 0, 0)),
            pl.BlockSpec(params["conv1_b"].shape, lambda b: (0, 0)),
            pl.BlockSpec(params["pool1_h"].shape, lambda b: (0, 0)),
            pl.BlockSpec(params["pool1_w"].shape, lambda b: (0, 0)),
            pl.BlockSpec(params["conv2_w"].shape, lambda b: (0, 0, 0)),
            pl.BlockSpec(params["conv2_b"].shape, lambda b: (0, 0)),
            pl.BlockSpec(params["pool2_h"].shape, lambda b: (0, 0)),
            pl.BlockSpec(params["pool2_w"].shape, lambda b: (0, 0)),
            pl.BlockSpec(params["fc1_w"].shape, lambda b: (0, 0, 0)),
            pl.BlockSpec(params["fc1_b"].shape, lambda b: (0, 0)),
            pl.BlockSpec(params["fc2_w"].shape, lambda b: (0, 0)),
            pl.BlockSpec(params["fc2_b"].shape, lambda b: (0, 0)),
            pl.BlockSpec(params["fc3_w"].shape, lambda b: (0, 0)),
            pl.BlockSpec(params["fc3_b"].shape, lambda b: (0, 0)),
        ],
        out_specs=pl.BlockSpec((1, 1, num_label), lambda b: (b, 0, 0)),
        compiler_params=pltpu.CompilerParams(
            dimension_semantics=("parallel",)),   # v7x: shard batch over 2 TCs
    )(x, params["conv1_w"], params["conv1_b"], params["pool1_h"], params["pool1_w"],
      params["conv2_w"], params["conv2_b"], params["pool2_h"], params["pool2_w"],
      params["fc1_w"], params["fc1_b"], params["fc2_w"], params["fc2_b"],
      params["fc3_w"], params["fc3_b"])
    return out.reshape(n, num_label)


# ----------------------------------------------------------------------------
# Pure-JAX reference (for correctness) + demo.
# ----------------------------------------------------------------------------

def lenet_reference(tp, x):
    def conv(x, w, b, pad):
        y = jax.lax.conv_general_dilated(
            x, w, window_strides=(1, 1), padding=((pad, pad), (pad, pad)),
            dimension_numbers=("NCHW", "OIHW", "NCHW"))
        return y + b.reshape(1, -1, 1, 1)

    def avg_pool(x):
        return jax.lax.reduce_window(x, 0.0, jax.lax.add,
                                     (1, 1, 2, 2), (1, 1, 2, 2), "VALID") * 0.25

    x = avg_pool(jax.nn.sigmoid(conv(x, tp["conv1_w"], tp["conv1_b"], 2)))
    x = avg_pool(jax.nn.sigmoid(conv(x, tp["conv2_w"], tp["conv2_b"], 0)))
    x = x.reshape(x.shape[0], -1)
    x = jax.nn.sigmoid(x @ tp["fc1_w"].T + tp["fc1_b"])
    x = jax.nn.sigmoid(x @ tp["fc2_w"].T + tp["fc2_b"])
    return x @ tp["fc3_w"].T + tp["fc3_b"]


if __name__ == "__main__":
    key = jax.random.PRNGKey(0)
    k_param, k_in = jax.random.split(key)

    input_shape = (3, 16, 16)   # (C, H, W)
    num_label = 10
    batch = 2

    torch_params = init_lenet_params(k_param, input_shape, num_label)
    params = prepare_params(torch_params, input_shape)     # one-time layout prep
    x = jax.random.normal(k_in, (batch,) + input_shape, jnp.float32)

    out = jax.block_until_ready(lenet_forward(params, x))
    assert out.shape == (batch, num_label), out.shape
    assert bool(jnp.all(jnp.isfinite(out)))

    ref = jax.block_until_ready(lenet_reference(torch_params, x))
    err = float(jnp.max(jnp.abs(out - ref)))
    assert err < 1e-3, f"mismatch vs pure-JAX reference: max|diff|={err}"

    print("KERNEL_OK")
</pallas_src>

<mosaic_0001>
module attributes {stable_mosaic.version = 11 : i64} {
  func.func @_lenet_kernel(%arg0: i32, %arg1: memref<1x20x60xf32, #tpu.memory_space<vmem>>, %arg2: memref<25x48x96xf32, #tpu.memory_space<vmem>>, %arg3: memref<1x96xf32, #tpu.memory_space<vmem>>, %arg4: memref<12x16xf32, #tpu.memory_space<vmem>>, %arg5: memref<96x72xf32, #tpu.memory_space<vmem>>, %arg6: memref<25x48x128xf32, #tpu.memory_space<vmem>>, %arg7: memref<1x128xf32, #tpu.memory_space<vmem>>, %arg8: memref<2x8xf32, #tpu.memory_space<vmem>>, %arg9: memref<128x32xf32, #tpu.memory_space<vmem>>, %arg10: memref<2x32x120xf32, #tpu.memory_space<vmem>>, %arg11: memref<1x120xf32, #tpu.memory_space<vmem>>, %arg12: memref<120x84xf32, #tpu.memory_space<vmem>>, %arg13: memref<1x84xf32, #tpu.memory_space<vmem>>, %arg14: memref<84x10xf32, #tpu.memory_space<vmem>>, %arg15: memref<1x10xf32, #tpu.memory_space<vmem>>, %arg16: memref<1x1x10xf32, #tpu.memory_space<vmem>>) attributes {dimension_semantics = [#tpu.dimension_semantics<parallel>], iteration_bounds = array<i64: 2>, scalar_prefetch = 0 : i64, scratch_operands = 0 : i64, tpu.core_type = #tpu.core_type<tc>, window_params = [{transform_indices = @transform_0, window_bounds = array<i64: 1, 20, 60>}, {pipeline_mode = #tpu.pipeline_mode<synchronous>, transform_indices = @transform_1, window_bounds = array<i64: 25, 48, 96>}, {pipeline_mode = #tpu.pipeline_mode<synchronous>, transform_indices = @transform_2, window_bounds = array<i64: 1, 96>}, {pipeline_mode = #tpu.pipeline_mode<synchronous>, transform_indices = @transform_3, window_bounds = array<i64: 12, 16>}, {pipeline_mode = #tpu.pipeline_mode<synchronous>, transform_indices = @transform_4, window_bounds = array<i64: 96, 72>}, {pipeline_mode = #tpu.pipeline_mode<synchronous>, transform_indices = @transform_5, window_bounds = array<i64: 25, 48, 128>}, {pipeline_mode = #tpu.pipeline_mode<synchronous>, transform_indices = @transform_6, window_bounds = array<i64: 1, 128>}, {pipeline_mode = #tpu.pipeline_mode<synchronous>, transform_indices = @transform_7, window_bounds = array<i64: 2, 8>}, {pipeline_mode = #tpu.pipeline_mode<synchronous>, transform_indices = @transform_8, window_bounds = array<i64: 128, 32>}, {pipeline_mode = #tpu.pipeline_mode<synchronous>, transform_indices = @transform_9, window_bounds = array<i64: 2, 32, 120>}, {pipeline_mode = #tpu.pipeline_mode<synchronous>, transform_indices = @transform_10, window_bounds = array<i64: 1, 120>}, {pipeline_mode = #tpu.pipeline_mode<synchronous>, transform_indices = @transform_11, window_bounds = array<i64: 120, 84>}, {pipeline_mode = #tpu.pipeline_mode<synchronous>, transform_indices = @transform_12, window_bounds = array<i64: 1, 84>}, {pipeline_mode = #tpu.pipeline_mode<synchronous>, transform_indices = @transform_13, window_bounds = array<i64: 84, 10>}, {pipeline_mode = #tpu.pipeline_mode<synchronous>, transform_indices = @transform_14, window_bounds = array<i64: 1, 10>}, {transform_indices = @transform_15, window_bounds = array<i64: 1, 1, 10>}]} {
    %c0 = arith.constant 0 : index
    %c0_0 = arith.constant 0 : index
    %c0_1 = arith.constant 0 : index
    %0 = vector.load %arg1[%c0, %c0_0, %c0_1] : memref<1x20x60xf32, #tpu.memory_space<vmem>>, vector<1x20x60xf32>
    %1 = vector.shape_cast %0 : vector<1x20x60xf32> to vector<20x60xf32>
    %cst = arith.constant 0.000000e+00 : f32
    %2 = vector.broadcast %cst : f32 to vector<16x96xf32>
    %3 = vector.extract_strided_slice %1 {offsets = [0, 0], sizes = [16, 48], strides = [1, 1]} : vector<20x60xf32> to vector<16x48xf32>
    %c0_2 = arith.constant 0 : index
    %c0_3 = arith.constant 0 : index
    %c0_4 = arith.constant 0 : index
    %4 = vector.load %arg2[%c0_2, %c0_3, %c0_4] : memref<25x48x96xf32, #tpu.memory_space<vmem>>, vector<1x48x96xf32>
    %5 = vector.shape_cast %4 : vector<1x48x96xf32> to vector<48x96xf32>
    %cst_5 = arith.constant dense<0.000000e+00> : vector<16x96xf32>
    %6 = tpu.matmul %3, %5, %cst_5 {dimension_numbers = #tpu.dot_dimension_numbers<[1], [0], [0], [1], [0, 0, 1, 1], [], []>} : vector<16x48xf32>, vector<48x96xf32>, vector<16x96xf32> -> vector<16x96xf32>
    %7 = arith.addf %2, %6 : vector<16x96xf32>
    %8 = vector.extract_strided_slice %1 {offsets = [0, 3], sizes = [16, 48], strides = [1, 1]} : vector<20x60xf32> to vector<16x48xf32>
    %c1 = arith.constant 1 : index
    %c0_6 = arith.constant 0 : index
    %c0_7 = arith.constant 0 : index
    %9 = vector.load %arg2[%c1, %c0_6, %c0_7] : memref<25x48x96xf32, #tpu.memory_space<vmem>>, vector<1x48x96xf32>
    %10 = vector.shape_cast %9 : vector<1x48x96xf32> to vector<48x96xf32>
    %cst_8 = arith.constant dense<0.000000e+00> : vector<16x96xf32>
    %11 = tpu.matmul %8, %10, %cst_8 {dimension_numbers = #tpu.dot_dimension_numbers<[1], [0], [0], [1], [0, 0, 1, 1], [], []>} : vector<16x48xf32>, vector<48x96xf32>, vector<16x96xf32> -> vector<16x96xf32>
    %12 = arith.addf %7, %11 : vector<16x96xf32>
    %13 = vector.extract_strided_slice %1 {offsets = [0, 6], sizes = [16, 48], strides = [1, 1]} : vector<20x60xf32> to vector<16x48xf32>
    %c2 = arith.constant 2 : index
    %c0_9 = arith.constant 0 : index
    %c0_10 = arith.constant 0 : index
    %14 = vector.load %arg2[%c2, %c0_9, %c0_10] : memref<25x48x96xf32, #tpu.memory_space<vmem>>, vector<1x48x96xf32>
    %15 = vector.shape_cast %14 : vector<1x48x96xf32> to vector<48x96xf32>
    %cst_11 = arith.constant dense<0.000000e+00> : vector<16x96xf32>
    %16 = tpu.matmul %13, %15, %cst_11 {dimension_numbers = #tpu.dot_dimension_numbers<[1], [0], [0], [1], [0, 0, 1, 1], [], []>} : vector<16x48xf32>, vector<48x96xf32>, vector<16x96xf32> -> vector<16x96xf32>
    %17 = arith.addf %12, %16 : vector<16x96xf32>
    %18 = vector.extract_strided_slice %1 {offsets = [0, 9], sizes = [16, 48], strides = [1, 1]} : vector<20x60xf32> to vector<16x48xf32>
    %c3 = arith.constant 3 : index
    %c0_12 = arith.constant 0 : index
    %c0_13 = arith.constant 0 : index
    %19 = vector.load %arg2[%c3, %c0_12, %c0_13] : memref<25x48x96xf32, #tpu.memory_space<vmem>>, vector<1x48x96xf32>
    %20 = vector.shape_cast %19 : vector<1x48x96xf32> to vector<48x96xf32>
    %cst_14 = arith.constant dense<0.000000e+00> : vector<16x96xf32>
    %21 = tpu.matmul %18, %20, %cst_14 {dimension_numbers = #tpu.dot_dimension_numbers<[1], [0], [0], [1], [0, 0, 1, 1], [], []>} : vector<16x48xf32>, vector<48x96xf32>, vector<16x96xf32> -> vector<16x96xf32>
    %22 = arith.addf %17, %21 : vector<16x96xf32>
    %23 = vector.extract_strided_slice %1 {offsets = [0, 12], sizes = [16, 48], strides = [1, 1]} : vector<20x60xf32> to vector<16x48xf32>
    %c4 = arith.constant 4 : index
    %c0_15 = arith.constant 0 : index
    %c0_16 = arith.constant 0 : index
    %24 = vector.load %arg2[%c4, %c0_15, %c0_16] : memref<25x48x96xf32, #tpu.memory_space<vmem>>, vector<1x48x96xf32>
    %25 = vector.shape_cast %24 : vector<1x48x96xf32> to vector<48x96xf32>
    %cst_17 = arith.constant dense<0.000000e+00> : vector<16x96xf32>
    %26 = tpu.matmul %23, %25, %cst_17 {dimension_numbers = #tpu.dot_dimension_numbers<[1], [0], [0], [1], [0, 0, 1, 1], [], []>} : vector<16x48xf32>, vector<48x96xf32>, vector<16x96xf32> -> vector<16x96xf32>
    %27 = arith.addf %22, %26 : vector<16x96xf32>
    %28 = vector.extract_strided_slice %1 {offsets = [1, 0], sizes = [16, 48], strides = [1, 1]} : vector<20x60xf32> to vector<16x48xf32>
    %c5 = arith.constant 5 : index
    %c0_18 = arith.constant 0 : index
    %c0_19 = arith.constant 0 : index
    %29 = vector.load %arg2[%c5, %c0_18, %c0_19] : memref<25x48x96xf32, #tpu.memory_space<vmem>>, vector<1x48x96xf32>
    %30 = vector.shape_cast %29 : vector<1x48x96xf32> to vector<48x96xf32>
    %cst_20 = arith.constant dense<0.000000e+00> : vector<16x96xf32>
    %31 = tpu.matmul %28, %30, %cst_20 {dimension_numbers = #tpu.dot_dimension_numbers<[1], [0], [0], [1], [0, 0, 1, 1], [], []>} : vector<16x48xf32>, vector<48x96xf32>, vector<16x96xf32> -> vector<16x96xf32>
    %32 = arith.addf %27, %31 : vector<16x96xf32>
    %33 = vector.extract_strided_slice %1 {offsets = [1, 3], sizes = [16, 48], strides = [1, 1]} : vector<20x60xf32> to vector<16x48xf32>
    %c6 = arith.constant 6 : index
    %c0_21 = arith.constant 0 : index
    %c0_22 = arith.constant 0 : index
    %34 = vector.load %arg2[%c6, %c0_21, %c0_22] : memref<25x48x96xf32, #tpu.memory_space<vmem>>, vector<1x48x96xf32>
    %35 = vector.shape_cast %34 : vector<1x48x96xf32> to vector<48x96xf32>
    %cst_23 = arith.constant dense<0.000000e+00> : vector<16x96xf32>
    %36 = tpu.matmul %33, %35, %cst_23 {dimension_numbers = #tpu.dot_dimension_numbers<[1], [0], [0], [1], [0, 0, 1, 1], [], []>} : vector<16x48xf32>, vector<48x96xf32>, vector<16x96xf32> -> vector<16x96xf32>
    %37 = arith.addf %32, %36 : vector<16x96xf32>
    %38 = vector.extract_strided_slice %1 {offsets = [1, 6], sizes = [16, 48], strides = [1, 1]} : vector<20x60xf32> to vector<16x48xf32>
    %c7 = arith.constant 7 : index
    %c0_24 = arith.constant 0 : index
    %c0_25 = arith.constant 0 : index
    %39 = vector.load %arg2[%c7, %c0_24, %c0_25] : memref<25x48x96xf32, #tpu.memory_space<vmem>>, vector<1x48x96xf32>
    %40 = vector.shape_cast %39 : vector<1x48x96xf32> to vector<48x96xf32>
    %cst_26 = arith.constant dense<0.000000e+00> : vector<16x96xf32>
    %41 = tpu.matmul %38, %40, %cst_26 {dimension_numbers = #tpu.dot_dimension_numbers<[1], [0], [0], [1], [0, 0, 1, 1], [], []>} : vector<16x48xf32>, vector<48x96xf32>, vector<16x96xf32> -> vector<16x96xf32>
    %42 = arith.addf %37, %41 : vector<16x96xf32>
    %43 = vector.extract_strided_slice %1 {offsets = [1, 9], sizes = [16, 48], strides = [1, 1]} : vector<20x60xf32> to vector<16x48xf32>
    %c8 = arith.constant 8 : index
    %c0_27 = arith.constant 0 : index
    %c0_28 = arith.constant 0 : index
    %44 = vector.load %arg2[%c8, %c0_27, %c0_28] : memref<25x48x96xf32, #tpu.memory_space<vmem>>, vector<1x48x96xf32>
    %45 = vector.shape_cast %44 : vector<1x48x96xf32> to vector<48x96xf32>
    %cst_29 = arith.constant dense<0.000000e+00> : vector<16x96xf32>
    %46 = tpu.matmul %43, %45, %cst_29 {dimension_numbers = #tpu.dot_dimension_numbers<[1], [0], [0], [1], [0, 0, 1, 1], [], []>} : vector<16x48xf32>, vector<48x96xf32>, vector<16x96xf32> -> vector<16x96xf32>
    %47 = arith.addf %42, %46 : vector<16x96xf32>
    %48 = vector.extract_strided_slice %1 {offsets = [1, 12], sizes = [16, 48], strides = [1, 1]} : vector<20x60xf32> to vector<16x48xf32>
    %c9 = arith.constant 9 : index
    %c0_30 = arith.constant 0 : index
    %c0_31 = arith.constant 0 : index
    %49 = vector.load %arg2[%c9, %c0_30, %c0_31] : memref<25x48x96xf32, #tpu.memory_space<vmem>>, vector<1x48x96xf32>
    %50 = vector.shape_cast %49 : vector<1x48x96xf32> to vector<48x96xf32>
    %cst_32 = arith.constant dense<0.000000e+00> : vector<16x96xf32>
    %51 = tpu.matmul %48, %50, %cst_32 {dimension_numbers = #tpu.dot_dimension_numbers<[1], [0], [0], [1], [0, 0, 1, 1], [], []>} : vector<16x48xf32>, vector<48x96xf32>, vector<16x96xf32> -> vector<16x96xf32>
    %52 = arith.addf %47, %51 : vector<16x96xf32>
    %53 = vector.extract_strided_slice %1 {offsets = [2, 0], sizes = [16, 48], strides = [1, 1]} : vector<20x60xf32> to vector<16x48xf32>
    %c10 = arith.constant 10 : index
    %c0_33 = arith.constant 0 : index
    %c0_34 = arith.constant 0 : index
    %54 = vector.load %arg2[%c10, %c0_33, %c0_34] : memref<25x48x96xf32, #tpu.memory_space<vmem>>, vector<1x48x96xf32>
    %55 = vector.shape_cast %54 : vector<1x48x96xf32> to vector<48x96xf32>
    %cst_35 = arith.constant dense<0.000000e+00> : vector<16x96xf32>
    %56 = tpu.matmul %53, %55, %cst_35 {dimension_numbers = #tpu.dot_dimension_numbers<[1], [0], [0], [1], [0, 0, 1, 1], [], []>} : vector<16x48xf32>, vector<48x96xf32>, vector<16x96xf32> -> vector<16x96xf32>
    %57 = arith.addf %52, %56 : vector<16x96xf32>
    %58 = vector.extract_strided_slice %1 {offsets = [2, 3], sizes = [16, 48], strides = [1, 1]} : vector<20x60xf32> to vector<16x48xf32>
    %c11 = arith.constant 11 : index
    %c0_36 = arith.constant 0 : index
    %c0_37 = arith.constant 0 : index
    %59 = vector.load %arg2[%c11, %c0_36, %c0_37] : memref<25x48x96xf32, #tpu.memory_space<vmem>>, vector<1x48x96xf32>
    %60 = vector.shape_cast %59 : vector<1x48x96xf32> to vector<48x96xf32>
    %cst_38 = arith.constant dense<0.000000e+00> : vector<16x96xf32>
    %61 = tpu.matmul %58, %60, %cst_38 {dimension_numbers = #tpu.dot_dimension_numbers<[1], [0], [0], [1], [0, 0, 1, 1], [], []>} : vector<16x48xf32>, vector<48x96xf32>, vector<16x96xf32> -> vector<16x96xf32>
    %62 = arith.addf %57, %61 : vector<16x96xf32>
    %63 = vector.extract_strided_slice %1 {offsets = [2, 6], sizes = [16, 48], strides = [1, 1]} : vector<20x60xf32> to vector<16x48xf32>
    %c12 = arith.constant 12 : index
    %c0_39 = arith.constant 0 : index
    %c0_40 = arith.constant 0 : index
    %64 = vector.load %arg2[%c12, %c0_39, %c0_40] : memref<25x48x96xf32, #tpu.memory_space<vmem>>, vector<1x48x96xf32>
    %65 = vector.shape_cast %64 : vector<1x48x96xf32> to vector<48x96xf32>
    %cst_41 = arith.constant dense<0.000000e+00> : vector<16x96xf32>
    %66 = tpu.matmul %63, %65, %cst_41 {dimension_numbers = #tpu.dot_dimension_numbers<[1], [0], [0], [1], [0, 0, 1, 1], [], []>} : vector<16x48xf32>, vector<48x96xf32>, vector<16x96xf32> -> vector<16x96xf32>
    %67 = arith.addf %62, %66 : vector<16x96xf32>
    %68 = vector.extract_strided_slice %1 {offsets = [2, 9], sizes = [16, 48], strides = [1, 1]} : vector<20x60xf32> to vector<16x48xf32>
    %c13 = arith.constant 13 : index
    %c0_42 = arith.constant 0 : index
    %c0_43 = arith.constant 0 : index
    %69 = vector.load %arg2[%c13, %c0_42, %c0_43] : memref<25x48x96xf32, #tpu.memory_space<vmem>>, vector<1x48x96xf32>
    %70 = vector.shape_cast %69 : vector<1x48x96xf32> to vector<48x96xf32>
    %cst_44 = arith.constant dense<0.000000e+00> : vector<16x96xf32>
    %71 = tpu.matmul %68, %70, %cst_44 {dimension_numbers = #tpu.dot_dimension_numbers<[1], [0], [0], [1], [0, 0, 1, 1], [], []>} : vector<16x48xf32>, vector<48x96xf32>, vector<16x96xf32> -> vector<16x96xf32>
    %72 = arith.addf %67, %71 : vector<16x96xf32>
    %73 = vector.extract_strided_slice %1 {offsets = [2, 12], sizes = [16, 48], strides = [1, 1]} : vector<20x60xf32> to vector<16x48xf32>
    %c14 = arith.constant 14 : index
    %c0_45 = arith.constant 0 : index
    %c0_46 = arith.constant 0 : index
    %74 = vector.load %arg2[%c14, %c0_45, %c0_46] : memref<25x48x96xf32, #tpu.memory_space<vmem>>, vector<1x48x96xf32>
    %75 = vector.shape_cast %74 : vector<1x48x96xf32> to vector<48x96xf32>
    %cst_47 = arith.constant dense<0.000000e+00> : vector<16x96xf32>
    %76 = tpu.matmul %73, %75, %cst_47 {dimension_numbers = #tpu.dot_dimension_numbers<[1], [0], [0], [1], [0, 0, 1, 1], [], []>} : vector<16x48xf32>, vector<48x96xf32>, vector<16x96xf32> -> vector<16x96xf32>
    %77 = arith.addf %72, %76 : vector<16x96xf32>
    %78 = vector.extract_strided_slice %1 {offsets = [3, 0], sizes = [16, 48], strides = [1, 1]} : vector<20x60xf32> to vector<16x48xf32>
    %c15 = arith.constant 15 : index
    %c0_48 = arith.constant 0 : index
    %c0_49 = arith.constant 0 : index
    %79 = vector.load %arg2[%c15, %c0_48, %c0_49] : memref<25x48x96xf32, #tpu.memory_space<vmem>>, vector<1x48x96xf32>
    %80 = vector.shape_cast %79 : vector<1x48x96xf32> to vector<48x96xf32>
    %cst_50 = arith.constant dense<0.000000e+00> : vector<16x96xf32>
    %81 = tpu.matmul %78, %80, %cst_50 {dimension_numbers = #tpu.dot_dimension_numbers<[1], [0], [0], [1], [0, 0, 1, 1], [], []>} : vector<16x48xf32>, vector<48x96xf32>, vector<16x96xf32> -> vector<16x96xf32>
    %82 = arith.addf %77, %81 : vector<16x96xf32>
    %83 = vector.extract_strided_slice %1 {offsets = [3, 3], sizes = [16, 48], strides = [1, 1]} : vector<20x60xf32> to vector<16x48xf32>
    %c16 = arith.constant 16 : index
    %c0_51 = arith.constant 0 : index
    %c0_52 = arith.constant 0 : index
    %84 = vector.load %arg2[%c16, %c0_51, %c0_52] : memref<25x48x96xf32, #tpu.memory_space<vmem>>, vector<1x48x96xf32>
    %85 = vector.shape_cast %84 : vector<1x48x96xf32> to vector<48x96xf32>
    %cst_53 = arith.constant dense<0.000000e+00> : vector<16x96xf32>
    %86 = tpu.matmul %83, %85, %cst_53 {dimension_numbers = #tpu.dot_dimension_numbers<[1], [0], [0], [1], [0, 0, 1, 1], [], []>} : vector<16x48xf32>, vector<48x96xf32>, vector<16x96xf32> -> vector<16x96xf32>
    %87 = arith.addf %82, %86 : vector<16x96xf32>
    %88 = vector.extract_strided_slice %1 {offsets = [3, 6], sizes = [16, 48], strides = [1, 1]} : vector<20x60xf32> to vector<16x48xf32>
    %c17 = arith.constant 17 : index
    %c0_54 = arith.constant 0 : index
    %c0_55 = arith.constant 0 : index
    %89 = vector.load %arg2[%c17, %c0_54, %c0_55] : memref<25x48x96xf32, #tpu.memory_space<vmem>>, vector<1x48x96xf32>
    %90 = vector.shape_cast %89 : vector<1x48x96xf32> to vector<48x96xf32>
    %cst_56 = arith.constant dense<0.000000e+00> : vector<16x96xf32>
    %91 = tpu.matmul %88, %90, %cst_56 {dimension_numbers = #tpu.dot_dimension_numbers<[1], [0], [0], [1], [0, 0, 1, 1], [], []>} : vector<16x48xf32>, vector<48x96xf32>, vector<16x96xf32> -> vector<16x96xf32>
    %92 = arith.addf %87, %91 : vector<16x96xf32>
    %93 = vector.extract_strided_slice %1 {offsets = [3, 9], sizes = [16, 48], strides = [1, 1]} : vector<20x60xf32> to vector<16x48xf32>
    %c18 = arith.constant 18 : index
    %c0_57 = arith.constant 0 : index
    %c0_58 = arith.constant 0 : index
    %94 = vector.load %arg2[%c18, %c0_57, %c0_58] : memref<25x48x96xf32, #tpu.memory_space<vmem>>, vector<1x48x96xf32>
    %95 = vector.shape_cast %94 : vector<1x48x96xf32> to vector<48x96xf32>
    %cst_59 = arith.constant dense<0.000000e+00> : vector<16x96xf32>
    %96 = tpu.matmul %93, %95, %cst_59 {dimension_numbers = #tpu.dot_dimension_numbers<[1], [0], [0], [1], [0, 0, 1, 1], [], []>} : vector<16x48xf32>, vector<48x96xf32>, vector<16x96xf32> -> vector<16x96xf32>
    %97 = arith.addf %92, %96 : vector<16x96xf32>
    %98 = vector.extract_strided_slice %1 {offsets = [3, 12], sizes = [16, 48], strides = [1, 1]} : vector<20x60xf32> to vector<16x48xf32>
    %c19 = arith.constant 19 : index
    %c0_60 = arith.constant 0 : index
    %c0_61 = arith.constant 0 : index
    %99 = vector.load %arg2[%c19, %c0_60, %c0_61] : memref<25x48x96xf32, #tpu.memory_space<vmem>>, vector<1x48x96xf32>
    %100 = vector.shape_cast %99 : vector<1x48x96xf32> to vector<48x96xf32>
    %cst_62 = arith.constant dense<0.000000e+00> : vector<16x96xf32>
    %101 = tpu.matmul %98, %100, %cst_62 {dimension_numbers = #tpu.dot_dimension_numbers<[1], [0], [0], [1], [0, 0, 1, 1], [], []>} : vector<16x48xf32>, vector<48x96xf32>, vector<16x96xf32> -> vector<16x96xf32>
    %102 = arith.addf %97, %101 : vector<16x96xf32>
    %103 = vector.extract_strided_slice %1 {offsets = [4, 0], sizes = [16, 48], strides = [1, 1]} : vector<20x60xf32> to vector<16x48xf32>
    %c20 = arith.constant 20 : index
    %c0_63 = arith.constant 0 : index
    %c0_64 = arith.constant 0 : index
    %104 = vector.load %arg2[%c20, %c0_63, %c0_64] : memref<25x48x96xf32, #tpu.memory_space<vmem>>, vector<1x48x96xf32>
    %105 = vector.shape_cast %104 : vector<1x48x96xf32> to vector<48x96xf32>
    %cst_65 = arith.constant dense<0.000000e+00> : vector<16x96xf32>
    %106 = tpu.matmul %103, %105, %cst_65 {dimension_numbers = #tpu.dot_dimension_numbers<[1], [0], [0], [1], [0, 0, 1, 1], [], []>} : vector<16x48xf32>, vector<48x96xf32>, vector<16x96xf32> -> vector<16x96xf32>
    %107 = arith.addf %102, %106 : vector<16x96xf32>
    %108 = vector.extract_strided_slice %1 {offsets = [4, 3], sizes = [16, 48], strides = [1, 1]} : vector<20x60xf32> to vector<16x48xf32>
    %c21 = arith.constant 21 : index
    %c0_66 = arith.constant 0 : index
    %c0_67 = arith.constant 0 : index
    %109 = vector.load %arg2[%c21, %c0_66, %c0_67] : memref<25x48x96xf32, #tpu.memory_space<vmem>>, vector<1x48x96xf32>
    %110 = vector.shape_cast %109 : vector<1x48x96xf32> to vector<48x96xf32>
    %cst_68 = arith.constant dense<0.000000e+00> : vector<16x96xf32>
    %111 = tpu.matmul %108, %110, %cst_68 {dimension_numbers = #tpu.dot_dimension_numbers<[1], [0], [0], [1], [0, 0, 1, 1], [], []>} : vector<16x48xf32>, vector<48x96xf32>, vector<16x96xf32> -> vector<16x96xf32>
    %112 = arith.addf %107, %111 : vector<16x96xf32>
    %113 = vector.extract_strided_slice %1 {offsets = [4, 6], sizes = [16, 48], strides = [1, 1]} : vector<20x60xf32> to vector<16x48xf32>
    %c22 = arith.constant 22 : index
    %c0_69 = arith.constant 0 : index
    %c0_70 = arith.constant 0 : index
    %114 = vector.load %arg2[%c22, %c0_69, %c0_70] : memref<25x48x96xf32, #tpu.memory_space<vmem>>, vector<1x48x96xf32>
    %115 = vector.shape_cast %114 : vector<1x48x96xf32> to vector<48x96xf32>
    %cst_71 = arith.constant dense<0.000000e+00> : vector<16x96xf32>
    %116 = tpu.matmul %113, %115, %cst_71 {dimension_numbers = #tpu.dot_dimension_numbers<[1], [0], [0], [1], [0, 0, 1, 1], [], []>} : vector<16x48xf32>, vector<48x96xf32>, vector<16x96xf32> -> vector<16x96xf32>
    %117 = arith.addf %112, %116 : vector<16x96xf32>
    %118 = vector.extract_strided_slice %1 {offsets = [4, 9], sizes = [16, 48], strides = [1, 1]} : vector<20x60xf32> to vector<16x48xf32>
    %c23 = arith.constant 23 : index
    %c0_72 = arith.constant 0 : index
    %c0_73 = arith.constant 0 : index
    %119 = vector.load %arg2[%c23, %c0_72, %c0_73] : memref<25x48x96xf32, #tpu.memory_space<vmem>>, vector<1x48x96xf32>
    %120 = vector.shape_cast %119 : vector<1x48x96xf32> to vector<48x96xf32>
    %cst_74 = arith.constant dense<0.000000e+00> : vector<16x96xf32>
    %121 = tpu.matmul %118, %120, %cst_74 {dimension_numbers = #tpu.dot_dimension_numbers<[1], [0], [0], [1], [0, 0, 1, 1], [], []>} : vector<16x48xf32>, vector<48x96xf32>, vector<16x96xf32> -> vector<16x96xf32>
    %122 = arith.addf %117, %121 : vector<16x96xf32>
    %123 = vector.extract_strided_slice %1 {offsets = [4, 12], sizes = [16, 48], strides = [1, 1]} : vector<20x60xf32> to vector<16x48xf32>
    %c24 = arith.constant 24 : index
    %c0_75 = arith.constant 0 : index
    %c0_76 = arith.constant 0 : index
    %124 = vector.load %arg2[%c24, %c0_75, %c0_76] : memref<25x48x96xf32, #tpu.memory_space<vmem>>, vector<1x48x96xf32>
    %125 = vector.shape_cast %124 : vector<1x48x96xf32> to vector<48x96xf32>
    %cst_77 = arith.constant dense<0.000000e+00> : vector<16x96xf32>
    %126 = tpu.matmul %123, %125, %cst_77 {dimension_numbers = #tpu.dot_dimension_numbers<[1], [0], [0], [1], [0, 0, 1, 1], [], []>} : vector<16x48xf32>, vector<48x96xf32>, vector<16x96xf32> -> vector<16x96xf32>
    %127 = arith.addf %122, %126 : vector<16x96xf32>
    %c0_78 = arith.constant 0 : index
    %c0_79 = arith.constant 0 : index
    %128 = vector.load %arg3[%c0_78, %c0_79] : memref<1x96xf32, #tpu.memory_space<vmem>>, vector<1x96xf32>
    %129 = vector.broadcast %128 : vector<1x96xf32> to vector<16x96xf32>
    %130 = arith.addf %127, %129 : vector<16x96xf32>
    %131 = math.absf %130 : vector<16x96xf32>
    %cst_80 = arith.constant 0.000000e+00 : f32
    %132 = vector.broadcast %cst_80 : f32 to vector<16x96xf32>
    %133 = arith.subf %132, %131 : vector<16x96xf32>
    %134 = math.exp %133 : vector<16x96xf32>
    %cst_81 = arith.constant 1.000000e+00 : f32
    %135 = vector.broadcast %cst_81 : f32 to vector<16x96xf32>
    %136 = arith.addf %135, %134 : vector<16x96xf32>
    %137 = tpu.reciprocal %136 : vector<16x96xf32> -> vector<16x96xf32>
    %138 = arith.mulf %134, %137 : vector<16x96xf32>
    %cst_82 = arith.constant 0.000000e+00 : f32
    %139 = vector.broadcast %cst_82 : f32 to vector<16x96xf32>
    %140 = arith.cmpf oge, %130, %139 : vector<16x96xf32>
    %cst_83 = arith.constant 1.000000e+00 : f32
    %141 = vector.broadcast %cst_83 : f32 to vector<16x96xf32>
    %142 = arith.subf %141, %138 : vector<16x96xf32>
    %143 = arith.select %140, %142, %138 : vector<16x96xi1>, vector<16x96xf32>
    %c0_84 = arith.constant 0 : index
    %c0_85 = arith.constant 0 : index
    %144 = vector.load %arg4[%c0_84, %c0_85] : memref<12x16xf32, #tpu.memory_space<vmem>>, vector<12x16xf32>
    %cst_86 = arith.constant dense<0.000000e+00> : vector<12x96xf32>
    %145 = tpu.matmul %144, %143, %cst_86 {dimension_numbers = #tpu.dot_dimension_numbers<[1], [0], [0], [1], [0, 0, 1, 1], [], []>} : vector<12x16xf32>, vector<16x96xf32>, vector<12x96xf32> -> vector<12x96xf32>
    %c0_87 = arith.constant 0 : index
    %c0_88 = arith.constant 0 : index
    %146 = vector.load %arg5[%c0_87, %c0_88] : memref<96x72xf32, #tpu.memory_space<vmem>>, vector<96x72xf32>
    %cst_89 = arith.constant dense<0.000000e+00> : vector<12x72xf32>
    %147 = tpu.matmul %145, %146, %cst_89 {dimension_numbers = #tpu.dot_dimension_numbers<[1], [0], [0], [1], [0, 0, 1, 1], [], []>} : vector<12x96xf32>, vector<96x72xf32>, vector<12x72xf32> -> vector<12x72xf32>
    %cst_90 = arith.constant 0.000000e+00 : f32
    %148 = vector.broadcast %cst_90 : f32 to vector<8x128xf32>
    %149 = vector.extract_strided_slice %147 {offsets = [0, 0], sizes = [8, 48], strides = [1, 1]} : vector<12x72xf32> to vector<8x48xf32>
    %c0_91 = arith.constant 0 : index
    %c0_92 = arith.constant 0 : index
    %c0_93 = arith.constant 0 : index
    %150 = vector.load %arg6[%c0_91, %c0_92, %c0_93] : memref<25x48x128xf32, #tpu.memory_space<vmem>>, vector<1x48x128xf32>
    %151 = vector.shape_cast %150 : vector<1x48x128xf32> to vector<48x128xf32>
    %cst_94 = arith.constant dense<0.000000e+00> : vector<8x128xf32>
    %152 = tpu.matmul %149, %151, %cst_94 {dimension_numbers = #tpu.dot_dimension_numbers<[1], [0], [0], [1], [0, 0, 1, 1], [], []>} : vector<8x48xf32>, vector<48x128xf32>, vector<8x128xf32> -> vector<8x128xf32>
    %153 = arith.addf %148, %152 : vector<8x128xf32>
    %154 = vector.extract_strided_slice %147 {offsets = [0, 6], sizes = [8, 48], strides = [1, 1]} : vector<12x72xf32> to vector<8x48xf32>
    %c1_95 = arith.constant 1 : index
    %c0_96 = arith.constant 0 : index
    %c0_97 = arith.constant 0 : index
    %155 = vector.load %arg6[%c1_95, %c0_96, %c0_97] : memref<25x48x128xf32, #tpu.memory_space<vmem>>, vector<1x48x128xf32>
    %156 = vector.shape_cast %155 : vector<1x48x128xf32> to vector<48x128xf32>
    %cst_98 = arith.constant dense<0.000000e+00> : vector<8x128xf32>
    %157 = tpu.matmul %154, %156, %cst_98 {dimension_numbers = #tpu.dot_dimension_numbers<[1], [0], [0], [1], [0, 0, 1, 1], [], []>} : vector<8x48xf32>, vector<48x128xf32>, vector<8x128xf32> -> vector<8x128xf32>
    %158 = arith.addf %153, %157 : vector<8x128xf32>
    %159 = vector.extract_strided_slice %147 {offsets = [0, 12], sizes = [8, 48], strides = [1, 1]} : vector<12x72xf32> to vector<8x48xf32>
    %c2_99 = arith.constant 2 : index
    %c0_100 = arith.constant 0 : index
    %c0_101 = arith.constant 0 : index
    %160 = vector.load %arg6[%c2_99, %c0_100, %c0_101] : memref<25x48x128xf32, #tpu.memory_space<vmem>>, vector<1x48x128xf32>
    %161 = vector.shape_cast %160 : vector<1x48x128xf32> to vector<48x128xf32>
    %cst_102 = arith.constant dense<0.000000e+00> : vector<8x128xf32>
    %162 = tpu.matmul %159, %161, %cst_102 {dimension_numbers = #tpu.dot_dimension_numbers<[1], [0], [0], [1], [0, 0, 1, 1], [], []>} : vector<8x48xf32>, vector<48x128xf32>, vector<8x128xf32> -> vector<8x128xf32>
    %163 = arith.addf %158, %162 : vector<8x128xf32>
    %164 = vector.extract_strided_slice %147 {offsets = [0, 18], sizes = [8, 48], strides = [1, 1]} : vector<12x72xf32> to vector<8x48xf32>
    %c3_103 = arith.constant 3 : index
    %c0_104 = arith.constant 0 : index
    %c0_105 = arith.constant 0 : index
    %165 = vector.load %arg6[%c3_103, %c0_104, %c0_105] : memref<25x48x128xf32, #tpu.memory_space<vmem>>, vector<1x48x128xf32>
    %166 = vector.shape_cast %165 : vector<1x48x128xf32> to vector<48x128xf32>
    %cst_106 = arith.constant dense<0.000000e+00> : vector<8x128xf32>
    %167 = tpu.matmul %164, %166, %cst_106 {dimension_numbers = #tpu.dot_dimension_numbers<[1], [0], [0], [1], [0, 0, 1, 1], [], []>} : vector<8x48xf32>, vector<48x128xf32>, vector<8x128xf32> -> vector<8x128xf32>
    %168 = arith.addf %163, %167 : vector<8x128xf32>
    %169 = vector.extract_strided_slice %147 {offsets = [0, 24], sizes = [8, 48], strides = [1, 1]} : vector<12x72xf32> to vector<8x48xf32>
    %c4_107 = arith.constant 4 : index
    %c0_108 = arith.constant 0 : index
    %c0_109 = arith.constant 0 : index
    %170 = vector.load %arg6[%c4_107, %c0_108, %c0_109] : memref<25x48x128xf32, #tpu.memory_space<vmem>>, vector<1x48x128xf32>
    %171 = vector.shape_cast %170 : vector<1x48x128xf32> to vector<48x128xf32>
    %cst_110 = arith.constant dense<0.000000e+00> : vector<8x128xf32>
    %172 = tpu.matmul %169, %171, %cst_110 {dimension_numbers = #tpu.dot_dimension_numbers<[1], [0], [0], [1], [0, 0, 1, 1], [], []>} : vector<8x48xf32>, vector<48x128xf32>, vector<8x128xf32> -> vector<8x128xf32>
    %173 = arith.addf %168, %172 : vector<8x128xf32>
    %174 = vector.extract_strided_slice %147 {offsets = [1, 0], sizes = [8, 48], strides = [1, 1]} : vector<12x72xf32> to vector<8x48xf32>
    %c5_111 = arith.constant 5 : index
    %c0_112 = arith.constant 0 : index
    %c0_113 = arith.constant 0 : index
    %175 = vector.load %arg6[%c5_111, %c0_112, %c0_113] : memref<25x48x128xf32, #tpu.memory_space<vmem>>, vector<1x48x128xf32>
    %176 = vector.shape_cast %175 : vector<1x48x128xf32> to vector<48x128xf32>
    %cst_114 = arith.constant dense<0.000000e+00> : vector<8x128xf32>
    %177 = tpu.matmul %174, %176, %cst_114 {dimension_numbers = #tpu.dot_dimension_numbers<[1], [0], [0], [1], [0, 0, 1, 1], [], []>} : vector<8x48xf32>, vector<48x128xf32>, vector<8x128xf32> -> vector<8x128xf32>
    %178 = arith.addf %173, %177 : vector<8x128xf32>
    %179 = vector.extract_strided_slice %147 {offsets = [1, 6], sizes = [8, 48], strides = [1, 1]} : vector<12x72xf32> to vector<8x48xf32>
    %c6_115 = arith.constant 6 : index
    %c0_116 = arith.constant 0 : index
    %c0_117 = arith.constant 0 : index
    %180 = vector.load %arg6[%c6_115, %c0_116, %c0_117] : memref<25x48x128xf32, #tpu.memory_space<vmem>>, vector<1x48x128xf32>
    %181 = vector.shape_cast %180 : vector<1x48x128xf32> to vector<48x128xf32>
    %cst_118 = arith.constant dense<0.000000e+00> : vector<8x128xf32>
    %182 = tpu.matmul %179, %181, %cst_118 {dimension_numbers = #tpu.dot_dimension_numbers<[1], [0], [0], [1], [0, 0, 1, 1], [], []>} : vector<8x48xf32>, vector<48x128xf32>, vector<8x128xf32> -> vector<8x128xf32>
    %183 = arith.addf %178, %182 : vector<8x128xf32>
    %184 = vector.extract_strided_slice %147 {offsets = [1, 12], sizes = [8, 48], strides = [1, 1]} : vector<12x72xf32> to vector<8x48xf32>
    %c7_119 = arith.constant 7 : index
    %c0_120 = arith.constant 0 : index
    %c0_121 = arith.constant 0 : index
    %185 = vector.load %arg6[%c7_119, %c0_120, %c0_121] : memref<25x48x128xf32, #tpu.memory_space<vmem>>, vector<1x48x128xf32>
    %186 = vector.shape_cast %185 : vector<1x48x128xf32> to vector<48x128xf32>
    %cst_122 = arith.constant dense<0.000000e+00> : vector<8x128xf32>
    %187 = tpu.matmul %184, %186, %cst_122 {dimension_numbers = #tpu.dot_dimension_numbers<[1], [0], [0], [1], [0, 0, 1, 1], [], []>} : vector<8x48xf32>, vector<48x128xf32>, vector<8x128xf32> -> vector<8x128xf32>
    %188 = arith.addf %183, %187 : vector<8x128xf32>
    %189 = vector.extract_strided_slice %147 {offsets = [1, 18], sizes = [8, 48], strides = [1, 1]} : vector<12x72xf32> to vector<8x48xf32>
    %c8_123 = arith.constant 8 : index
    %c0_124 = arith.constant 0 : index
    %c0_125 = arith.constant 0 : index
    %190 = vector.load %arg6[%c8_123, %c0_124, %c0_125] : memref<25x48x128xf32, #tpu.memory_space<vmem>>, vector<1x48x128xf32>
    %191 = vector.shape_cast %190 : vector<1x48x128xf32> to vector<48x128xf32>
    %cst_126 = arith.constant dense<0.000000e+00> : vector<8x128xf32>
    %192 = tpu.matmul %189, %191, %cst_126 {dimension_numbers = #tpu.dot_dimension_numbers<[1], [0], [0], [1], [0, 0, 1, 1], [], []>} : vector<8x48xf32>, vector<48x128xf32>, vector<8x128xf32> -> vector<8x128xf32>
    %193 = arith.addf %188, %192 : vector<8x128xf32>
    %194 = vector.extract_strided_slice %147 {offsets = [1, 24], sizes = [8, 48], strides = [1, 1]} : vector<12x72xf32> to vector<8x48xf32>
    %c9_127 = arith.constant 9 : index
    %c0_128 = arith.constant 0 : index
    %c0_129 = arith.constant 0 : index
    %195 = vector.load %arg6[%c9_127, %c0_128, %c0_129] : memref<25x48x128xf32, #tpu.memory_space<vmem>>, vector<1x48x128xf32>
    %196 = vector.shape_cast %195 : vector<1x48x128xf32> to vector<48x128xf32>
    %cst_130 = arith.constant dense<0.000000e+00> : vector<8x128xf32>
    %197 = tpu.matmul %194, %196, %cst_130 {dimension_numbers = #tpu.dot_dimension_numbers<[1], [0], [0], [1], [0, 0, 1, 1], [], []>} : vector<8x48xf32>, vector<48x128xf32>, vector<8x128xf32> -> vector<8x128xf32>
    %198 = arith.addf %193, %197 : vector<8x128xf32>
    %199 = vector.extract_strided_slice %147 {offsets = [2, 0], sizes = [8, 48], strides = [1, 1]} : vector<12x72xf32> to vector<8x48xf32>
    %c10_131 = arith.constant 10 : index
    %c0_132 = arith.constant 0 : index
    %c0_133 = arith.constant 0 : index
    %200 = vector.load %arg6[%c10_131, %c0_132, %c0_133] : memref<25x48x128xf32, #tpu.memory_space<vmem>>, vector<1x48x128xf32>
    %201 = vector.shape_cast %200 : vector<1x48x128xf32> to vector<48x128xf32>
    %cst_134 = arith.constant dense<0.000000e+00> : vector<8x128xf32>
    %202 = tpu.matmul %199, %201, %cst_134 {dimension_numbers = #tpu.dot_dimension_numbers<[1], [0], [0], [1], [0, 0, 1, 1], [], []>} : vector<8x48xf32>, vector<48x128xf32>, vector<8x128xf32> -> vector<8x128xf32>
    %203 = arith.addf %198, %202 : vector<8x128xf32>
    %204 = vector.extract_strided_slice %147 {offsets = [2, 6], sizes = [8, 48], strides = [1, 1]} : vector<12x72xf32> to vector<8x48xf32>
    %c11_135 = arith.constant 11 : index
    %c0_136 = arith.constant 0 : index
    %c0_137 = arith.constant 0 : index
    %205 = vector.load %arg6[%c11_135, %c0_136, %c0_137] : memref<25x48x128xf32, #tpu.memory_space<vmem>>, vector<1x48x128xf32>
    %206 = vector.shape_cast %205 : vector<1x48x128xf32> to vector<48x128xf32>
    %cst_138 = arith.constant dense<0.000000e+00> : vector<8x128xf32>
    %207 = tpu.matmul %204, %206, %cst_138 {dimension_numbers = #tpu.dot_dimension_numbers<[1], [0], [0], [1], [0, 0, 1, 1], [], []>} : vector<8x48xf32>, vector<48x128xf32>, vector<8x128xf32> -> vector<8x128xf32>
    %208 = arith.addf %203, %207 : vector<8x128xf32>
    %209 = vector.extract_strided_slice %147 {offsets = [2, 12], sizes = [8, 48], strides = [1, 1]} : vector<12x72xf32> to vector<8x48xf32>
    %c12_139 = arith.constant 12 : index
    %c0_140 = arith.constant 0 : index
    %c0_141 = arith.constant 0 : index
    %210 = vector.load %arg6[%c12_139, %c0_140, %c0_141] : memref<25x48x128xf32, #tpu.memory_space<vmem>>, vector<1x48x128xf32>
    %211 = vector.shape_cast %210 : vector<1x48x128xf32> to vector<48x128xf32>
    %cst_142 = arith.constant dense<0.000000e+00> : vector<8x128xf32>
    %212 = tpu.matmul %209, %211, %cst_142 {dimension_numbers = #tpu.dot_dimension_numbers<[1], [0], [0], [1], [0, 0, 1, 1], [], []>} : vector<8x48xf32>, vector<48x128xf32>, vector<8x128xf32> -> vector<8x128xf32>
    %213 = arith.addf %208, %212 : vector<8x128xf32>
    %214 = vector.extract_strided_slice %147 {offsets = [2, 18], sizes = [8, 48], strides = [1, 1]} : vector<12x72xf32> to vector<8x48xf32>
    %c13_143 = arith.constant 13 : index
    %c0_144 = arith.constant 0 : index
    %c0_145 = arith.constant 0 : index
    %215 = vector.load %arg6[%c13_143, %c0_144, %c0_145] : memref<25x48x128xf32, #tpu.memory_space<vmem>>, vector<1x48x128xf32>
    %216 = vector.shape_cast %215 : vector<1x48x128xf32> to vector<48x128xf32>
    %cst_146 = arith.constant dense<0.000000e+00> : vector<8x128xf32>
    %217 = tpu.matmul %214, %216, %cst_146 {dimension_numbers = #tpu.dot_dimension_numbers<[1], [0], [0], [1], [0, 0, 1, 1], [], []>} : vector<8x48xf32>, vector<48x128xf32>, vector<8x128xf32> -> vector<8x128xf32>
    %218 = arith.addf %213, %217 : vector<8x128xf32>
    %219 = vector.extract_strided_slice %147 {offsets = [2, 24], sizes = [8, 48], strides = [1, 1]} : vector<12x72xf32> to vector<8x48xf32>
    %c14_147 = arith.constant 14 : index
    %c0_148 = arith.constant 0 : index
    %c0_149 = arith.constant 0 : index
    %220 = vector.load %arg6[%c14_147, %c0_148, %c0_149] : memref<25x48x128xf32, #tpu.memory_space<vmem>>, vector<1x48x128xf32>
    %221 = vector.shape_cast %220 : vector<1x48x128xf32> to vector<48x128xf32>
    %cst_150 = arith.constant dense<0.000000e+00> : vector<8x128xf32>
    %222 = tpu.matmul %219, %221, %cst_150 {dimension_numbers = #tpu.dot_dimension_numbers<[1], [0], [0], [1], [0, 0, 1, 1], [], []>} : vector<8x48xf32>, vector<48x128xf32>, vector<8x128xf32> -> vector<8x128xf32>
    %223 = arith.addf %218, %222 : vector<8x128xf32>
    %224 = vector.extract_strided_slice %147 {offsets = [3, 0], sizes = [8, 48], strides = [1, 1]} : vector<12x72xf32> to vector<8x48xf32>
    %c15_151 = arith.constant 15 : index
    %c0_152 = arith.constant 0 : index
    %c0_153 = arith.constant 0 : index
    %225 = vector.load %arg6[%c15_151, %c0_152, %c0_153] : memref<25x48x128xf32, #tpu.memory_space<vmem>>, vector<1x48x128xf32>
    %226 = vector.shape_cast %225 : vector<1x48x128xf32> to vector<48x128xf32>
    %cst_154 = arith.constant dense<0.000000e+00> : vector<8x128xf32>
    %227 = tpu.matmul %224, %226, %cst_154 {dimension_numbers = #tpu.dot_dimension_numbers<[1], [0], [0], [1], [0, 0, 1, 1], [], []>} : vector<8x48xf32>, vector<48x128xf32>, vector<8x128xf32> -> vector<8x128xf32>
    %228 = arith.addf %223, %227 : vector<8x128xf32>
    %229 = vector.extract_strided_slice %147 {offsets = [3, 6], sizes = [8, 48], strides = [1, 1]} : vector<12x72xf32> to vector<8x48xf32>
    %c16_155 = arith.constant 16 : index
    %c0_156 = arith.constant 0 : index
    %c0_157 = arith.constant 0 : index
    %230 = vector.load %arg6[%c16_155, %c0_156, %c0_157] : memref<25x48x128xf32, #tpu.memory_space<vmem>>, vector<1x48x128xf32>
    %231 = vector.shape_cast %230 : vector<1x48x128xf32> to vector<48x128xf32>
    %cst_158 = arith.constant dense<0.000000e+00> : vector<8x128xf32>
    %232 = tpu.matmul %229, %231, %cst_158 {dimension_numbers = #tpu.dot_dimension_numbers<[1], [0], [0], [1], [0, 0, 1, 1], [], []>} : vector<8x48xf32>, vector<48x128xf32>, vector<8x128xf32> -> vector<8x128xf32>
    %233 = arith.addf %228, %232 : vector<8x128xf32>
    %234 = vector.extract_strided_slice %147 {offsets = [3, 12], sizes = [8, 48], strides = [1, 1]} : vector<12x72xf32> to vector<8x48xf32>
    %c17_159 = arith.constant 17 : index
    %c0_160 = arith.constant 0 : index
    %c0_161 = arith.constant 0 : index
    %235 = vector.load %arg6[%c17_159, %c0_160, %c0_161] : memref<25x48x128xf32, #tpu.memory_space<vmem>>, vector<1x48x128xf32>
    %236 = vector.shape_cast %235 : vector<1x48x128xf32> to vector<48x128xf32>
    %cst_162 = arith.constant dense<0.000000e+00> : vector<8x128xf32>
    %237 = tpu.matmul %234, %236, %cst_162 {dimension_numbers = #tpu.dot_dimension_numbers<[1], [0], [0], [1], [0, 0, 1, 1], [], []>} : vector<8x48xf32>, vector<48x128xf32>, vector<8x128xf32> -> vector<8x128xf32>
    %238 = arith.addf %233, %237 : vector<8x128xf32>
    %239 = vector.extract_strided_slice %147 {offsets = [3, 18], sizes = [8, 48], strides = [1, 1]} : vector<12x72xf32> to vector<8x48xf32>
    %c18_163 = arith.constant 18 : index
    %c0_164 = arith.constant 0 : index
    %c0_165 = arith.constant 0 : index
    %240 = vector.load %arg6[%c18_163, %c0_164, %c0_165] : memref<25x48x128xf32, #tpu.memory_space<vmem>>, vector<1x48x128xf32>
    %241 = vector.shape_cast %240 : vector<1x48x128xf32> to vector<48x128xf32>
    %cst_166 = arith.constant dense<0.000000e+00> : vector<8x128xf32>
    %242 = tpu.matmul %239, %241, %cst_166 {dimension_numbers = #tpu.dot_dimension_numbers<[1], [0], [0], [1], [0, 0, 1, 1], [], []>} : vector<8x48xf32>, vector<48x128xf32>, vector<8x128xf32> -> vector<8x128xf32>
    %243 = arith.addf %238, %242 : vector<8x128xf32>
    %244 = vector.extract_strided_slice %147 {offsets = [3, 24], sizes = [8, 48], strides = [1, 1]} : vector<12x72xf32> to vector<8x48xf32>
    %c19_167 = arith.constant 19 : index
    %c0_168 = arith.constant 0 : index
    %c0_169 = arith.constant 0 : index
    %245 = vector.load %arg6[%c19_167, %c0_168, %c0_169] : memref<25x48x128xf32, #tpu.memory_space<vmem>>, vector<1x48x128xf32>
    %246 = vector.shape_cast %245 : vector<1x48x128xf32> to vector<48x128xf32>
    %cst_170 = arith.constant dense<0.000000e+00> : vector<8x128xf32>
    %247 = tpu.matmul %244, %246, %cst_170 {dimension_numbers = #tpu.dot_dimension_numbers<[1], [0], [0], [1], [0, 0, 1, 1], [], []>} : vector<8x48xf32>, vector<48x128xf32>, vector<8x128xf32> -> vector<8x128xf32>
    %248 = arith.addf %243, %247 : vector<8x128xf32>
    %249 = vector.extract_strided_slice %147 {offsets = [4, 0], sizes = [8, 48], strides = [1, 1]} : vector<12x72xf32> to vector<8x48xf32>
    %c20_171 = arith.constant 20 : index
    %c0_172 = arith.constant 0 : index
    %c0_173 = arith.constant 0 : index
    %250 = vector.load %arg6[%c20_171, %c0_172, %c0_173] : memref<25x48x128xf32, #tpu.memory_space<vmem>>, vector<1x48x128xf32>
    %251 = vector.shape_cast %250 : vector<1x48x128xf32> to vector<48x128xf32>
    %cst_174 = arith.constant dense<0.000000e+00> : vector<8x128xf32>
    %252 = tpu.matmul %249, %251, %cst_174 {dimension_numbers = #tpu.dot_dimension_numbers<[1], [0], [0], [1], [0, 0, 1, 1], [], []>} : vector<8x48xf32>, vector<48x128xf32>, vector<8x128xf32> -> vector<8x128xf32>
    %253 = arith.addf %248, %252 : vector<8x128xf32>
    %254 = vector.extract_strided_slice %147 {offsets = [4, 6], sizes = [8, 48], strides = [1, 1]} : vector<12x72xf32> to vector<8x48xf32>
    %c21_175 = arith.constant 21 : index
    %c0_176 = arith.constant 0 : index
    %c0_177 = arith.constant 0 : index
    %255 = vector.load %arg6[%c21_175, %c0_176, %c0_177] : memref<25x48x128xf32, #tpu.memory_space<vmem>>, vector<1x48x128xf32>
    %256 = vector.shape_cast %255 : vector<1x48x128xf32> to vector<48x128xf32>
    %cst_178 = arith.constant dense<0.000000e+00> : vector<8x128xf32>
    %257 = tpu.matmul %254, %256, %cst_178 {dimension_numbers = #tpu.dot_dimension_numbers<[1], [0], [0], [1], [0, 0, 1, 1], [], []>} : vector<8x48xf32>, vector<48x128xf32>, vector<8x128xf32> -> vector<8x128xf32>
    %258 = arith.addf %253, %257 : vector<8x128xf32>
    %259 = vector.extract_strided_slice %147 {offsets = [4, 12], sizes = [8, 48], strides = [1, 1]} : vector<12x72xf32> to vector<8x48xf32>
    %c22_179 = arith.constant 22 : index
    %c0_180 = arith.constant 0 : index
    %c0_181 = arith.constant 0 : index
    %260 = vector.load %arg6[%c22_179, %c0_180, %c0_181] : memref<25x48x128xf32, #tpu.memory_space<vmem>>, vector<1x48x128xf32>
    %261 = vector.shape_cast %260 : vector<1x48x128xf32> to vector<48x128xf32>
    %cst_182 = arith.constant dense<0.000000e+00> : vector<8x128xf32>
    %262 = tpu.matmul %259, %261, %cst_182 {dimension_numbers = #tpu.dot_dimension_numbers<[1], [0], [0], [1], [0, 0, 1, 1], [], []>} : vector<8x48xf32>, vector<48x128xf32>, vector<8x128xf32> -> vector<8x128xf32>
    %263 = arith.addf %258, %262 : vector<8x128xf32>
    %264 = vector.extract_strided_slice %147 {offsets = [4, 18], sizes = [8, 48], strides = [1, 1]} : vector<12x72xf32> to vector<8x48xf32>
    %c23_183 = arith.constant 23 : index
    %c0_184 = arith.constant 0 : index
    %c0_185 = arith.constant 0 : index
    %265 = vector.load %arg6[%c23_183, %c0_184, %c0_185] : memref<25x48x128xf32, #tpu.memory_space<vmem>>, vector<1x48x128xf32>
    %266 = vector.shape_cast %265 : vector<1x48x128xf32> to vector<48x128xf32>
    %cst_186 = arith.constant dense<0.000000e+00> : vector<8x128xf32>
    %267 = tpu.matmul %264, %266, %cst_186 {dimension_numbers = #tpu.dot_dimension_numbers<[1], [0], [0], [1], [0, 0, 1, 1], [], []>} : vector<8x48xf32>, vector<48x128xf32>, vector<8x128xf32> -> vector<8x128xf32>
    %268 = arith.addf %263, %267 : vector<8x128xf32>
    %269 = vector.extract_strided_slice %147 {offsets = [4, 24], sizes = [8, 48], strides = [1, 1]} : vector<12x72xf32> to vector<8x48xf32>
    %c24_187 = arith.constant 24 : index
    %c0_188 = arith.constant 0 : index
    %c0_189 = arith.constant 0 : index
    %270 = vector.load %arg6[%c24_187, %c0_188, %c0_189] : memref<25x48x128xf32, #tpu.memory_space<vmem>>, vector<1x48x128xf32>
    %271 = vector.shape_cast %270 : vector<1x48x128xf32> to vector<48x128xf32>
    %cst_190 = arith.constant dense<0.000000e+00> : vector<8x128xf32>
    %272 = tpu.matmul %269, %271, %cst_190 {dimension_numbers = #tpu.dot_dimension_numbers<[1], [0], [0], [1], [0, 0, 1, 1], [], []>} : vector<8x48xf32>, vector<48x128xf32>, vector<8x128xf32> -> vector<8x128xf32>
    %273 = arith.addf %268, %272 : vector<8x128xf32>
    %c0_191 = arith.constant 0 : index
    %c0_192 = arith.constant 0 : index
    %274 = vector.load %arg7[%c0_191, %c0_192] : memref<1x128xf32, #tpu.memory_space<vmem>>, vector<1x128xf32>
    %275 = vector.broadcast %274 : vector<1x128xf32> to vector<8x128xf32>
    %276 = arith.addf %273, %275 : vector<8x128xf32>
    %277 = math.absf %276 : vector<8x128xf32>
    %cst_193 = arith.constant 0.000000e+00 : f32
    %278 = vector.broadcast %cst_193 : f32 to vector<8x128xf32>
    %279 = arith.subf %278, %277 : vector<8x128xf32>
    %280 = math.exp %279 : vector<8x128xf32>
    %cst_194 = arith.constant 1.000000e+00 : f32
    %281 = vector.broadcast %cst_194 : f32 to vector<8x128xf32>
    %282 = arith.addf %281, %280 : vector<8x128xf32>
    %283 = tpu.reciprocal %282 : vector<8x128xf32> -> vector<8x128xf32>
    %284 = arith.mulf %280, %283 : vector<8x128xf32>
    %cst_195 = arith.constant 0.000000e+00 : f32
    %285 = vector.broadcast %cst_195 : f32 to vector<8x128xf32>
    %286 = arith.cmpf oge, %276, %285 : vector<8x128xf32>
    %cst_196 = arith.constant 1.000000e+00 : f32
    %287 = vector.broadcast %cst_196 : f32 to vector<8x128xf32>
    %288 = arith.subf %287, %284 : vector<8x128xf32>
    %289 = arith.select %286, %288, %284 : vector<8x128xi1>, vector<8x128xf32>
    %c0_197 = arith.constant 0 : index
    %c0_198 = arith.constant 0 : index
    %290 = vector.load %arg8[%c0_197, %c0_198] : memref<2x8xf32, #tpu.memory_space<vmem>>, vector<2x8xf32>
    %cst_199 = arith.constant dense<0.000000e+00> : vector<2x128xf32>
    %291 = tpu.matmul %290, %289, %cst_199 {dimension_numbers = #tpu.dot_dimension_numbers<[1], [0], [0], [1], [0, 0, 1, 1], [], []>} : vector<2x8xf32>, vector<8x128xf32>, vector<2x128xf32> -> vector<2x128xf32>
    %c0_200 = arith.constant 0 : index
    %c0_201 = arith.constant 0 : index
    %292 = vector.load %arg9[%c0_200, %c0_201] : memref<128x32xf32, #tpu.memory_space<vmem>>, vector<128x32xf32>
    %cst_202 = arith.constant dense<0.000000e+00> : vector<2x32xf32>
    %293 = tpu.matmul %291, %292, %cst_202 {dimension_numbers = #tpu.dot_dimension_numbers<[1], [0], [0], [1], [0, 0, 1, 1], [], []>} : vector<2x128xf32>, vector<128x32xf32>, vector<2x32xf32> -> vector<2x32xf32>
    %c0_203 = arith.constant 0 : index
    %c0_204 = arith.constant 0 : index
    %294 = vector.load %arg11[%c0_203, %c0_204] : memref<1x120xf32, #tpu.memory_space<vmem>>, vector<1x120xf32>
    %295 = vector.extract_strided_slice %293 {offsets = [0, 0], sizes = [1, 32], strides = [1, 1]} : vector<2x32xf32> to vector<1x32xf32>
    %c0_205 = arith.constant 0 : index
    %c0_206 = arith.constant 0 : index
    %c0_207 = arith.constant 0 : index
    %296 = vector.load %arg10[%c0_205, %c0_206, %c0_207] : memref<2x32x120xf32, #tpu.memory_space<vmem>>, vector<1x32x120xf32>
    %297 = vector.shape_cast %296 : vector<1x32x120xf32> to vector<32x120xf32>
    %cst_208 = arith.constant dense<0.000000e+00> : vector<1x120xf32>
    %298 = tpu.matmul %295, %297, %cst_208 {dimension_numbers = #tpu.dot_dimension_numbers<[1], [0], [0], [1], [0, 0, 1, 1], [], []>} : vector<1x32xf32>, vector<32x120xf32>, vector<1x120xf32> -> vector<1x120xf32>
    %299 = arith.addf %294, %298 : vector<1x120xf32>
    %300 = vector.extract_strided_slice %293 {offsets = [1, 0], sizes = [1, 32], strides = [1, 1]} : vector<2x32xf32> to vector<1x32xf32>
    %c1_209 = arith.constant 1 : index
    %c0_210 = arith.constant 0 : index
    %c0_211 = arith.constant 0 : index
    %301 = vector.load %arg10[%c1_209, %c0_210, %c0_211] : memref<2x32x120xf32, #tpu.memory_space<vmem>>, vector<1x32x120xf32>
    %302 = vector.shape_cast %301 : vector<1x32x120xf32> to vector<32x120xf32>
    %cst_212 = arith.constant dense<0.000000e+00> : vector<1x120xf32>
    %303 = tpu.matmul %300, %302, %cst_212 {dimension_numbers = #tpu.dot_dimension_numbers<[1], [0], [0], [1], [0, 0, 1, 1], [], []>} : vector<1x32xf32>, vector<32x120xf32>, vector<1x120xf32> -> vector<1x120xf32>
    %304 = arith.addf %299, %303 : vector<1x120xf32>
    %305 = math.absf %304 : vector<1x120xf32>
    %cst_213 = arith.constant 0.000000e+00 : f32
    %306 = vector.broadcast %cst_213 : f32 to vector<1x120xf32>
    %307 = arith.subf %306, %305 : vector<1x120xf32>
    %308 = math.exp %307 : vector<1x120xf32>
    %cst_214 = arith.constant 1.000000e+00 : f32
    %309 = vector.broadcast %cst_214 : f32 to vector<1x120xf32>
    %310 = arith.addf %309, %308 : vector<1x120xf32>
    %311 = tpu.reciprocal %310 : vector<1x120xf32> -> vector<1x120xf32>
    %312 = arith.mulf %308, %311 : vector<1x120xf32>
    %cst_215 = arith.constant 0.000000e+00 : f32
    %313 = vector.broadcast %cst_215 : f32 to vector<1x120xf32>
    %314 = arith.cmpf oge, %304, %313 : vector<1x120xf32>
    %cst_216 = arith.constant 1.000000e+00 : f32
    %315 = vector.broadcast %cst_216 : f32 to vector<1x120xf32>
    %316 = arith.subf %315, %312 : vector<1x120xf32>
    %317 = arith.select %314, %316, %312 : vector<1x120xi1>, vector<1x120xf32>
    %c0_217 = arith.constant 0 : index
    %c0_218 = arith.constant 0 : index
    %318 = vector.load %arg12[%c0_217, %c0_218] : memref<120x84xf32, #tpu.memory_space<vmem>>, vector<120x84xf32>
    %cst_219 = arith.constant dense<0.000000e+00> : vector<1x84xf32>
    %319 = tpu.matmul %317, %318, %cst_219 {dimension_numbers = #tpu.dot_dimension_numbers<[1], [0], [0], [1], [0, 0, 1, 1], [], []>} : vector<1x120xf32>, vector<120x84xf32>, vector<1x84xf32> -> vector<1x84xf32>
    %c0_220 = arith.constant 0 : index
    %c0_221 = arith.constant 0 : index
    %320 = vector.load %arg13[%c0_220, %c0_221] : memref<1x84xf32, #tpu.memory_space<vmem>>, vector<1x84xf32>
    %321 = arith.addf %319, %320 : vector<1x84xf32>
    %322 = math.absf %321 : vector<1x84xf32>
    %cst_222 = arith.constant 0.000000e+00 : f32
    %323 = vector.broadcast %cst_222 : f32 to vector<1x84xf32>
    %324 = arith.subf %323, %322 : vector<1x84xf32>
    %325 = math.exp %324 : vector<1x84xf32>
    %cst_223 = arith.constant 1.000000e+00 : f32
    %326 = vector.broadcast %cst_223 : f32 to vector<1x84xf32>
    %327 = arith.addf %326, %325 : vector<1x84xf32>
    %328 = tpu.reciprocal %327 : vector<1x84xf32> -> vector<1x84xf32>
    %329 = arith.mulf %325, %328 : vector<1x84xf32>
    %cst_224 = arith.constant 0.000000e+00 : f32
    %330 = vector.broadcast %cst_224 : f32 to vector<1x84xf32>
    %331 = arith.cmpf oge, %321, %330 : vector<1x84xf32>
    %cst_225 = arith.constant 1.000000e+00 : f32
    %332 = vector.broadcast %cst_225 : f32 to vector<1x84xf32>
    %333 = arith.subf %332, %329 : vector<1x84xf32>
    %334 = arith.select %331, %333, %329 : vector<1x84xi1>, vector<1x84xf32>
    %c0_226 = arith.constant 0 : index
    %c0_227 = arith.constant 0 : index
    %335 = vector.load %arg14[%c0_226, %c0_227] : memref<84x10xf32, #tpu.memory_space<vmem>>, vector<84x10xf32>
    %cst_228 = arith.constant dense<0.000000e+00> : vector<1x10xf32>
    %336 = tpu.matmul %334, %335, %cst_228 {dimension_numbers = #tpu.dot_dimension_numbers<[1], [0], [0], [1], [0, 0, 1, 1], [], []>} : vector<1x84xf32>, vector<84x10xf32>, vector<1x10xf32> -> vector<1x10xf32>
    %c0_229 = arith.constant 0 : index
    %c0_230 = arith.constant 0 : index
    %337 = vector.load %arg15[%c0_229, %c0_230] : memref<1x10xf32, #tpu.memory_space<vmem>>, vector<1x10xf32>
    %338 = arith.addf %336, %337 : vector<1x10xf32>
    %c0_231 = arith.constant 0 : index
    %c0_232 = arith.constant 0 : index
    %c0_233 = arith.constant 0 : index
    %339 = vector.load %arg16[%c0_231, %c0_232, %c0_233] : memref<1x1x10xf32, #tpu.memory_space<vmem>>, vector<1x1x10xf32>
    %340 = vector.shape_cast %339 : vector<1x1x10xf32> to vector<1x10xf32>
    %341 = vector.shape_cast %338 : vector<1x10xf32> to vector<1x1x10xf32>
    tpu.vector_store %arg16[%c0_231, %c0_232, %c0_233], %341 {strides = array<i32>} : memref<1x1x10xf32, #tpu.memory_space<vmem>>, vector<1x1x10xf32>,
    return
  }
  func.func @transform_0(%arg0: i32) -> (i32, i32, i32) {
    %c0_i32 = arith.constant 0 : i32
    %c0_i32_0 = arith.constant 0 : i32
    %c0_i32_1 = arith.constant 0 : i32
    return %arg0, %c0_i32, %c0_i32_0 : i32, i32, i32
  }
  func.func @transform_1(%arg0: i32) -> (i32, i32, i32) {
    %c0_i32 = arith.constant 0 : i32
    %c0_i32_0 = arith.constant 0 : i32
    %c0_i32_1 = arith.constant 0 : i32
    %c0_i32_2 = arith.constant 0 : i32
    return %c0_i32, %c0_i32_0, %c0_i32_1 : i32, i32, i32
  }
  func.func @transform_2(%arg0: i32) -> (i32, i32) {
    %c0_i32 = arith.constant 0 : i32
    %c0_i32_0 = arith.constant 0 : i32
    %c0_i32_1 = arith.constant 0 : i32
    return %c0_i32, %c0_i32_0 : i32, i32
  }
  func.func @transform_3(%arg0: i32) -> (i32, i32) {
    %c0_i32 = arith.constant 0 : i32
    %c0_i32_0 = arith.constant 0 : i32
    %c0_i32_1 = arith.constant 0 : i32
    return %c0_i32, %c0_i32_0 : i32, i32
  }
  func.func @transform_4(%arg0: i32) -> (i32, i32) {
    %c0_i32 = arith.constant 0 : i32
    %c0_i32_0 = arith.constant 0 : i32
    %c0_i32_1 = arith.constant 0 : i32
    return %c0_i32, %c0_i32_0 : i32, i32
  }
  func.func @transform_5(%arg0: i32) -> (i32, i32, i32) {
    %c0_i32 = arith.constant 0 : i32
    %c0_i32_0 = arith.constant 0 : i32
    %c0_i32_1 = arith.constant 0 : i32
    %c0_i32_2 = arith.constant 0 : i32
    return %c0_i32, %c0_i32_0, %c0_i32_1 : i32, i32, i32
  }
  func.func @transform_6(%arg0: i32) -> (i32, i32) {
    %c0_i32 = arith.constant 0 : i32
    %c0_i32_0 = arith.constant 0 : i32
    %c0_i32_1 = arith.constant 0 : i32
    return %c0_i32, %c0_i32_0 : i32, i32
  }
  func.func @transform_7(%arg0: i32) -> (i32, i32) {
    %c0_i32 = arith.constant 0 : i32
    %c0_i32_0 = arith.constant 0 : i32
    %c0_i32_1 = arith.constant 0 : i32
    return %c0_i32, %c0_i32_0 : i32, i32
  }
  func.func @transform_8(%arg0: i32) -> (i32, i32) {
    %c0_i32 = arith.constant 0 : i32
    %c0_i32_0 = arith.constant 0 : i32
    %c0_i32_1 = arith.constant 0 : i32
    return %c0_i32, %c0_i32_0 : i32, i32
  }
  func.func @transform_9(%arg0: i32) -> (i32, i32, i32) {
    %c0_i32 = arith.constant 0 : i32
    %c0_i32_0 = arith.constant 0 : i32
    %c0_i32_1 = arith.constant 0 : i32
    %c0_i32_2 = arith.constant 0 : i32
    return %c0_i32, %c0_i32_0, %c0_i32_1 : i32, i32, i32
  }
  func.func @transform_10(%arg0: i32) -> (i32, i32) {
    %c0_i32 = arith.constant 0 : i32
    %c0_i32_0 = arith.constant 0 : i32
    %c0_i32_1 = arith.constant 0 : i32
    return %c0_i32, %c0_i32_0 : i32, i32
  }
  func.func @transform_11(%arg0: i32) -> (i32, i32) {
    %c0_i32 = arith.constant 0 : i32
    %c0_i32_0 = arith.constant 0 : i32
    %c0_i32_1 = arith.constant 0 : i32
    return %c0_i32, %c0_i32_0 : i32, i32
  }
  func.func @transform_12(%arg0: i32) -> (i32, i32) {
    %c0_i32 = arith.constant 0 : i32
    %c0_i32_0 = arith.constant 0 : i32
    %c0_i32_1 = arith.constant 0 : i32
    return %c0_i32, %c0_i32_0 : i32, i32
  }
  func.func @transform_13(%arg0: i32) -> (i32, i32) {
    %c0_i32 = arith.constant 0 : i32
    %c0_i32_0 = arith.constant 0 : i32
    %c0_i32_1 = arith.constant 0 : i32
    return %c0_i32, %c0_i32_0 : i32, i32
  }
  func.func @transform_14(%arg0: i32) -> (i32, i32) {
    %c0_i32 = arith.constant 0 : i32
    %c0_i32_0 = arith.constant 0 : i32
    %c0_i32_1 = arith.constant 0 : i32
    return %c0_i32, %c0_i32_0 : i32, i32
  }
  func.func @transform_15(%arg0: i32) -> (i32, i32, i32) {
    %c0_i32 = arith.constant 0 : i32
    %c0_i32_0 = arith.constant 0 : i32
    %c0_i32_1 = arith.constant 0 : i32
    return %arg0, %c0_i32, %c0_i32_0 : i32, i32, i32
  }
}

</mosaic_0001>

<bundles_post_ra>
// kernel: lenet_forward.1
= control target key start
LH: loop header
LB: loop body
LE: loop exit
PB: predicated region body
PF: predicated region fallthrough
CT: control target
= control target key end

     0   :  { %20 = vsyncpa [#allocation3], 0  ;;  %s8987_s0 = inlined_call_operand.vmem [shape: f32[2,20,60], index: 0, kind: input, shape index: {}]   ;;  %s8988_s1 = inlined_call_operand.vmem [shape: f32[25,48,96], index: 1, kind: input, shape index: {}]   ;;  %s8989_s2 = inlined_call_operand.vmem [shape: f32[1,96], index: 2, kind: input, shape index: {}]   ;;  %s8990_s3 = inlined_call_operand.hbm [shape: f32[12,16], index: 3, kind: input, shape index: {}]   ;;  %s8991_s4 = inlined_call_operand.vmem [shape: f32[96,72], index: 4, kind: input, shape index: {}]   ;;  %s8992_s5 = inlined_call_operand.hbm [shape: f32[25,48,128], index: 5, kind: input, shape index: {}]   ;;  %s8993_s6 = inlined_call_operand.vmem [shape: f32[1,128], index: 6, kind: input, shape index: {}]   ;;  %s8994_s7 = inlined_call_operand.vmem [shape: f32[2,8], index: 7, kind: input, shape index: {}]   ;;  %s8995_s8 = inlined_call_operand.vmem [shape: f32[128,32], index: 8, kind: input, shape index: {}]   ;;  %s8996_s9 = inlined_call_operand.hbm [shape: f32[2,32,120], index: 9, kind: input, shape index: {}]   ;;  %s8997_s10 = inlined_call_operand.vmem [shape: f32[1,120], index: 10, kind: input, shape index: {}]   ;;  %s8998_s11 = inlined_call_operand.vmem [shape: f32[120,84], index: 11, kind: input, shape index: {}]   ;;  %s8999_s12 = inlined_call_operand.vmem [shape: f32[1,84], index: 12, kind: input, shape index: {}]   ;;  %s9000_s13 = inlined_call_operand.vmem [shape: f32[84,10], index: 13, kind: input, shape index: {}]   ;;  %s9001_s14 = inlined_call_operand.vmem [shape: f32[1,10], index: 14, kind: input, shape index: {}]   ;;  %s9002_s15 = inlined_call_operand.hbm [shape: f32[2,1,10], index: 15, kind: output, shape index: {}]  }
   0x1   :  { %21 = vsyncpa [#allocation6], 0 }
   0x2   :  { %22 = vsyncpa [#allocation4], 0 }
   0x3   :  { %24 = vsyncpa [#allocation4 + $0x1], 0  ;;  %s7680_s18 = smov 0   ;;  %s7682_s19 = smov 0  }
   0x4   :  { %s7684_s20 = smov 0   ;;  %s7686_s21 = smov 0  }
   0x5 LB: > { %9011 = sst [smem:[#allocation12_spill]] %s7572_s18  ;;  %s7701_s22 = sadd.s32 4294967295, %s7584_s21   ;;  %s7584_s21 = sphi %s7686_s21, %s9030_s21   ;;  %s7580_s20 = sphi %s7684_s20, %s9032_s20   ;;  %s7576_s19 = sphi %s7682_s19, %s9034_s19   ;;  %s7572_s18 = sphi %s7680_s18, %s9033_s18  }
   0x6   : > { %9012 = sst [smem:[#allocation13_spill]] %s7580_s20  ;;  %s5738_s23 = sadd.s32 4294967294, %s7584_s21  }
   0x7   : > { %9013 = sst [smem:[#allocation14_spill]] %s7584_s21  ;;  %s7705_s24 = sadd.s32 1, %s7584_s21  }
   0x8   : > { %9014 = sst [smem:[#allocation15_spill]] %s7705_s24  ;;  %s357_s25 = sadd.s32 1, %s7580_s20 }
   0x9   : > { %s354_s26 = ssub.s32 %s7584_s21, %s7705_s24  ;;  %p367_p0 = scmp.ne.s32.totalorder %s7580_s20, %s7576_s19 }
   0xa   : > { %p355_p1 = scmp.eq.s32.totalorder %s354_s26, 0  ;;  %p368_p2 = scmp.eq.s32.totalorder %s7701_s22, 1 }
   0xb   : > { %p373_p3 = scmp.ne.s32.totalorder %s7576_s19, %s7572_s18  ;;  %p374_p4 = scmp.eq.s32.totalorder %s5738_s23, 1 }
   0xc   : > { %s7716_s27 = scalar_select %p355_p1, %s7580_s20, %s357_s25  }
   0xd   : > { %p7718_p5 = por %p368_p2, %p367_p0  ;;  %p7722_p6 = por %p374_p4, %p373_p3 }
   0xe   : > { %9015 = sst [smem:[#allocation16_spill]] %s7716_s27  ;;  %p5739_p7 = scmp.ge.s32.totalorder %s7584_s21, 1 }
   0xf   : > { %s9016_s28 = scalar_select %p7718_p5, 1, 0 }
  0x10   : > { %s9017_s29 = scalar_select %p7722_p6, 1, 0 }
  0x11   : > { %p381_p8 = scmp.lt.s32.totalorder %s7584_s21, 3  ;;  %p9008_p9 = scmp.eq.s32.totalorder %s7701_s22, 0 }
  0x12   : > { %9018 = sst [smem:[#allocation17_spill]] %s9017_s29  ;;  %s7586_s16 = smov [#allocation5]  }
  0x13   : > { %p7729_p10 = pnand %p5739_p7, %p381_p8  ;;  %s415_s17 = sshll.u32 %s7586_s16, 4  ;;  %s416_s17 = int_to_ptr.vmem [resolvable:$true] %s415_s17 }
  0x14   : > { %s7587_s25 = smov [#allocation2]   ;;  %s7588_s27 = smov [#allocation7]  }
  0x15   : > { %p7352_p11 = pneg %p7729_p10  ;;  %s399_s26 = sshll.u32 %s7587_s25, 4  ;;  %s400_s26 = int_to_ptr.vmem [resolvable:$true] %s399_s26 }
  0x16   : > { %s437_s20 = sshll.u32 %s7588_s27, 4  ;;  %s7449_s24 = scalar_lea.vmem %s416_s17, 19200  ;;  %s438_s20 = int_to_ptr.vmem [resolvable:$true] %s437_s20 }
  0x17   : > { %p7737_p12 = pnand %p9008_p9, %p7352_p11  ;;  %p7450_p0 = scmp.ne.s32.totalorder %s416_s17, %s7449_s24 }
  0x18   : > { %p7457_p3 = scmp.lt.s32.totalorder %s416_s17, %s416_s17  ;;  %p7458_p4 = scmp.lt.s32.totalorder %s7449_s24, %s7449_s24 }
  0x19   : > { %p7440_p13 = pneg %p7737_p12 }
  0x1a   : > { %p7459_p7 = por %p7458_p4, %p7457_p3 }
  0x1b   : > { %p7452_p1 = pnand %p7450_p0, %p7440_p13 }
  0x1d   : > { %p7453_p2 = pneg %p7452_p1 }
  0x1f   : > { %p7460_p8 = pnand %p7459_p7, %p7453_p2 }
  0x21   : > { %7463 = shalt.err (!%p7460_p8)
}
  0x22   : > { %s7589_s16 = smov 128   ;;  %s7590_s25 = smov 8  }
  0x23   : > { %7358 = dma.hbm_to_vmem [thread:$0]  (!%p7737_p12), %s8992_s5, 19200, %s416_s17, [#allocation6], %s7589_s16, %s7589_s16, %s7590_s25  }
  0x24   : > { %s7475_s18 = scalar_lea.vmem %s400_s26, 256  ;;  %p7483_p9 = scmp.lt.s32.totalorder %s400_s26, %s400_s26 }
  0x25   : > { %p7476_p11 = scmp.ne.s32.totalorder %s400_s26, %s7475_s18  ;;  %p7484_p6 = scmp.lt.s32.totalorder %s7475_s18, %s7475_s18 }
  0x27   : > { %p7478_p0 = pnand %p7476_p11, %p7440_p13  ;;  %p7485_p3 = por %p7484_p6, %p7483_p9 }
  0x29   : > { %p7479_p1 = pneg %p7478_p0 }
  0x2b   : > { %p7486_p2 = pnand %p7485_p3, %p7479_p1 }
  0x2d   : > { %7489 = shalt.err (!%p7486_p2)
}
  0x2e   : > { %7355 = dma.hbm_to_vmem [thread:$0]  (!%p7737_p12), %s8990_s3, 256, %s400_s26, [#allocation3], %s7589_s16, %s7589_s16, %s7590_s25  }
  0x2f   : > { %s7501_s29 = scalar_lea.vmem %s438_s20, 1024  ;;  %p7509_p11 = scmp.lt.s32.totalorder %s438_s20, %s438_s20 }
  0x30   : > { %p7502_p4 = scmp.ne.s32.totalorder %s438_s20, %s7501_s29  ;;  %p7510_p0 = scmp.lt.s32.totalorder %s7501_s29, %s7501_s29 }
  0x32   : > { %p7504_p7 = pnand %p7502_p4, %p7440_p13  ;;  %p7511_p5 = por %p7510_p0, %p7509_p11 }
  0x34   : > { %p7505_p8 = pneg %p7504_p7 }
  0x36   : > { %p7512_p6 = pnand %p7511_p5, %p7505_p8 }
  0x38   : > { %7515 = shalt.err (!%p7512_p6)
}
  0x39   : > { %7361 = dma.hbm_to_vmem [thread:$0]  (!%p7737_p12), %s8996_s9, 1024, %s438_s20, [#allocation6], %s7589_s16, %s7589_s16, %s7590_s25  }
  0x3a   : > { %476 = sbr.rel (%p7729_p10) target bundleno = 2582 (0xa16), region = 80  ;;  %p9021_p9 = scmp.eq.s32.totalorder (!%p7729_p10), %s7701_s22, 0 }
  0x3f   : > { %7559 = dma.done.wait (%p9021_p9), [#allocation3], 256   ;;  %p9022_p13 = pmov %p9021_p9 }
  0x40   : > { %p9023_p1 = pmov %p9021_p9 }
  0x41   : > { %7561 = vsyncadd (%p9022_p13), [#allocation3], 4294967040 }
  0x42   : > { %7563 = dma.done.wait (%p9023_p1), [#allocation6], 20224   ;;  %p9024_p5 = pmov %p9023_p1 }
  0x43   : > { %p531_p3 = scmp.lt.s32.totalorder %s7701_s22, 1  ;;  %s7591_s16 = smov 125   ;;  %v5754_v1 = vld [vmem:[%s8988_s1 + $0x58] sm:$0xff]  ;;  %v544_v2 = vld [vmem:[%s8988_s1 + $0x28] sm:$0xff]  ;;  %v5753_v4 = vld [vmem:[%s8988_s1 + $0x50] sm:$0xff]  ;;  %vm1001_vm0 = vcmask 1046528  }
  0x44   : > { %7565 = vsyncadd (%p9024_p5), [#allocation6], 4294947072  ;;  %s7592_s25 = smov 122   ;;  %6433 = vmatprep.subr.mxu0 %v5754_v1  ;;  %6448 = vmatprep.subr.mxu1 %v544_v2  ;;  %v543_v5 = vld [vmem:[%s8988_s1 + $0x20] sm:$0xff]  ;;  %v5752_v6 = vld [vmem:[%s8988_s1 + $0x48] sm:$0xff]  ;;  %s7593_s23 = smov 119  }
  0x45   : > { %s532_s21 = scalar_select %p531_p3, %s7701_s22, 1  ;;  %6434 = vmatpush3.msra.mxu0 %v5754_v1  ;;  %6449 = vmatpush3.msra.mxu1 %v544_v2  ;;  %v542_v7 = vld [vmem:[%s8988_s1 + $0x18] sm:$0xff]  ;;  %v5751_v9 = vld [vmem:[%s8988_s1 + $0x40] sm:$0xff]  ;;  %v541_v10 = vld [vmem:[%s8988_s1 + $0x10] sm:$0xff]  ;;  %vm558_vm1 = vcmask 392192   ;;  %vm1463_vm2 = vcmask 1045504  }
  0x46   : > { %6435 = vmatprep.subr.mxu0 %v5753_v4  ;;  %6450 = vmatprep.subr.mxu1 %v543_v5  ;;  %v5750_v11 = vld [vmem:[%s8988_s1 + $0x38] sm:$0xff]  ;;  %v540_v12 = vld [vmem:[%s8988_s1 + $0x8] sm:$0xff]  ;;  %v5749_v16 = vld [vmem:[%s8988_s1 + $0x30] sm:$0xff]  ;;  %vm1925_vm3 = vcmask 1044480   ;;  %vm2387_vm4 = vcmask 1043456   ;;  %vm2873_vm5 = vcmask 130048  }
  0x47   : > { %s7337_s20 = smul.u32 24, %s532_s21  ;;  %6436 = vmatpush3.msra.mxu0 %v5753_v4  ;;  %6451 = vmatpush3.msra.mxu1 %v543_v5  ;;  %v539_v17 = vld [vmem:[%s8988_s1] sm:$0xff]  ;;  %v7852_v20 = vld [vmem:[%s8988_s1 + $0x88] sm:$0xff]  ;;  %v5772_v21 = vld [vmem:[%s8988_s1 + $0xb8] sm:$0xff]  ;;  %vm2967_vm8 = vcmask 785408   ;;  %vm7596_vm9 = vmmov 0  }
  0x48   : > { %6437 = vmatprep.subr.mxu0 %v5752_v6  ;;  %6452 = vmatprep.subr.mxu1 %v542_v7  ;;  %v5771_v22 = vld [vmem:[%s8988_s1 + $0xb0] sm:$0xff]  ;;  %v5770_v23 = vld [vmem:[%s8988_s1 + $0xa8] sm:$0xff]  ;;  %v5769_v24 = vld [vmem:[%s8988_s1 + $0xa0] sm:$0xff]  ;;  %s7597_s29 = smov 104   ;;  %s7598_s18 = smov 110   ;;  %vm5119_vm11 = vcmask 64512  }
  0x49   : > { %s535_s26 = scalar_lea.vmem %s8987_s0, %s7337_s20  ;;  %6438 = vmatpush3.msra.mxu0 %v5752_v6  ;;  %6453 = vmatpush3.msra.mxu1 %v542_v7  ;;  %s7594_s20 = smov 116   ;;  %v5768_v28 = vld [vmem:[%s8988_s1 + $0x98] sm:$0xff]  ;;  %v5767_v29 = vld [vmem:[%s8988_s1 + $0x90] sm:$0xff]  ;;  %v5763_v46 = vld [vmem:[%s8988_s1 + $0x80] sm:$0xff]  ;;  %vm5284_vm12 = vcmask 261120   ;;  %vm5464_vm13 = vcmask 982016  }
  0x4a   : > { %v7782_v0 = vld [vmem:[%s535_s26] sm:$0xff]  ;;  %v7794_v3 = vld [vmem:[%s535_s26 + $0x8] sm:$0xff]  ;;  %v7812_v8 = vld [vmem:[%s535_s26 + $0x10] sm:$0xf]  ;;  %6439 = vmatprep.subr.mxu0 %v5751_v9  ;;  %6454 = vmatprep.subr.mxu1 %v541_v10  ;;  %vm5560_vm15 = vcmask 687104   ;;  %s529_s27 = sand.u32 1, %s7576_s19  }
  0x4b   : > { %554 = vrot.lane.b32.xlu0 %v7782_v0, %s7591_s16  ;;  %724 = vrot.lane.b32.xlu1 %v7782_v0, %s7592_s25  ;;  %v1002_v13 = vrot.slane %v7782_v0, 1  ;;  %v1003_v14 = vrot.slane %v7794_v3, 1  ;;  %v1005_v15 = vrot.slane %v7812_v8, 1  ;;  %v1464_v25 = vrot.slane %v7782_v0, 2  ;;  %v5788_v32 = vld [vmem:[%s8988_s1 + $0x118] sm:$0xff]  ;;  %v5761_v49 = vld [vmem:[%s8988_s1 + $0x70] sm:$0xff] }
  0x4c   : > { %6440 = vmatpush3.msra.mxu0 %v5751_v9  ;;  %6455 = vmatpush3.msra.mxu1 %v541_v10  ;;  %v1465_v26 = vrot.slane %v7794_v3, 2  ;;  %v1467_v27 = vrot.slane %v7812_v8, 2  ;;  %v1926_v33 = vrot.slane %v7782_v0, 3  ;;  %v1927_v34 = vrot.slane %v7794_v3, 3  ;;  %v5762_v48 = vld [vmem:[%s8988_s1 + $0x78] sm:$0xff]  ;;  %v5787_v52 = vld [vmem:[%s8988_s1 + $0x110] sm:$0xff] }
  0x4d   : > { %6441 = vmatprep.subr.mxu0 %v5750_v11  ;;  %6456 = vmatprep.subr.mxu1 %v540_v12  ;;  %v7844_v18 = vsel %vm1001_vm0, %v1002_v13, %v1003_v14  ;;  %v7847_v19 = vsel %vm1001_vm0, %v1003_v14, %v1005_v15  ;;  %v1929_v35 = vrot.slane %v7812_v8, 3  ;;  %v2388_v38 = vrot.slane %v7782_v0, 4  ;;  %v5760_v53 = vld [vmem:[%s8988_s1 + $0x68] sm:$0xff]  ;;  %v5759_v55 = vld [vmem:[%s8988_s1 + $0x60] sm:$0xff]  ;;  %v5784_v59 = vld [vmem:[%s8988_s1 + $0xf8] sm:$0xff]  ;;  %s5640_s26 = scalar_lea.sflag [#allocation4], %s529_s27 }
  0x4e   : > { %6442 = vmatpush3.msra.mxu0 %v5750_v11  ;;  %6457 = vmatpush3.msra.mxu1 %v540_v12  ;;  %v7897_v30 = vsel %vm1463_vm2, %v1464_v25, %v1465_v26  ;;  %v7900_v31 = vsel %vm1463_vm2, %v1465_v26, %v1467_v27  ;;  %v7925_v36 = vsel %vm1925_vm3, %v1926_v33, %v1927_v34  ;;  %v2389_v39 = vrot.slane %v7794_v3, 4  ;;  %v5786_v54 = vld [vmem:[%s8988_s1 + $0x108] sm:$0xff]  ;;  %v5785_v56 = vld [vmem:[%s8988_s1 + $0x100] sm:$0xff]  ;;  %v5778_v61 = vld [vmem:[%s8988_s1 + $0xd8] sm:$0xff]  ;;  %p9025_p12 = scmp.ne.s32.totalorder %s9016_s28, 0 }
  0x4f   : > { %556 = vrot.lane.b32.xlu0 %v7794_v3, %s7591_s16  ;;  %726 = vrot.lane.b32.xlu1 %v7794_v3, %s7592_s25  ;;  %v7928_v37 = vsel %vm1925_vm3, %v1927_v34, %v1929_v35  ;;  %v2391_v40 = vrot.slane %v7812_v8, 4  ;;  %v5780_v57 = vld [vmem:[%s8988_s1 + $0xe8] sm:$0xff]  ;;  %v5779_v58 = vld [vmem:[%s8988_s1 + $0xe0] sm:$0xff] }
  0x50   : > { %6443 = vmatprep.subr.mxu0 %v5749_v16  ;;  %6458 = vmatprep.subr.mxu1 %v539_v17  ;;  %v7950_v41 = vsel %vm2387_vm4, %v2388_v38, %v2389_v39  ;;  %v5783_v62 = vld [vmem:[%s8988_s1 + $0xf0] sm:$0xff]  ;;  %v5804_v1 = vld [vmem:[%s8988_s1 + $0x178] sm:$0xff]  ;;  %v5775_v2 = vld [vmem:[%s8988_s1 + $0xc0] sm:$0xff] }
  0x51   : > { %6444 = vmatpush3.msra.mxu0 %v5749_v16  ;;  %6459 = vmatpush3.msra.mxu1 %v539_v17  ;;  %v7953_v42 = vsel %vm2387_vm4, %v2389_v39, %v2391_v40  ;;  %v5777_v63 = vld [vmem:[%s8988_s1 + $0xd0] sm:$0xff]  ;;  %v5796_v5 = vld [vmem:[%s8988_s1 + $0x148] sm:$0xff]  ;;  %v5795_v6 = vld [vmem:[%s8988_s1 + $0x140] sm:$0xff] }
  0x52   : > { %6463 = vmatprep.subr.mxu0 %v7852_v20  ;;  %6460 = vmatprep.mubr.msk.f32.mxu1 %vm558_vm1, %v7782_v0  ;;  %v5802_v7 = vld [vmem:[%s8988_s1 + $0x168] sm:$0xff]  ;;  %v5794_v8 = vld [vmem:[%s8988_s1 + $0x138] sm:$0xff]  ;;  %v5801_v9 = vld [vmem:[%s8988_s1 + $0x160] sm:$0xff] }
  0x53   : > { %816 = vrot.lane.b32.xlu0 %v7782_v0, %s7593_s23  ;;  %818 = vrot.lane.b32.xlu1 %v7794_v3, %s7593_s23  ;;  %v5793_v11 = vld [vmem:[%s8988_s1 + $0x130] sm:$0xff]  ;;  %v5800_v12 = vld [vmem:[%s8988_s1 + $0x158] sm:$0xff] }
  0x54   : > { %6461 = vmatmul.mubr.msk.f32.vlgmr.msra.gmra.mxu1 %vm558_vm1, %v7794_v3  ;;  %6478 = vmatprep.subr.mxu1 %v5772_v21  ;;  %v5792_v14 = vld [vmem:[%s8988_s1 + $0x128] sm:$0xff]  ;;  %v5799_v15 = vld [vmem:[%s8988_s1 + $0x150] sm:$0xff]  ;;  %v5791_v16 = vld [vmem:[%s8988_s1 + $0x120] sm:$0xff] }
  0x55   : > { %6479 = vmatpush3.msra.mxu1 %v5772_v21  ;;  %v5820_v21 = vld [vmem:[%s8988_s1 + $0x1d8] sm:$0xff]  ;;  %v5818_v25 = vld [vmem:[%s8988_s1 + $0x1c8] sm:$0xff]  ;;  %v5815_v35 = vld [vmem:[%s8988_s1 + $0x1b0] sm:$0xff] }
  0x56   : > { %6480 = vmatprep.subr.mxu1 %v5771_v22  ;;  %v5808_v26 = vld [vmem:[%s8988_s1 + $0x188] sm:$0xff]  ;;  %v5816_v33 = vld [vmem:[%s8988_s1 + $0x1b8] sm:$0xff]  ;;  %v5827_v40 = vld [vmem:[%s8988_s1 + $0x200] sm:$0xff] }
  0x57   : > { %908 = vrot.lane.b32.xlu0 %v7782_v0, %s7594_s20  ;;  %910 = vrot.lane.b32.xlu1 %v7794_v3, %s7594_s20  ;;  %v5776_v0 = vld [vmem:[%s8988_s1 + $0xc8] sm:$0xff]  ;;  %v5803_v3 = vld [vmem:[%s8988_s1 + $0x170] sm:$0xff] }
  0x58   : > { %6481 = vmatpush3.msra.mxu1 %v5771_v22  ;;  %v5810_v22 = vld [vmem:[%s8988_s1 + $0x198] sm:$0xff]  ;;  %v5828_v34 = vld [vmem:[%s8988_s1 + $0x208] sm:$0xff] }
  0x59   : > { %6482 = vmatprep.subr.mxu1 %v5770_v23 }
  0x5a   : > { %6483 = vmatpush3.msra.mxu1 %v5770_v23  ;;  %v5819_v23 = vld [vmem:[%s8988_s1 + $0x1d0] sm:$0xff] }
  0x5b   : > { %1095 = vrot.lane.b32.xlu0 %v7844_v18, %s7591_s16  ;;  %1097 = vrot.lane.b32.xlu1 %v7847_v19, %s7591_s16 }
  0x5c   : > { %6484 = vmatprep.subr.mxu1 %v5769_v24 }
  0x5d   : > { %6485 = vmatpush3.msra.mxu1 %v5769_v24  ;;  %v5809_v24 = vld [vmem:[%s8988_s1 + $0x190] sm:$0xff] }
  0x5e   : > { %6486 = vmatprep.subr.mxu1 %v5768_v28 }
  0x5f   : > { %1187 = vrot.lane.b32.xlu0 %v7844_v18, %s7592_s25  ;;  %1189 = vrot.lane.b32.xlu1 %v7847_v19, %s7592_s25 }
  0x60   : > { %6487 = vmatpush3.msra.mxu1 %v5768_v28  ;;  %v5817_v28 = vld [vmem:[%s8988_s1 + $0x1c0] sm:$0xff] }
  0x61   : > { %6488 = vmatprep.subr.mxu1 %v5767_v29 }
  0x62   : > { %6489 = vmatpush3.msra.mxu1 %v5767_v29 }
  0x63   : > { %1279 = vrot.lane.b32.xlu0 %v7844_v18, %s7593_s23  ;;  %1281 = vrot.lane.b32.xlu1 %v7847_v19, %s7593_s23 }
  0x64   : > { %6508 = vmatprep.subr.mxu1 %v5788_v32 }
  0x67   : > { %1371 = vrot.lane.b32.xlu0 %v7844_v18, %s7594_s20  ;;  %1373 = vrot.lane.b32.xlu1 %v7847_v19, %s7594_s20 }
  0x6b   : > { %1557 = vrot.lane.b32.xlu0 %v7897_v30, %s7591_s16  ;;  %1559 = vrot.lane.b32.xlu1 %v7900_v31, %s7591_s16 }
  0x6f   : > { %1649 = vrot.lane.b32.xlu0 %v7897_v30, %s7592_s25  ;;  %1651 = vrot.lane.b32.xlu1 %v7900_v31, %s7592_s25 }
  0x73   : > { %1741 = vrot.lane.b32.xlu0 %v7897_v30, %s7593_s23  ;;  %1743 = vrot.lane.b32.xlu1 %v7900_v31, %s7593_s23 }
  0x77   : > { %1833 = vrot.lane.b32.xlu0 %v7897_v30, %s7594_s20  ;;  %1835 = vrot.lane.b32.xlu1 %v7900_v31, %s7594_s20 }
  0x7b   : > { %2019 = vrot.lane.b32.xlu0 %v7925_v36, %s7591_s16  ;;  %2021 = vrot.lane.b32.xlu1 %v7928_v37, %s7591_s16 }
  0x7f   : > { %2111 = vrot.lane.b32.xlu0 %v7925_v36, %s7592_s25  ;;  %2113 = vrot.lane.b32.xlu1 %v7928_v37, %s7592_s25 }
  0x83   : > { %2203 = vrot.lane.b32.xlu0 %v7925_v36, %s7593_s23  ;;  %2205 = vrot.lane.b32.xlu1 %v7928_v37, %s7593_s23 }
  0x87   : > { %2295 = vrot.lane.b32.xlu0 %v7925_v36, %s7594_s20  ;;  %2297 = vrot.lane.b32.xlu1 %v7928_v37, %s7594_s20 }
  0x8b   : > { %2481 = vrot.lane.b32.xlu0 %v7950_v41, %s7591_s16  ;;  %2483 = vrot.lane.b32.xlu1 %v7953_v42, %s7591_s16 }
  0x8f   : > { %2573 = vrot.lane.b32.xlu0 %v7950_v41, %s7592_s25  ;;  %2575 = vrot.lane.b32.xlu1 %v7953_v42, %s7592_s25 }
  0x93   : > { %2665 = vrot.lane.b32.xlu0 %v7950_v41, %s7593_s23  ;;  %2667 = vrot.lane.b32.xlu1 %v7953_v42, %s7593_s23 }
  0x97   : > { %2757 = vrot.lane.b32.xlu0 %v7950_v41, %s7594_s20  ;;  %2759 = vrot.lane.b32.xlu1 %v7953_v42, %s7594_s20 }
  0xbd   : > { %v555_v43 = vpop.permute.xlu0 %554  ;;  %v725_v44 = vpop.permute.xlu1 %724 }
  0xbe   : > { %6445 = vmatprep.mubr.msk.f32.mxu0 %vm558_vm1, %v555_v43  ;;  %v5836_v43 = vld [vmem:[%s8988_s1 + $0x238] sm:$0xff] }
  0xc1   : > { %v557_v45 = vpop.permute.xlu0 %556  ;;  %v727_v47 = vpop.permute.xlu1 %726 }
  0xc2   : > { %6446 = vmatmul.mubr.msk.f32.vlgmr.msra.gmra.mxu0 %vm558_vm1, %v557_v45  ;;  %v5835_v45 = vld [vmem:[%s8988_s1 + $0x230] sm:$0xff] }
  0xc3   : > { %6464 = vmatpush3.msra.mxu0 %v7852_v20  ;;  %6475 = vmatprep.mubr.msk.f32.mxu0 %vm558_vm1, %v725_v44  ;;  %v5811_v20 = vld [vmem:[%s8988_s1 + $0x1a0] sm:$0xff]  ;;  %v5826_v44 = vld [vmem:[%s8988_s1 + $0x1f8] sm:$0xff] }
  0xc4   : > { %6465 = vmatprep.subr.mxu0 %v5763_v46 }
  0xc5   : > { %6466 = vmatpush3.msra.mxu0 %v5763_v46  ;;  %v817_v50 = vpop.permute.xlu0 %816  ;;  %v819_v51 = vpop.permute.xlu1 %818  ;;  %v5825_v46 = vld [vmem:[%s8988_s1 + $0x1f0] sm:$0xff] }
  0xc6   : > { %6467 = vmatprep.subr.mxu0 %v5762_v48  ;;  %6490 = vmatprep.mubr.msk.f32.mxu1 %vm558_vm1, %v817_v50  ;;  %v5823_v50 = vld [vmem:[%s8988_s1 + $0x1e0] sm:$0xff] }
  0xc7   : > { %6468 = vmatpush3.msra.mxu0 %v5762_v48  ;;  %6491 = vmatmul.mubr.msk.f32.vlgmr.msra.gmra.mxu1 %vm558_vm1, %v819_v51  ;;  %v5824_v48 = vld [vmem:[%s8988_s1 + $0x1e8] sm:$0xff]  ;;  %v5832_v51 = vld [vmem:[%s8988_s1 + $0x218] sm:$0xff] }
  0xc8   : > { %6469 = vmatprep.subr.mxu0 %v5761_v49  ;;  %6509 = vmatpush3.msra.mxu1 %v5788_v32  ;;  %v5807_v32 = vld [vmem:[%s8988_s1 + $0x180] sm:$0xff] }
  0xc9   : > { %6470 = vmatpush3.msra.mxu0 %v5761_v49  ;;  %6510 = vmatprep.subr.mxu1 %v5787_v52  ;;  %v909_v60 = vpop.permute.xlu0 %908  ;;  %v911_v4 = vpop.permute.xlu1 %910  ;;  %v5833_v49 = vld [vmem:[%s8988_s1 + $0x220] sm:$0xff] }
  0xca   : > { %6471 = vmatprep.subr.mxu0 %v5760_v53  ;;  %6511 = vmatpush3.msra.mxu1 %v5787_v52  ;;  %v5844_v52 = vld [vmem:[%s8988_s1 + $0x268] sm:$0xff] }
  0xcb   : > { %6472 = vmatpush3.msra.mxu0 %v5760_v53  ;;  %6512 = vmatprep.subr.mxu1 %v5786_v54  ;;  %v5831_v53 = vld [vmem:[%s8988_s1 + $0x210] sm:$0xff] }
  0xcc   : > { %6473 = vmatprep.subr.mxu0 %v5759_v55  ;;  %6513 = vmatpush3.msra.mxu1 %v5786_v54 }
  0xcd   : > { %6474 = vmatpush3.msra.mxu0 %v5759_v55  ;;  %6514 = vmatprep.subr.mxu1 %v5785_v56  ;;  %v1096_v10 = vpop.permute.xlu0 %1095  ;;  %v1098_v13 = vpop.permute.xlu1 %1097 }
  0xce   : > { %6476 = vmatmul.mubr.msk.f32.vlgmr.msra.gmra.mxu0 %vm558_vm1, %v727_v47  ;;  %6493 = vmatprep.subr.mxu0 %v5780_v57  ;;  %v5834_v47 = vld [vmem:[%s8988_s1 + $0x228] sm:$0xff] }
  0xcf   : > { %6494 = vmatpush3.msra.mxu0 %v5780_v57  ;;  %6515 = vmatpush3.msra.mxu1 %v5785_v56  ;;  %v5843_v56 = vld [vmem:[%s8988_s1 + $0x260] sm:$0xff]  ;;  %v5852_v57 = vld [vmem:[%s8988_s1 + $0x298] sm:$0xff] }
  0xd0   : > { %6495 = vmatprep.subr.mxu0 %v5779_v58  ;;  %6516 = vmatprep.subr.mxu1 %v5784_v59 }
  0xd1   : > { %6496 = vmatpush3.msra.mxu0 %v5779_v58  ;;  %6505 = vmatprep.mubr.msk.f32.mxu0 %vm558_vm1, %v909_v60  ;;  %v1188_v17 = vpop.permute.xlu0 %1187  ;;  %v5841_v58 = vld [vmem:[%s8988_s1 + $0x250] sm:$0xff]  ;;  %v5840_v60 = vld [vmem:[%s8988_s1 + $0x248] sm:$0xff] }
  0xd2   : > { %6497 = vmatprep.subr.mxu0 %v5778_v61  ;;  %6517 = vmatpush3.msra.mxu1 %v5784_v59  ;;  %v5850_v59 = vld [vmem:[%s8988_s1 + $0x288] sm:$0xff] }
  0xd3   : > { %6498 = vmatpush3.msra.mxu0 %v5778_v61  ;;  %6518 = vmatprep.subr.mxu1 %v5783_v62 }
  0xd4   : > { %6499 = vmatprep.subr.mxu0 %v5777_v63  ;;  %6519 = vmatpush3.msra.mxu1 %v5783_v62  ;;  %v5849_v62 = vld [vmem:[%s8988_s1 + $0x280] sm:$0xff] }
  0xd5   : > { %6500 = vmatpush3.msra.mxu0 %v5777_v63  ;;  %6520 = vmatprep.mubr.msk.f32.mxu1 %vm558_vm1, %v7844_v18  ;;  %v5812_v18 = vld [vmem:[%s8988_s1 + $0x1a8] sm:$0xff]  ;;  %v1280_v27 = vpop.permute.xlu0 %1279 }
  0xd6   : > { %6501 = vmatprep.subr.mxu0 %v5776_v0  ;;  %6521 = vmatmul.mubr.msk.f32.vlgmr.msra.gmra.mxu1 %vm558_vm1, %v7847_v19  ;;  %v1190_v19 = vpop.permute.xlu1 %1189 }
  0xd7   : > { %6502 = vmatpush3.msra.mxu0 %v5776_v0  ;;  %6538 = vmatprep.subr.mxu1 %v5804_v1  ;;  %v5839_v0 = vld [vmem:[%s8988_s1 + $0x240] sm:$0xff] }
  0xd8   : > { %6503 = vmatprep.subr.mxu0 %v5775_v2  ;;  %6539 = vmatpush3.msra.mxu1 %v5804_v1  ;;  %v5848_v1 = vld [vmem:[%s8988_s1 + $0x278] sm:$0xff] }
  0xd9   : > { %6504 = vmatpush3.msra.mxu0 %v5775_v2  ;;  %6540 = vmatprep.subr.mxu1 %v5803_v3  ;;  %v1372_v38 = vpop.permute.xlu0 %1371  ;;  %v5860_v2 = vld [vmem:[%s8988_s1 + $0x2c8] sm:$0xff] }
  0xda   : > { %6506 = vmatmul.mubr.msk.f32.vlgmr.msra.gmra.mxu0 %vm558_vm1, %v911_v4  ;;  %6523 = vmatprep.subr.mxu0 %v5796_v5  ;;  %v1282_v29 = vpop.permute.xlu1 %1281 }
  0xdb   : > { %6524 = vmatpush3.msra.mxu0 %v5796_v5  ;;  %6541 = vmatpush3.msra.mxu1 %v5803_v3  ;;  %v5847_v3 = vld [vmem:[%s8988_s1 + $0x270] sm:$0xff] }
  0xdc   : > { %6525 = vmatprep.subr.mxu0 %v5795_v6  ;;  %6542 = vmatprep.subr.mxu1 %v5802_v7 }
  0xdd   : > { %6526 = vmatpush3.msra.mxu0 %v5795_v6  ;;  %6543 = vmatpush3.msra.mxu1 %v5802_v7  ;;  %v1558_v54 = vpop.permute.xlu0 %1557  ;;  %v5859_v6 = vld [vmem:[%s8988_s1 + $0x2c0] sm:$0xff]  ;;  %v5868_v7 = vld [vmem:[%s8988_s1 + $0x2f8] sm:$0xff] }
  0xde   : > { %6527 = vmatprep.subr.mxu0 %v5794_v8  ;;  %6544 = vmatprep.subr.mxu1 %v5801_v9  ;;  %v1374_v39 = vpop.permute.xlu1 %1373 }
  0xdf   : > { %6528 = vmatpush3.msra.mxu0 %v5794_v8  ;;  %6545 = vmatpush3.msra.mxu1 %v5801_v9  ;;  %v5858_v8 = vld [vmem:[%s8988_s1 + $0x2b8] sm:$0xff]  ;;  %v5867_v9 = vld [vmem:[%s8988_s1 + $0x2f0] sm:$0xff] }
  0xe0   : > { %6529 = vmatprep.subr.mxu0 %v5793_v11  ;;  %6546 = vmatprep.subr.mxu1 %v5800_v12 }
  0xe1   : > { %6530 = vmatpush3.msra.mxu0 %v5793_v11  ;;  %6535 = vmatprep.mubr.msk.f32.mxu0 %vm558_vm1, %v1096_v10  ;;  %v1650_v61 = vpop.permute.xlu0 %1649  ;;  %v5857_v10 = vld [vmem:[%s8988_s1 + $0x2b0] sm:$0xff]  ;;  %v5866_v11 = vld [vmem:[%s8988_s1 + $0x2e8] sm:$0xff] }
  0xe2   : > { %6531 = vmatprep.subr.mxu0 %v5792_v14  ;;  %6547 = vmatpush3.msra.mxu1 %v5800_v12  ;;  %v1560_v55 = vpop.permute.xlu1 %1559  ;;  %v5856_v12 = vld [vmem:[%s8988_s1 + $0x2a8] sm:$0xff] }
  0xe3   : > { %6532 = vmatpush3.msra.mxu0 %v5792_v14  ;;  %6548 = vmatprep.subr.mxu1 %v5799_v15  ;;  %v5855_v14 = vld [vmem:[%s8988_s1 + $0x2a0] sm:$0xff] }
  0xe4   : > { %6533 = vmatprep.subr.mxu0 %v5791_v16  ;;  %6549 = vmatpush3.msra.mxu1 %v5799_v15  ;;  %v5864_v15 = vld [vmem:[%s8988_s1 + $0x2d8] sm:$0xff] }
  0xe5   : > { %6534 = vmatpush3.msra.mxu0 %v5791_v16  ;;  %6550 = vmatprep.mubr.msk.f32.mxu1 %vm558_vm1, %v1188_v17  ;;  %v1742_v4 = vpop.permute.xlu0 %1741 }
  0xe6   : > { %6536 = vmatmul.mubr.msk.f32.vlgmr.msra.gmra.mxu0 %vm558_vm1, %v1098_v13  ;;  %6553 = vmatprep.subr.mxu0 %v5812_v18  ;;  %v1652_v63 = vpop.permute.xlu1 %1651  ;;  %v5865_v13 = vld [vmem:[%s8988_s1 + $0x2e0] sm:$0xff] }
  0xe7   : > { %6554 = vmatpush3.msra.mxu0 %v5812_v18  ;;  %6551 = vmatmul.mubr.msk.f32.vlgmr.msra.gmra.mxu1 %vm558_vm1, %v1190_v19  ;;  %v5863_v18 = vld [vmem:[%s8988_s1 + $0x2d0] sm:$0xff]  ;;  %v5876_v19 = vld [vmem:[%s8988_s1 + $0x328] sm:$0xff] }
  0xe8   : > { %6555 = vmatprep.subr.mxu0 %v5811_v20  ;;  %6568 = vmatprep.subr.mxu1 %v5820_v21 }
  0xe9   : > { %6556 = vmatpush3.msra.mxu0 %v5811_v20  ;;  %6569 = vmatpush3.msra.mxu1 %v5820_v21  ;;  %v1834_v16 = vpop.permute.xlu0 %1833  ;;  %v5875_v20 = vld [vmem:[%s8988_s1 + $0x320] sm:$0xff]  ;;  %v5884_v21 = vld [vmem:[%s8988_s1 + $0x358] sm:$0xff] }
  0xea   : > { %6557 = vmatprep.subr.mxu0 %v5810_v22  ;;  %6570 = vmatprep.subr.mxu1 %v5819_v23  ;;  %v1744_v5 = vpop.permute.xlu1 %1743 }
  0xeb   : > { %6558 = vmatpush3.msra.mxu0 %v5810_v22  ;;  %6571 = vmatpush3.msra.mxu1 %v5819_v23  ;;  %v5874_v22 = vld [vmem:[%s8988_s1 + $0x318] sm:$0xff]  ;;  %v5883_v23 = vld [vmem:[%s8988_s1 + $0x350] sm:$0xff] }
  0xec   : > { %6559 = vmatprep.subr.mxu0 %v5809_v24  ;;  %6572 = vmatprep.subr.mxu1 %v5818_v25 }
  0xed   : > { %6560 = vmatpush3.msra.mxu0 %v5809_v24  ;;  %6573 = vmatpush3.msra.mxu1 %v5818_v25  ;;  %v5872_v24 = vld [vmem:[%s8988_s1 + $0x308] sm:$0xff]  ;;  %v2020_v25 = vpop.permute.xlu0 %2019 }
  0xee   : > { %6561 = vmatprep.subr.mxu0 %v5808_v26  ;;  %6574 = vmatprep.subr.mxu1 %v5817_v28  ;;  %v1836_v17 = vpop.permute.xlu1 %1835 }
  0xef   : > { %6562 = vmatpush3.msra.mxu0 %v5808_v26  ;;  %6575 = vmatpush3.msra.mxu1 %v5817_v28  ;;  %v5881_v26 = vld [vmem:[%s8988_s1 + $0x340] sm:$0xff] }
  0xf0   : > { %6563 = vmatprep.subr.mxu0 %v5807_v32  ;;  %6576 = vmatprep.subr.mxu1 %v5816_v33  ;;  %v5871_v28 = vld [vmem:[%s8988_s1 + $0x300] sm:$0xff] }
  0xf1   : > { %6564 = vmatpush3.msra.mxu0 %v5807_v32  ;;  %6565 = vmatprep.mubr.msk.f32.mxu0 %vm558_vm1, %v1280_v27  ;;  %v5892_v32 = vld [vmem:[%s8988_s1 + $0x388] sm:$0xff] }
  0xf2   : > { %6577 = vmatpush3.msra.mxu1 %v5816_v33  ;;  %6566 = vmatmul.mubr.msk.f32.vlgmr.msra.gmra.mxu0 %vm558_vm1, %v1282_v29  ;;  %v2022_v27 = vpop.permute.xlu1 %2021  ;;  %v5880_v29 = vld [vmem:[%s8988_s1 + $0x338] sm:$0xff]  ;;  %v5879_v33 = vld [vmem:[%s8988_s1 + $0x330] sm:$0xff] }
  0xf3   : > { %6583 = vmatprep.subr.mxu0 %v5828_v34  ;;  %6578 = vmatprep.subr.mxu1 %v5815_v35 }
  0xf4   : > { %6579 = vmatpush3.msra.mxu1 %v5815_v35  ;;  %6580 = vmatprep.mubr.msk.f32.mxu1 %vm558_vm1, %v1372_v38  ;;  %v5891_v38 = vld [vmem:[%s8988_s1 + $0x380] sm:$0xff] }
  0xf5   : > { %6584 = vmatpush3.msra.mxu0 %v5828_v34  ;;  %6581 = vmatmul.mubr.msk.f32.vlgmr.msra.gmra.mxu1 %vm558_vm1, %v1374_v39  ;;  %v2112_v34 = vpop.permute.xlu0 %2111  ;;  %v5900_v39 = vld [vmem:[%s8988_s1 + $0x3b8] sm:$0xff] }
  0xf6   : > { %6585 = vmatprep.subr.mxu0 %v5827_v40  ;;  %6598 = vmatprep.subr.mxu1 %v5836_v43  ;;  %v2114_v35 = vpop.permute.xlu1 %2113 }
  0xf7   : > { %6586 = vmatpush3.msra.mxu0 %v5827_v40  ;;  %6599 = vmatpush3.msra.mxu1 %v5836_v43  ;;  %v5890_v40 = vld [vmem:[%s8988_s1 + $0x378] sm:$0xff]  ;;  %v5899_v43 = vld [vmem:[%s8988_s1 + $0x3b0] sm:$0xff] }
  0xf8   : > { %6587 = vmatprep.subr.mxu0 %v5826_v44  ;;  %6600 = vmatprep.subr.mxu1 %v5835_v45 }
  0xf9   : > { %6588 = vmatpush3.msra.mxu0 %v5826_v44  ;;  %6601 = vmatpush3.msra.mxu1 %v5835_v45  ;;  %v5889_v44 = vld [vmem:[%s8988_s1 + $0x370] sm:$0xff]  ;;  %v5898_v45 = vld [vmem:[%s8988_s1 + $0x3a8] sm:$0xff] }
  0xfa   : > { %6589 = vmatprep.subr.mxu0 %v5825_v46  ;;  %6602 = vmatprep.subr.mxu1 %v5834_v47 }
  0xfb   : > { %6590 = vmatpush3.msra.mxu0 %v5825_v46  ;;  %6603 = vmatpush3.msra.mxu1 %v5834_v47  ;;  %v5888_v46 = vld [vmem:[%s8988_s1 + $0x368] sm:$0xff]  ;;  %v2204_v47 = vpop.permute.xlu0 %2203 }
  0xfc   : > { %6591 = vmatprep.subr.mxu0 %v5824_v48  ;;  %6604 = vmatprep.subr.mxu1 %v5833_v49 }
  0xfd   : > { %6592 = vmatpush3.msra.mxu0 %v5824_v48  ;;  %6605 = vmatpush3.msra.mxu1 %v5833_v49  ;;  %v5897_v48 = vld [vmem:[%s8988_s1 + $0x3a0] sm:$0xff]  ;;  %v2206_v49 = vpop.permute.xlu1 %2205 }
  0xfe   : > { %6593 = vmatprep.subr.mxu0 %v5823_v50  ;;  %6606 = vmatprep.subr.mxu1 %v5832_v51 }
  0xff   : > { %6594 = vmatpush3.msra.mxu0 %v5823_v50  ;;  %6595 = vmatprep.mubr.msk.f32.mxu0 %vm558_vm1, %v7897_v30  ;;  %v5842_v30 = vld [vmem:[%s8988_s1 + $0x258] sm:$0xff]  ;;  %v5887_v50 = vld [vmem:[%s8988_s1 + $0x360] sm:$0xff] }
 0x100   : > { %6607 = vmatpush3.msra.mxu1 %v5832_v51  ;;  %6596 = vmatmul.mubr.msk.f32.vlgmr.msra.gmra.mxu0 %vm558_vm1, %v7900_v31  ;;  %v5851_v31 = vld [vmem:[%s8988_s1 + $0x290] sm:$0xff]  ;;  %v5896_v51 = vld [vmem:[%s8988_s1 + $0x398] sm:$0xff] }
 0x101   : > { %6613 = vmatprep.subr.mxu0 %v5844_v52  ;;  %6608 = vmatprep.subr.mxu1 %v5831_v53 }
 0x102   : > { %6609 = vmatpush3.msra.mxu1 %v5831_v53  ;;  %6610 = vmatprep.mubr.msk.f32.mxu1 %vm558_vm1, %v1558_v54  ;;  %v5895_v53 = vld [vmem:[%s8988_s1 + $0x390] sm:$0xff]  ;;  %v2296_v54 = vpop.permute.xlu0 %2295 }
 0x103   : > { %6614 = vmatpush3.msra.mxu0 %v5844_v52  ;;  %6611 = vmatmul.mubr.msk.f32.vlgmr.msra.gmra.mxu1 %vm558_vm1, %v1560_v55  ;;  %v5908_v52 = vld [vmem:[%s8988_s1 + $0x3e8] sm:$0xff]  ;;  %v2298_v55 = vpop.permute.xlu1 %2297 }
 0x104   : > { %6615 = vmatprep.subr.mxu0 %v5843_v56  ;;  %6628 = vmatprep.subr.mxu1 %v5852_v57 }
 0x105   : > { %6616 = vmatpush3.msra.mxu0 %v5843_v56  ;;  %6629 = vmatpush3.msra.mxu1 %v5852_v57  ;;  %v5907_v56 = vld [vmem:[%s8988_s1 + $0x3e0] sm:$0xff]  ;;  %v5916_v57 = vld [vmem:[%s8988_s1 + $0x418] sm:$0xff] }
 0x106   : > { %6617 = vmatprep.subr.mxu0 %v5842_v30  ;;  %6630 = vmatprep.subr.mxu1 %v5851_v31 }
 0x107   : > { %6618 = vmatpush3.msra.mxu0 %v5842_v30  ;;  %6631 = vmatpush3.msra.mxu1 %v5851_v31  ;;  %v5906_v30 = vld [vmem:[%s8988_s1 + $0x3d8] sm:$0xff]  ;;  %v5915_v31 = vld [vmem:[%s8988_s1 + $0x410] sm:$0xff] }
 0x108   : > { %6619 = vmatprep.subr.mxu0 %v5841_v58  ;;  %6632 = vmatprep.subr.mxu1 %v5850_v59 }
 0x109   : > { %6620 = vmatpush3.msra.mxu0 %v5841_v58  ;;  %6633 = vmatpush3.msra.mxu1 %v5850_v59  ;;  %v5905_v58 = vld [vmem:[%s8988_s1 + $0x3d0] sm:$0xff]  ;;  %v5914_v59 = vld [vmem:[%s8988_s1 + $0x408] sm:$0xff] }
 0x10a   : > { %6621 = vmatprep.subr.mxu0 %v5840_v60  ;;  %6634 = vmatprep.subr.mxu1 %v5849_v62 }
 0x10b   : > { %6622 = vmatpush3.msra.mxu0 %v5840_v60  ;;  %6635 = vmatpush3.msra.mxu1 %v5849_v62  ;;  %v5904_v60 = vld [vmem:[%s8988_s1 + $0x3c8] sm:$0xff]  ;;  %v5903_v62 = vld [vmem:[%s8988_s1 + $0x3c0] sm:$0xff] }
 0x10c   : > { %6623 = vmatprep.subr.mxu0 %v5839_v0  ;;  %6636 = vmatprep.subr.mxu1 %v5848_v1 }
 0x10d   : > { %6624 = vmatpush3.msra.mxu0 %v5839_v0  ;;  %6625 = vmatprep.mubr.msk.f32.mxu0 %vm558_vm1, %v1650_v61  ;;  %v5913_v61 = vld [vmem:[%s8988_s1 + $0x400] sm:$0xff]  ;;  %v5924_v0 = vld [vmem:[%s8988_s1 + $0x448] sm:$0xff] }
 0x10e   : > { %6637 = vmatpush3.msra.mxu1 %v5848_v1  ;;  %6626 = vmatmul.mubr.msk.f32.vlgmr.msra.gmra.mxu0 %vm558_vm1, %v1652_v63  ;;  %v5912_v63 = vld [vmem:[%s8988_s1 + $0x3f8] sm:$0xff]  ;;  %v5911_v1 = vld [vmem:[%s8988_s1 + $0x3f0] sm:$0xff] }
 0x10f   : > { %6643 = vmatprep.subr.mxu0 %v5860_v2  ;;  %6638 = vmatprep.subr.mxu1 %v5847_v3 }
 0x110   : > { %6639 = vmatpush3.msra.mxu1 %v5847_v3  ;;  %6640 = vmatprep.mubr.msk.f32.mxu1 %vm558_vm1, %v1742_v4  ;;  %v2484_v3 = vpop.permute.xlu1 %2483  ;;  %v5923_v4 = vld [vmem:[%s8988_s1 + $0x440] sm:$0xff] }
 0x111   : > { %6644 = vmatpush3.msra.mxu0 %v5860_v2  ;;  %6641 = vmatmul.mubr.msk.f32.vlgmr.msra.gmra.mxu1 %vm558_vm1, %v1744_v5  ;;  %v2482_v2 = vpop.permute.xlu0 %2481  ;;  %v5932_v5 = vld [vmem:[%s8988_s1 + $0x478] sm:$0xff] }
 0x112   : > { %6645 = vmatprep.subr.mxu0 %v5859_v6  ;;  %6658 = vmatprep.subr.mxu1 %v5868_v7 }
 0x113   : > { %6646 = vmatpush3.msra.mxu0 %v5859_v6  ;;  %6659 = vmatpush3.msra.mxu1 %v5868_v7  ;;  %v5921_v6 = vld [vmem:[%s8988_s1 + $0x430] sm:$0xff]  ;;  %v5930_v7 = vld [vmem:[%s8988_s1 + $0x468] sm:$0xff] }
 0x114   : > { %6647 = vmatprep.subr.mxu0 %v5858_v8  ;;  %6660 = vmatprep.subr.mxu1 %v5867_v9 }
 0x115   : > { %6648 = vmatpush3.msra.mxu0 %v5858_v8  ;;  %6661 = vmatpush3.msra.mxu1 %v5867_v9  ;;  %v2574_v8 = vpop.permute.xlu0 %2573  ;;  %v5920_v9 = vld [vmem:[%s8988_s1 + $0x428] sm:$0xff] }
 0x116   : > { %6649 = vmatprep.subr.mxu0 %v5857_v10  ;;  %6662 = vmatprep.subr.mxu1 %v5866_v11 }
 0x117   : > { %6650 = vmatpush3.msra.mxu0 %v5857_v10  ;;  %6663 = vmatpush3.msra.mxu1 %v5866_v11  ;;  %v5929_v10 = vld [vmem:[%s8988_s1 + $0x460] sm:$0xff]  ;;  %v2576_v11 = vpop.permute.xlu1 %2575 }
 0x118   : > { %6651 = vmatprep.subr.mxu0 %v5856_v12  ;;  %6664 = vmatprep.subr.mxu1 %v5865_v13 }
 0x119   : > { %6652 = vmatpush3.msra.mxu0 %v5856_v12  ;;  %6665 = vmatpush3.msra.mxu1 %v5865_v13  ;;  %v5919_v12 = vld [vmem:[%s8988_s1 + $0x420] sm:$0xff]  ;;  %v5928_v13 = vld [vmem:[%s8988_s1 + $0x458] sm:$0xff] }
 0x11a   : > { %6653 = vmatprep.subr.mxu0 %v5855_v14  ;;  %6666 = vmatprep.subr.mxu1 %v5864_v15 }
 0x11b   : > { %6654 = vmatpush3.msra.mxu0 %v5855_v14  ;;  %6655 = vmatprep.mubr.msk.f32.mxu0 %vm558_vm1, %v1834_v16  ;;  %v2666_v14 = vpop.permute.xlu0 %2665  ;;  %v5927_v16 = vld [vmem:[%s8988_s1 + $0x450] sm:$0xff] }
 0x11c   : > { %6667 = vmatpush3.msra.mxu1 %v5864_v15  ;;  %6656 = vmatmul.mubr.msk.f32.vlgmr.msra.gmra.mxu0 %vm558_vm1, %v1836_v17  ;;  %v5940_v15 = vld [vmem:[%s8988_s1 + $0x4a8] sm:$0xff]  ;;  %v2668_v17 = vpop.permute.xlu1 %2667 }
 0x11d   : > { %6668 = vmatprep.subr.mxu1 %v5863_v18  ;;  %6673 = vmatprep.subr.mxu0 %v5876_v19 }
 0x11e   : > { %6669 = vmatpush3.msra.mxu1 %v5863_v18  ;;  %6670 = vmatprep.mubr.msk.f32.mxu1 %vm558_vm1, %v7925_v36  ;;  %v5873_v36 = vld [vmem:[%s8988_s1 + $0x310] sm:$0xff]  ;;  %v5939_v18 = vld [vmem:[%s8988_s1 + $0x4a0] sm:$0xff] }
 0x11f   : > { %6674 = vmatpush3.msra.mxu0 %v5876_v19  ;;  %6671 = vmatmul.mubr.msk.f32.vlgmr.msra.gmra.mxu1 %vm558_vm1, %v7928_v37  ;;  %v5882_v37 = vld [vmem:[%s8988_s1 + $0x348] sm:$0xff]  ;;  %v2758_v19 = vpop.permute.xlu0 %2757 }
 0x120   : > { %6675 = vmatprep.subr.mxu0 %v5875_v20  ;;  %6688 = vmatprep.subr.mxu1 %v5884_v21 }
 0x121   : > { %6676 = vmatpush3.msra.mxu0 %v5875_v20  ;;  %6689 = vmatpush3.msra.mxu1 %v5884_v21  ;;  %v5938_v20 = vld [vmem:[%s8988_s1 + $0x498] sm:$0xff]  ;;  %v5937_v21 = vld [vmem:[%s8988_s1 + $0x490] sm:$0xff] }
 0x122   : > { %6677 = vmatprep.subr.mxu0 %v5874_v22  ;;  %6690 = vmatprep.subr.mxu1 %v5883_v23 }
 0x123   : > { %6678 = vmatpush3.msra.mxu0 %v5874_v22  ;;  %6691 = vmatpush3.msra.mxu1 %v5883_v23  ;;  %v5936_v22 = vld [vmem:[%s8988_s1 + $0x488] sm:$0xff]  ;;  %v5935_v23 = vld [vmem:[%s8988_s1 + $0x480] sm:$0xff] }
 0x124   : > { %6679 = vmatprep.subr.mxu0 %v5873_v36  ;;  %6692 = vmatprep.subr.mxu1 %v5882_v37 }
 0x125   : > { %6680 = vmatpush3.msra.mxu0 %v5873_v36  ;;  %6693 = vmatpush3.msra.mxu1 %v5882_v37  ;;  %v2760_v36 = vpop.permute.xlu1 %2759  ;;  %v2871_v37 = vld [vmem:[#allocation2] sm:$0xff] }
 0x126   : > { %6681 = vmatprep.subr.mxu0 %v5872_v24  ;;  %6694 = vmatprep.subr.mxu1 %v5881_v26 }
 0x127   : > { %6682 = vmatpush3.msra.mxu0 %v5872_v24  ;;  %6695 = vmatpush3.msra.mxu1 %v5881_v26 }
 0x128   : > { %6683 = vmatprep.subr.mxu0 %v5871_v28  ;;  %6696 = vmatprep.subr.mxu1 %v5880_v29 }
 0x129   : > { %6684 = vmatpush3.msra.mxu0 %v5871_v28  ;;  %6685 = vmatprep.mubr.msk.f32.mxu0 %vm558_vm1, %v2020_v25  ;;  %v6462_v25 = vpop.f32.mrf.mxu1 }
 0x12a   : > { %6697 = vmatpush3.msra.mxu1 %v5880_v29  ;;  %6686 = vmatmul.mubr.msk.f32.vlgmr.msra.gmra.mxu0 %vm558_vm1, %v2022_v27 }
 0x12b   : > { %6703 = vmatprep.subr.mxu0 %v5892_v32  ;;  %6698 = vmatprep.subr.mxu1 %v5879_v33  ;;  %v708_v28 = vpop.f32.mrf.mxu1 }
 0x12c   : > { %6699 = vmatpush3.msra.mxu1 %v5879_v33  ;;  %6700 = vmatprep.mubr.msk.f32.mxu1 %vm558_vm1, %v2112_v34 }
 0x12d   : > { %6704 = vmatpush3.msra.mxu0 %v5892_v32  ;;  %6701 = vmatmul.mubr.msk.f32.vlgmr.msra.gmra.mxu1 %vm558_vm1, %v2114_v35 }
 0x12e   : > { %6705 = vmatprep.subr.mxu0 %v5891_v38  ;;  %6718 = vmatprep.subr.mxu1 %v5900_v39 }
 0x12f   : > { %6706 = vmatpush3.msra.mxu0 %v5891_v38  ;;  %6719 = vmatpush3.msra.mxu1 %v5900_v39 }
 0x130   : > { %6707 = vmatprep.subr.mxu0 %v5890_v40  ;;  %6720 = vmatprep.subr.mxu1 %v5899_v43 }
 0x131   : > { %6708 = vmatpush3.msra.mxu0 %v5890_v40  ;;  %6721 = vmatpush3.msra.mxu1 %v5899_v43 }
 0x132   : > { %6709 = vmatprep.subr.mxu0 %v5889_v44  ;;  %6722 = vmatprep.subr.mxu1 %v5898_v45 }
 0x133   : > { %6710 = vmatpush3.msra.mxu0 %v5889_v44  ;;  %6723 = vmatpush3.msra.mxu1 %v5898_v45 }
 0x134   : > { %6711 = vmatprep.subr.mxu0 %v5888_v46  ;;  %6724 = vmatprep.subr.mxu1 %v5897_v48 }
 0x135   : > { %6712 = vmatpush3.msra.mxu0 %v5888_v46  ;;  %6725 = vmatpush3.msra.mxu1 %v5897_v48 }
 0x136   : > { %6713 = vmatprep.subr.mxu0 %v5887_v50  ;;  %6726 = vmatprep.subr.mxu1 %v5896_v51 }
 0x137   : > { %6714 = vmatpush3.msra.mxu0 %v5887_v50  ;;  %6715 = vmatprep.mubr.msk.f32.mxu0 %vm558_vm1, %v2204_v47 }
 0x138   : > { %6727 = vmatpush3.msra.mxu1 %v5896_v51  ;;  %6716 = vmatmul.mubr.msk.f32.vlgmr.msra.gmra.mxu0 %vm558_vm1, %v2206_v49 }
 0x139   : > { %6733 = vmatprep.subr.mxu0 %v5908_v52  ;;  %6728 = vmatprep.subr.mxu1 %v5895_v53 }
 0x13a   : > { %6729 = vmatpush3.msra.mxu1 %v5895_v53  ;;  %6730 = vmatprep.mubr.msk.f32.mxu1 %vm558_vm1, %v2296_v54 }
 0x13b   : > { %6734 = vmatpush3.msra.mxu0 %v5908_v52  ;;  %6731 = vmatmul.mubr.msk.f32.vlgmr.msra.gmra.mxu1 %vm558_vm1, %v2298_v55 }
 0x13c   : > { %6735 = vmatprep.subr.mxu0 %v5907_v56  ;;  %6748 = vmatprep.subr.mxu1 %v5916_v57 }
 0x13d   : > { %6736 = vmatpush3.msra.mxu0 %v5907_v56  ;;  %6749 = vmatpush3.msra.mxu1 %v5916_v57 }
 0x13e   : > { %6737 = vmatprep.subr.mxu0 %v5906_v30  ;;  %6750 = vmatprep.subr.mxu1 %v5915_v31 }
 0x13f   : > { %6738 = vmatpush3.msra.mxu0 %v5906_v30  ;;  %6751 = vmatpush3.msra.mxu1 %v5915_v31 }
 0x140   : > { %6739 = vmatprep.subr.mxu0 %v5905_v58  ;;  %6752 = vmatprep.subr.mxu1 %v5914_v59 }
 0x141   : > { %6740 = vmatpush3.msra.mxu0 %v5905_v58  ;;  %6753 = vmatpush3.msra.mxu1 %v5914_v59 }
 0x142   : > { %6741 = vmatprep.subr.mxu0 %v5904_v60  ;;  %6754 = vmatprep.subr.mxu1 %v5913_v61 }
 0x143   : > { %6742 = vmatpush3.msra.mxu0 %v5904_v60  ;;  %6755 = vmatpush3.msra.mxu1 %v5913_v61 }
 0x144   : > { %6743 = vmatprep.subr.mxu0 %v5903_v62  ;;  %6756 = vmatprep.subr.mxu1 %v5912_v63 }
 0x145   : > { %6744 = vmatpush3.msra.mxu0 %v5903_v62  ;;  %6745 = vmatprep.mubr.msk.f32.mxu0 %vm558_vm1, %v7950_v41  ;;  %v5922_v41 = vld [vmem:[%s8988_s1 + $0x438] sm:$0xff] }
 0x146   : > { %6757 = vmatpush3.msra.mxu1 %v5912_v63  ;;  %6746 = vmatmul.mubr.msk.f32.vlgmr.msra.gmra.mxu0 %vm558_vm1, %v7953_v42  ;;  %v5931_v42 = vld [vmem:[%s8988_s1 + $0x470] sm:$0xff] }
 0x147   : > { %6763 = vmatprep.subr.mxu0 %v5924_v0  ;;  %6758 = vmatprep.subr.mxu1 %v5911_v1 }
 0x148   : > { %6759 = vmatpush3.msra.mxu1 %v5911_v1  ;;  %6760 = vmatprep.mubr.msk.f32.mxu1 %vm558_vm1, %v2482_v2 }
 0x149   : > { %6764 = vmatpush3.msra.mxu0 %v5924_v0  ;;  %6761 = vmatmul.mubr.msk.f32.vlgmr.msra.gmra.mxu1 %vm558_vm1, %v2484_v3 }
 0x14a   : > { %6765 = vmatprep.subr.mxu0 %v5923_v4  ;;  %6778 = vmatprep.subr.mxu1 %v5932_v5 }
 0x14b   : > { %6766 = vmatpush3.msra.mxu0 %v5923_v4  ;;  %6779 = vmatpush3.msra.mxu1 %v5932_v5 }
 0x14c   : > { %6767 = vmatprep.subr.mxu0 %v5922_v41  ;;  %6780 = vmatprep.subr.mxu1 %v5931_v42 }
 0x14d   : > { %6768 = vmatpush3.msra.mxu0 %v5922_v41  ;;  %6781 = vmatpush3.msra.mxu1 %v5931_v42 }
 0x14e   : > { %6769 = vmatprep.subr.mxu0 %v5921_v6  ;;  %6782 = vmatprep.subr.mxu1 %v5930_v7 }
 0x14f   : > { %6770 = vmatpush3.msra.mxu0 %v5921_v6  ;;  %6783 = vmatpush3.msra.mxu1 %v5930_v7 }
 0x150   : > { %6771 = vmatprep.subr.mxu0 %v5920_v9  ;;  %6784 = vmatprep.subr.mxu1 %v5929_v10 }
 0x151   : > { %6772 = vmatpush3.msra.mxu0 %v5920_v9  ;;  %6785 = vmatpush3.msra.mxu1 %v5929_v10 }
 0x152   : > { %6773 = vmatprep.subr.mxu0 %v5919_v12  ;;  %6786 = vmatprep.subr.mxu1 %v5928_v13 }
 0x153   : > { %6774 = vmatpush3.msra.mxu0 %v5919_v12  ;;  %6775 = vmatprep.mubr.msk.f32.mxu0 %vm558_vm1, %v2574_v8 }
 0x154   : > { %6787 = vmatpush3.msra.mxu1 %v5928_v13  ;;  %6776 = vmatmul.mubr.msk.f32.vlgmr.msra.gmra.mxu0 %vm558_vm1, %v2576_v11 }
 0x155   : > { %6793 = vmatprep.subr.mxu0 %v5940_v15  ;;  %6788 = vmatprep.subr.mxu1 %v5927_v16 }
 0x156   : > { %6789 = vmatpush3.msra.mxu1 %v5927_v16  ;;  %6790 = vmatprep.mubr.msk.f32.mxu1 %vm558_vm1, %v2666_v14 }
 0x157   : > { %6794 = vmatpush3.msra.mxu0 %v5940_v15  ;;  %6791 = vmatmul.mubr.msk.f32.vlgmr.msra.gmra.mxu1 %vm558_vm1, %v2668_v17 }
 0x158   : > { %6795 = vmatprep.subr.mxu0 %v5939_v18  ;;  %6805 = vmatprep.mubr.msk.f32.mxu0 %vm558_vm1, %v2758_v19 }
 0x159   : > { %6796 = vmatpush3.msra.mxu0 %v5939_v18  ;;  %6812 = vmatprep.mubr.msk.f32.mxu1 %vm2873_vm5, %v2871_v37 }
 0x15a   : > { %6797 = vmatprep.subr.mxu0 %v5938_v20 }
 0x15b   : > { %6798 = vmatpush3.msra.mxu0 %v5938_v20 }
 0x15c   : > { %6799 = vmatprep.subr.mxu0 %v5937_v21 }
 0x15d   : > { %6800 = vmatpush3.msra.mxu0 %v5937_v21 }
 0x15e   : > { %6801 = vmatprep.subr.mxu0 %v5936_v22 }
 0x15f   : > { %6802 = vmatpush3.msra.mxu0 %v5936_v22 }
 0x160   : > { %6803 = vmatprep.subr.mxu0 %v5935_v23 }
 0x161   : > { %6804 = vmatpush3.msra.mxu0 %v5935_v23 }
 0x162   : > { %6806 = vmatmul.mubr.msk.f32.vlgmr.msra.gmra.mxu0 %vm558_vm1, %v2760_v36 }
 0x182   : > { %v6447_v24 = vpop.f32.mrf.mxu0 }
 0x183   : > { %v714_v29 = vadd.f32 %v6462_v25, %v6447_v24 }
 0x184   : > { %v629_v26 = vpop.f32.mrf.mxu0 }
 0x185   : > { %v709_v34 = vadd.f32 %v708_v28, %v629_v26 }
 0x187   : > { %v6492_v33 = vpop.f32.mrf.mxu1 }
 0x189   : > { %v890_v40 = vpop.f32.mrf.mxu1 }
 0x18e   : > { %v6477_v27 = vpop.f32.mrf.mxu0 }
 0x18f   : > { %v808_v35 = vadd.f32 %v6477_v27, %v714_v29 }
 0x190   : > { %v798_v32 = vpop.f32.mrf.mxu0 }
 0x191   : > { %v807_v39 = vadd.f32 %v798_v32, %v709_v34  ;;  %v900_v43 = vadd.f32 %v6492_v33, %v808_v35 }
 0x193   : > { %v899_v46 = vadd.f32 %v890_v40, %v807_v39 }
 0x196   : > { %v6522_v45 = vpop.f32.mrf.mxu1 }
 0x198   : > { %v1077_v50 = vpop.f32.mrf.mxu1 }
 0x19a   : > { %v6507_v38 = vpop.f32.mrf.mxu0 }
 0x19b   : > { %v992_v47 = vadd.f32 %v6507_v38, %v900_v43 }
 0x19c   : > { %v982_v44 = vpop.f32.mrf.mxu0 }
 0x19d   : > { %v991_v49 = vadd.f32 %v982_v44, %v899_v46  ;;  %v1087_v51 = vadd.f32 %v6522_v45, %v992_v47 }
 0x19f   : > { %v1086_v54 = vadd.f32 %v1077_v50, %v991_v49 }
 0x1a6   : > { %v6537_v48 = vpop.f32.mrf.mxu0 }
 0x1a7   : > { %v6552_v53 = vpop.f32.mrf.mxu1  ;;  %v1179_v55 = vadd.f32 %v6537_v48, %v1087_v51 }
 0x1a8   : > { %v1169_v52 = vpop.f32.mrf.mxu0 }
 0x1a9   : > { %v1178_v57 = vadd.f32 %v1169_v52, %v1086_v54  ;;  %v1261_v30 = vpop.f32.mrf.mxu1  ;;  %v1271_v31 = vadd.f32 %v6552_v53, %v1179_v55 }
 0x1ab   : > { %v1270_v60 = vadd.f32 %v1261_v30, %v1178_v57 }
 0x1b2   : > { %v6567_v56 = vpop.f32.mrf.mxu0 }
 0x1b3   : > { %v1363_v61 = vadd.f32 %v6567_v56, %v1271_v31 }
 0x1b4   : > { %v1353_v58 = vpop.f32.mrf.mxu0 }
 0x1b5   : > { %v6582_v59 = vpop.f32.mrf.mxu1  ;;  %v1362_v63 = vadd.f32 %v1353_v58, %v1270_v60  ;;  %v5943_v58 = vld [vmem:[%s8989_s2] ss:$0 sm:$0xff] }
 0x1b6   : > { %v1455_v1 = vadd.f32 %v6582_v59, %v1363_v61 }
 0x1b7   : > { %v1445_v0 = vpop.f32.mrf.mxu1 }
 0x1b8   : > { %v1454_v4 = vadd.f32 %v1445_v0, %v1362_v63 }
 0x1c0   : > { %v6597_v62 = vpop.f32.mrf.mxu0 }
 0x1c1   : > { %v1549_v5 = vadd.f32 %v6597_v62, %v1455_v1 }
 0x1c2   : > { %v1539_v2 = vpop.f32.mrf.mxu0 }
 0x1c3   : > { %v6612_v3 = vpop.f32.mrf.mxu1  ;;  %v1548_v42 = vadd.f32 %v1539_v2, %v1454_v4 }
 0x1c4   : > { %v1641_v7 = vadd.f32 %v6612_v3, %v1549_v5 }
 0x1c5   : > { %v1631_v6 = vpop.f32.mrf.mxu1 }
 0x1c6   : > { %v1640_v10 = vadd.f32 %v1631_v6, %v1548_v42 }
 0x1ce   : > { %v6627_v41 = vpop.f32.mrf.mxu0 }
 0x1cf   : > { %v1733_v11 = vadd.f32 %v6627_v41, %v1641_v7 }
 0x1d0   : > { %v1723_v8 = vpop.f32.mrf.mxu0 }
 0x1d1   : > { %v6642_v9 = vpop.f32.mrf.mxu1  ;;  %v1732_v13 = vadd.f32 %v1723_v8, %v1640_v10 }
 0x1d2   : > { %v1825_v15 = vadd.f32 %v6642_v9, %v1733_v11 }
 0x1d3   : > { %v1815_v14 = vpop.f32.mrf.mxu1 }
 0x1d4   : > { %v1824_v18 = vadd.f32 %v1815_v14, %v1732_v13 }
 0x1dc   : > { %v6657_v12 = vpop.f32.mrf.mxu0 }
 0x1dd   : > { %v1917_v19 = vadd.f32 %v6657_v12, %v1825_v15 }
 0x1de   : > { %v1907_v16 = vpop.f32.mrf.mxu0 }
 0x1df   : > { %v6672_v17 = vpop.f32.mrf.mxu1  ;;  %v1916_v21 = vadd.f32 %v1907_v16, %v1824_v18  ;;  %v2966_v18 = vld [vmem:[%s8991_s4 + $0x58] sm:$0xff] }
 0x1e0   : > { %v2011_v23 = vadd.f32 %v6672_v17, %v1917_v19  ;;  %v2872_v17 = vld [vmem:[#allocation2 + $0x8] sm:$0xf]  ;;  %v2965_v19 = vld [vmem:[%s8991_s4 + $0x50] sm:$0xff] }
 0x1e1   : > { %v2001_v22 = vpop.f32.mrf.mxu1 }
 0x1e2   : > { %v2010_v24 = vadd.f32 %v2001_v22, %v1916_v21  ;;  %v2963_v21 = vld [vmem:[%s8991_s4 + $0x40] sm:$0xff]  ;;  %v2962_v22 = vld [vmem:[%s8991_s4 + $0x38] sm:$0xff] }
 0x1ea   : > { %v6687_v20 = vpop.f32.mrf.mxu0 }
 0x1eb   : > { %v2103_v25 = vadd.f32 %v6687_v20, %v2011_v23  ;;  %v2964_v20 = vld [vmem:[%s8991_s4 + $0x48] sm:$0xff]  ;;  %v2961_v23 = vld [vmem:[%s8991_s4 + $0x30] sm:$0xff] }
 0x1ec   : > { %v2093_v36 = vpop.f32.mrf.mxu0 }
 0x1ed   : > { %v6702_v37 = vpop.f32.mrf.mxu1  ;;  %v2102_v27 = vadd.f32 %v2093_v36, %v2010_v24  ;;  %v2960_v36 = vld [vmem:[%s8991_s4 + $0x28] sm:$0xff]  ;;  %v2958_v24 = vld [vmem:[%s8991_s4 + $0x18] sm:$0xff] }
 0x1ee   : > { %v2195_v29 = vadd.f32 %v6702_v37, %v2103_v25  ;;  %v2959_v37 = vld [vmem:[%s8991_s4 + $0x20] sm:$0xff]  ;;  %v2957_v25 = vld [vmem:[%s8991_s4 + $0x10] sm:$0xff] }
 0x1ef   : > { %v2185_v28 = vpop.f32.mrf.mxu1 }
 0x1f0   : > { %v2194_v34 = vadd.f32 %v2185_v28, %v2102_v27  ;;  %v2955_v27 = vld [vmem:[%s8991_s4] sm:$0xff] }
 0x1f8   : > { %v6717_v26 = vpop.f32.mrf.mxu0 }
 0x1f9   : > { %v2287_v35 = vadd.f32 %v6717_v26, %v2195_v29  ;;  %v2956_v26 = vld [vmem:[%s8991_s4 + $0x8] sm:$0xff] }
 0x1fa   : > { %v2277_v32 = vpop.f32.mrf.mxu0 }
 0x1fb   : > { %v6732_v33 = vpop.f32.mrf.mxu1  ;;  %v2286_v39 = vadd.f32 %v2277_v32, %v2194_v34  ;;  %v3061_v32 = vld [vmem:[#allocation5 + $0x58] sm:$0xff]  ;;  %v7595_v34 = vmov 0.0  }
 0x1fc   : > { %v2379_v43 = vadd.f32 %v6732_v33, %v2287_v35  ;;  %v3215_v33 = vld [vmem:[#allocation5 + $0x88] sm:$0xff]  ;;  %6842 = vmatprep.subr.mxu0 %v7595_v34  ;;  %v3060_v35 = vld [vmem:[#allocation5 + $0x50] sm:$0xff]  ;;  %6854 = vmatprep.mubr.msk.f32.mxu0 %vm7596_vm9, %v7595_v34 }
 0x1fd   : > { %v2369_v40 = vpop.f32.mrf.mxu1  ;;  %6843 = vmatpush3.msra.mxu0 %v3061_v32  ;;  %v3457_v32 = vld [vmem:[#allocation5 + $0xf8] sm:$0xff] }
 0x1fe   : > { %v2378_v46 = vadd.f32 %v2369_v40, %v2286_v39  ;;  %6844 = vmatprep.subr.mxu0 %v7595_v34  ;;  %v3059_v39 = vld [vmem:[#allocation5 + $0x48] sm:$0xff]  ;;  %v3213_v40 = vld [vmem:[#allocation5 + $0x78] sm:$0xff] }
 0x1ff   : > { %6845 = vmatpush3.msra.mxu0 %v3060_v35  ;;  %v3456_v35 = vld [vmem:[#allocation5 + $0xf0] sm:$0xff] }
 0x200   : > { %6846 = vmatprep.subr.mxu0 %v7595_v34 }
 0x201   : > { %6847 = vmatpush3.msra.mxu0 %v3059_v39 }
 0x202   : > { %6848 = vmatprep.subr.mxu0 %v7595_v34 }
 0x206   : > { %v6747_v38 = vpop.f32.mrf.mxu0 }
 0x207   : > { %v2473_v47 = vadd.f32 %v6747_v38, %v2379_v43  ;;  %v3214_v38 = vld [vmem:[#allocation5 + $0x80] sm:$0xff] }
 0x208   : > { %v2463_v44 = vpop.f32.mrf.mxu0  ;;  %v3058_v43 = vld [vmem:[#allocation5 + $0x40] sm:$0xff] }
 0x209   : > { %v6762_v45 = vpop.f32.mrf.mxu1  ;;  %v2472_v49 = vadd.f32 %v2463_v44, %v2378_v46  ;;  %v3212_v44 = vld [vmem:[#allocation5 + $0x70] sm:$0xff]  ;;  %v3211_v46 = vld [vmem:[#allocation5 + $0x68] sm:$0xff]  ;;  %6849 = vmatpush3.msra.mxu0 %v3058_v43 }
 0x20a   : > { %v2565_v51 = vadd.f32 %v6762_v45, %v2473_v47  ;;  %v3057_v45 = vld [vmem:[#allocation5 + $0x38] sm:$0xff]  ;;  %6850 = vmatprep.subr.mxu0 %v7595_v34  ;;  %v3056_v47 = vld [vmem:[#allocation5 + $0x30] sm:$0xff]  ;;  %v3873_v43 = vld [vmem:[#allocation5 + $0x208] sm:$0xff] }
 0x20b   : > { %v2555_v50 = vpop.f32.mrf.mxu1  ;;  %6851 = vmatpush3.msra.mxu0 %v3057_v45  ;;  %v3872_v45 = vld [vmem:[#allocation5 + $0x200] sm:$0xff] }
 0x20c   : > { %v2564_v54 = vadd.f32 %v2555_v50, %v2472_v49  ;;  %6852 = vmatprep.subr.mxu0 %v7595_v34 }
 0x20d   : > { %6853 = vmatpush3.msra.mxu0 %v3056_v47  ;;  %v3871_v47 = vld [vmem:[#allocation5 + $0x1f8] sm:$0xff] }
 0x20e   : > { %6857 = vmatprep.subr.mxu0 %v7595_v34 }
 0x214   : > { %v6777_v48 = vpop.f32.mrf.mxu0 }
 0x215   : > { %v2657_v55 = vadd.f32 %v6777_v48, %v2565_v51  ;;  %v3210_v48 = vld [vmem:[#allocation5 + $0x60] sm:$0xff] }
 0x216   : > { %v2647_v52 = vpop.f32.mrf.mxu0 }
 0x217   : > { %v6792_v53 = vpop.f32.mrf.mxu1  ;;  %v2656_v56 = vadd.f32 %v2647_v52, %v2564_v54 }
 0x218   : > { %v2749_v30 = vadd.f32 %v6792_v53, %v2657_v55 }
 0x219   : > { %v2739_v57 = vpop.f32.mrf.mxu1 }
 0x21a   : > { %v2748_v59 = vadd.f32 %v2739_v57, %v2656_v56 }
 0x222   : > { %v6807_v31 = vpop.f32.mrf.mxu0 }
 0x223   : > { %v2841_v60 = vadd.f32 %v6807_v31, %v2749_v30 }
 0x224   : > { %v2831_v61 = vpop.f32.mrf.mxu0 }
 0x225   : > { %v2850_v62 = vadd.f32 %v5943_v58, %v2841_v60  ;;  %v2840_v63 = vadd.f32 %v2831_v61, %v2748_v59  ;;  %v3054_v61 = vld [vmem:[#allocation5 + $0x28] sm:$0xff] }
 0x227   : > { %v2852_v0 = vand.u32 2147483647, %v2850_v62  ;;  %v2849_v1 = vadd.f32 %v5943_v58, %v2840_v63  ;;  %vm2866_vm6 = vcmp.ge.f32.partialorder %v2850_v62, 0.0  ;;  %v3379_v62 = vld [vmem:[#allocation5 + $0xe8] sm:$0xff] }
 0x229   : > { %v2854_v2 = vsub.f32 0.0, %v2852_v0  ;;  %v2851_v3 = vand.u32 2147483647, %v2849_v1  ;;  %vm2865_vm7 = vcmp.ge.f32.partialorder %v2849_v1, 0.0  ;;  %v3053_v1 = vld [vmem:[#allocation5 + $0x20] sm:$0xff] }
 0x22b   : > { %v2857_v4 = vmul.f32 1.442695, %v2854_v2  ;;  %v2853_v5 = vsub.f32 0.0, %v2851_v3  ;;  %v3378_v2 = vld [vmem:[#allocation5 + $0xe0] sm:$0xff]  ;;  %v3052_v3 = vld [vmem:[#allocation5 + $0x18] sm:$0xff] }
 0x22d   : > { %7418 = vpow2.f32 %v2857_v4  ;;  %v2855_v41 = vmul.f32 1.442695, %v2853_v5  ;;  %v3377_v4 = vld [vmem:[#allocation5 + $0xd8] sm:$0xff]  ;;  %v3051_v5 = vld [vmem:[#allocation5 + $0x10] sm:$0xff] }
 0x22f   : > { %7420 = vpow2.f32 %v2855_v41  ;;  %v3376_v41 = vld [vmem:[#allocation5 + $0xd0] sm:$0xff] }
 0x23a   : > { %v7419_v42 = vpop.eup %7418 }
 0x23b   : > { %v2860_v6 = vadd.f32 1.0, %v7419_v42 }
 0x23c   : > { %v7421_v7 = vpop.eup %7420 }
 0x23d   : > { %v2859_v8 = vadd.f32 1.0, %v7421_v7  ;;  %7422 = vrcp.f32 %v2860_v6  ;;  %v3375_v6 = vld [vmem:[#allocation5 + $0xc8] sm:$0xff] }
 0x23f   : > { %7424 = vrcp.f32 %v2859_v8  ;;  %v3374_v8 = vld [vmem:[#allocation5 + $0xc0] sm:$0xff] }
 0x24a   : > { %v7423_v9 = vpop.eup %7422 }
 0x24b   : > { %v2864_v10 = vmul.f32 %v7423_v9, %v7419_v42  ;;  %v3050_v42 = vld [vmem:[#allocation5 + $0x8] sm:$0xff]  ;;  %v3297_v9 = vld [vmem:[#allocation5 + $0xb8] sm:$0xff] }
 0x24c   : > { %v7425_v11 = vpop.eup %7424 }
 0x24d   : > { %v2868_v12 = vsub.f32 1.0, %v2864_v10  ;;  %v2863_v13 = vmul.f32 %v7425_v11, %v7421_v7  ;;  %v3049_v7 = vld [vmem:[#allocation5] sm:$0xff] }
 0x24f   : > { %v2870_v14 = vsel %vm2866_vm6, %v2868_v12, %v2864_v10  ;;  %v2867_v15 = vsub.f32 1.0, %v2863_v13  ;;  %v3545_v10 = vld [vmem:[#allocation5 + $0x148] sm:$0xff]  ;;  %v3296_v12 = vld [vmem:[#allocation5 + $0xb0] sm:$0xff] }
 0x250   : > { %6808 = vmatprep.subr.mxu1 %v2870_v14 }
 0x251   : > { %6809 = vmatpush3.msra.mxu1 %v2870_v14  ;;  %v2869_v16 = vsel %vm2865_vm7, %v2867_v15, %v2863_v13  ;;  %v3544_v13 = vld [vmem:[#allocation5 + $0x140] sm:$0xff]  ;;  %v3295_v14 = vld [vmem:[#allocation5 + $0xa8] sm:$0xff]  ;;  %v3543_v15 = vld [vmem:[#allocation5 + $0x138] sm:$0xff] }
 0x252   : > { %6810 = vmatprep.subr.mxu1 %v2869_v16 }
 0x253   : > { %6811 = vmatpush3.msra.mxu1 %v2869_v16  ;;  %v3294_v16 = vld [vmem:[#allocation5 + $0xa0] sm:$0xff] }
 0x254   : > { %6813 = vmatmul.mubr.msk.f32.vlgmr.msra.gmra.mxu1 %vm2873_vm5, %v2872_v17  ;;  %6815 = vmatprep.subr.mxu1 %v2966_v18  ;;  %v3542_v17 = vld [vmem:[#allocation5 + $0x130] sm:$0xff] }
 0x255   : > { %6816 = vmatpush3.msra.mxu1 %v2966_v18  ;;  %v3293_v18 = vld [vmem:[#allocation5 + $0x98] sm:$0xff] }
 0x256   : > { %6817 = vmatprep.subr.mxu1 %v2965_v19 }
 0x257   : > { %6818 = vmatpush3.msra.mxu1 %v2965_v19  ;;  %v3541_v19 = vld [vmem:[#allocation5 + $0x128] sm:$0xff] }
 0x258   : > { %6819 = vmatprep.subr.mxu1 %v2964_v20 }
 0x259   : > { %6820 = vmatpush3.msra.mxu1 %v2964_v20 }
 0x25a   : > { %6821 = vmatprep.subr.mxu1 %v2963_v21 }
 0x25b   : > { %6822 = vmatpush3.msra.mxu1 %v2963_v21  ;;  %v3292_v21 = vld [vmem:[#allocation5 + $0x90] sm:$0xff] }
 0x25c   : > { %6823 = vmatprep.subr.mxu1 %v2962_v22 }
 0x25d   : > { %6824 = vmatpush3.msra.mxu1 %v2962_v22  ;;  %v3540_v22 = vld [vmem:[#allocation5 + $0x120] sm:$0xff] }
 0x25e   : > { %6825 = vmatprep.subr.mxu1 %v2961_v23 }
 0x25f   : > { %6826 = vmatpush3.msra.mxu1 %v2961_v23  ;;  %v3461_v23 = vld [vmem:[#allocation5 + $0x118] sm:$0xff] }
 0x260   : > { %6827 = vmatprep.subr.mxu1 %v2960_v36 }
 0x261   : > { %6828 = vmatpush3.msra.mxu1 %v2960_v36  ;;  %v3709_v36 = vld [vmem:[#allocation5 + $0x1a8] sm:$0xff] }
 0x262   : > { %6829 = vmatprep.subr.mxu1 %v2959_v37 }
 0x263   : > { %6830 = vmatpush3.msra.mxu1 %v2959_v37 }
 0x264   : > { %6831 = vmatprep.subr.mxu1 %v2958_v24 }
 0x265   : > { %6832 = vmatpush3.msra.mxu1 %v2958_v24  ;;  %v3460_v24 = vld [vmem:[#allocation5 + $0x110] sm:$0xff] }
 0x266   : > { %6833 = vmatprep.subr.mxu1 %v2957_v25 }
 0x267   : > { %6834 = vmatpush3.msra.mxu1 %v2957_v25  ;;  %v3708_v25 = vld [vmem:[#allocation5 + $0x1a0] sm:$0xff] }
 0x268   : > { %6835 = vmatprep.subr.mxu1 %v2956_v26 }
 0x269   : > { %6836 = vmatpush3.msra.mxu1 %v2956_v26  ;;  %v3459_v26 = vld [vmem:[#allocation5 + $0x108] sm:$0xff] }
 0x26a   : > { %6837 = vmatprep.subr.mxu1 %v2955_v27 }
 0x26b   : > { %6838 = vmatpush3.msra.mxu1 %v2955_v27  ;;  %v3707_v27 = vld [vmem:[#allocation5 + $0x198] sm:$0xff] }
 0x26c   : > { %6872 = vmatprep.subr.mxu1 %v7595_v34 }
 0x314   : > { %v6814_v28 = vpop.f32.mrf.mxu1 }
 0x316   : > { %v2946_v29 = vpop.f32.mrf.mxu1 }
 0x317   : > { %6839 = vmatprep.mubr.msk.f32.mxu1 %vm2967_vm8, %v2946_v29  ;;  %v3706_v29 = vld [vmem:[#allocation5 + $0x190] sm:$0xff] }
 0x318   : > { %6840 = vmatmul.mubr.msk.f32.vlgmr.msra.gmra.mxu1 %vm2967_vm8, %v6814_v28  ;;  %v3458_v28 = vld [vmem:[#allocation5 + $0x100] sm:$0xff] }
 0x319   : > { %6873 = vmatpush3.msra.mxu1 %v3215_v33  ;;  %6884 = vmatprep.mubr.msk.f32.mxu1 %vm7596_vm9, %v7595_v34  ;;  %v3705_v33 = vld [vmem:[#allocation5 + $0x188] sm:$0xff] }
 0x31a   : > { %6874 = vmatprep.subr.mxu1 %v7595_v34 }
 0x31b   : > { %6875 = vmatpush3.msra.mxu1 %v3214_v38  ;;  %v3704_v38 = vld [vmem:[#allocation5 + $0x180] sm:$0xff] }
 0x31c   : > { %6876 = vmatprep.subr.mxu1 %v7595_v34 }
 0x31d   : > { %6877 = vmatpush3.msra.mxu1 %v3213_v40  ;;  %v3627_v40 = vld [vmem:[#allocation5 + $0x178] sm:$0xff] }
 0x31e   : > { %6878 = vmatprep.subr.mxu1 %v7595_v34 }
 0x31f   : > { %6879 = vmatpush3.msra.mxu1 %v3212_v44  ;;  %v3626_v44 = vld [vmem:[#allocation5 + $0x170] sm:$0xff] }
 0x320   : > { %6880 = vmatprep.subr.mxu1 %v7595_v34 }
 0x321   : > { %6881 = vmatpush3.msra.mxu1 %v3211_v46  ;;  %v3625_v46 = vld [vmem:[#allocation5 + $0x168] sm:$0xff] }
 0x322   : > { %6882 = vmatprep.subr.mxu1 %v7595_v34 }
 0x323   : > { %6883 = vmatpush3.msra.mxu1 %v3210_v48  ;;  %v3624_v48 = vld [vmem:[#allocation5 + $0x160] sm:$0xff] }
 0x324   : > { %6902 = vmatprep.subr.mxu1 %v7595_v34 }
 0x3d8   : > { %v6841_v49 = vpop.f32.mrf.mxu1 }
 0x3d9   : > { %v3464_v52 = vrot.slane %v6841_v49, 1  ;;  %v3875_v55 = vrot.slane %v6841_v49, 2  ;;  %v4286_v30 = vrot.slane %v6841_v49, 3  ;;  %v4697_v59 = vrot.slane %v6841_v49, 4  ;;  %v3870_v49 = vld [vmem:[#allocation5 + $0x1f0] sm:$0xff] }
 0x3da   : > { %v8477_v50 = vpop.f32.mrf.mxu1 }
 0x3db   : > { %3216 = vrot.lane.b32.xlu1 %v8477_v50, %s7594_s20  ;;  %3063 = vrot.lane.b32.xlu0 %v8477_v50, %s7592_s25  ;;  %v3463_v51 = vrot.slane %v8477_v50, 1  ;;  %v3874_v54 = vrot.slane %v8477_v50, 2  ;;  %v4285_v57 = vrot.slane %v8477_v50, 3  ;;  %v4696_v58 = vrot.slane %v8477_v50, 4 }
 0x3dd   : > { %v8487_v53 = vsel %vm1001_vm0, %v3463_v51, %v3464_v52  ;;  %v8497_v56 = vsel %vm1463_vm2, %v3874_v54, %v3875_v55  ;;  %v8507_v31 = vsel %vm1925_vm3, %v4285_v57, %v4286_v30  ;;  %v8517_v60 = vsel %vm2387_vm4, %v4696_v58, %v4697_v59  ;;  %v3869_v51 = vld [vmem:[#allocation5 + $0x1e8] sm:$0xff]  ;;  %v3622_v52 = vld [vmem:[#allocation5 + $0x150] sm:$0xff]  ;;  %v3791_v55 = vld [vmem:[#allocation5 + $0x1d8] sm:$0xff] }
 0x3de   : > { %v4038_v57 = vld [vmem:[#allocation5 + $0x268] sm:$0xff]  ;;  %v3790_v30 = vld [vmem:[#allocation5 + $0x1d0] sm:$0xff]  ;;  %v4037_v58 = vld [vmem:[#allocation5 + $0x260] sm:$0xff] }
 0x3df   : > { %3380 = vrot.lane.b32.xlu1 %v8477_v50, %s7597_s29  ;;  %3298 = vrot.lane.b32.xlu0 %v8477_v50, %s7598_s18  ;;  %v3789_v59 = vld [vmem:[#allocation5 + $0x1c8] sm:$0xff] }
 0x3e3   : > { %3628 = vrot.lane.b32.xlu1 %v8487_v53, %s7594_s20  ;;  %3546 = vrot.lane.b32.xlu0 %v8487_v53, %s7592_s25 }
 0x3e7   : > { %3792 = vrot.lane.b32.xlu1 %v8487_v53, %s7597_s29  ;;  %3710 = vrot.lane.b32.xlu0 %v8487_v53, %s7598_s18 }
 0x3eb   : > { %4039 = vrot.lane.b32.xlu1 %v8497_v56, %s7594_s20  ;;  %3957 = vrot.lane.b32.xlu0 %v8497_v56, %s7592_s25 }
 0x3ef   : > { %4203 = vrot.lane.b32.xlu1 %v8497_v56, %s7597_s29  ;;  %4121 = vrot.lane.b32.xlu0 %v8497_v56, %s7598_s18 }
 0x3f3   : > { %4450 = vrot.lane.b32.xlu1 %v8507_v31, %s7594_s20  ;;  %4368 = vrot.lane.b32.xlu0 %v8507_v31, %s7592_s25 }
 0x3f7   : > { %4614 = vrot.lane.b32.xlu1 %v8507_v31, %s7597_s29  ;;  %4532 = vrot.lane.b32.xlu0 %v8507_v31, %s7598_s18 }
 0x3fb   : > { %4861 = vrot.lane.b32.xlu1 %v8517_v60, %s7594_s20  ;;  %4779 = vrot.lane.b32.xlu0 %v8517_v60, %s7592_s25  ;;  %s530_s25 = scalar_lea.vmem [#allocation8], %s529_s27 }
 0x3fc   : > { %s5652_s20 = sshll.u32 %s530_s25, 4  ;;  %s5653_s20 = int_to_ptr.vmem [resolvable:$true] %s5652_s20 }
 0x3fd   : > { %s7516_s23 = scalar_lea.vmem %s5653_s20, 16 }
 0x3fe   : > { %p7517_p10 = scmp.ne.s32.totalorder %s5653_s20, %s7516_s23 }
 0x3ff   : > { %5025 = vrot.lane.b32.xlu1 %v8517_v60, %s7597_s29  ;;  %4943 = vrot.lane.b32.xlu0 %v8517_v60, %s7598_s18  ;;  %s5980_s18 = sshll.u32 %s7701_s22, 4  ;;  %s7599_s22 = smov [#allocation8]  }
 0x400   : > { %s8952_s16 = scalar_lea.hbm %s9002_s15, %s5980_s18  ;;  %p7518_p2 = pnand %p7517_p10, %p9025_p12 }
 0x401   : > { %s7520_s30 = sshll.u32 %s7599_s22, 4  ;;  %s7521_s30 = int_to_ptr.vmem [resolvable:$false] %s7520_s30 }
 0x402   : > { %p7519_p4 = pneg %p7518_p2  ;;  %s7522_s24 = scalar_lea.vmem %s7521_s30, 32 }
 0x403   : > { %p7523_p7 = scmp.lt.s32.totalorder %s5653_s20, %s7521_s30  ;;  %p7524_p8 = scmp.lt.s32.totalorder %s7522_s24, %s7516_s23 }
 0x405   : > { %p7525_p11 = por %p7524_p8, %p7523_p7 }
 0x407   : > { %p7526_p0 = pnand %p7525_p11, %p7519_p4 }
 0x44d   : > { %v3217_v63 = vpop.permute.xlu1 %3216  ;;  %v3064_v0 = vpop.permute.xlu0 %3063 }
 0x44e   : > { %6855 = vmatmul.mubr.msk.f32.vlgmr.msra.gmra.mxu0 %vm558_vm1, %v3064_v0  ;;  %6885 = vmatmul.mubr.msk.f32.vlgmr.msra.gmra.mxu1 %vm558_vm1, %v3217_v63  ;;  %v3787_v63 = vld [vmem:[#allocation5 + $0x1b8] sm:$0xff]  ;;  %v4034_v0 = vld [vmem:[#allocation5 + $0x248] sm:$0xff] }
 0x44f   : > { %6858 = vmatpush3.msra.mxu0 %v3054_v61  ;;  %6903 = vmatpush3.msra.mxu1 %v3379_v62  ;;  %v4036_v61 = vld [vmem:[#allocation5 + $0x258] sm:$0xff]  ;;  %v3788_v62 = vld [vmem:[#allocation5 + $0x1c0] sm:$0xff] }
 0x450   : > { %6859 = vmatprep.subr.mxu0 %v7595_v34  ;;  %6904 = vmatprep.subr.mxu1 %v7595_v34 }
 0x451   : > { %6860 = vmatpush3.msra.mxu0 %v3053_v1  ;;  %6905 = vmatpush3.msra.mxu1 %v3378_v2  ;;  %v3381_v11 = vpop.permute.xlu1 %3380  ;;  %v3299_v20 = vpop.permute.xlu0 %3298  ;;  %v3786_v2 = vld [vmem:[#allocation5 + $0x1b0] sm:$0xff] }
 0x452   : > { %6906 = vmatprep.subr.mxu1 %v7595_v34  ;;  %6861 = vmatprep.subr.mxu0 %v7595_v34 }
 0x453   : > { %6862 = vmatpush3.msra.mxu0 %v3052_v3  ;;  %6907 = vmatpush3.msra.mxu1 %v3377_v4  ;;  %v4033_v3 = vld [vmem:[#allocation5 + $0x240] sm:$0xff]  ;;  %v3956_v4 = vld [vmem:[#allocation5 + $0x238] sm:$0xff] }
 0x454   : > { %6863 = vmatprep.subr.mxu0 %v7595_v34  ;;  %6908 = vmatprep.subr.mxu1 %v7595_v34 }
 0x455   : > { %6864 = vmatpush3.msra.mxu0 %v3051_v5  ;;  %6909 = vmatpush3.msra.mxu1 %v3376_v41  ;;  %v3547_v37 = vpop.permute.xlu0 %3546  ;;  %v3629_v54 = vpop.permute.xlu1 %3628  ;;  %v4202_v5 = vld [vmem:[#allocation5 + $0x2c8] sm:$0xff] }
 0x456   : > { %6865 = vmatprep.subr.mxu0 %v7595_v34  ;;  %6910 = vmatprep.subr.mxu1 %v7595_v34 }
 0x457   : > { %6866 = vmatpush3.msra.mxu0 %v3050_v42  ;;  %6911 = vmatpush3.msra.mxu1 %v3375_v6  ;;  %v3955_v42 = vld [vmem:[#allocation5 + $0x230] sm:$0xff]  ;;  %v4201_v6 = vld [vmem:[#allocation5 + $0x2c0] sm:$0xff] }
 0x458   : > { %6867 = vmatprep.subr.mxu0 %v7595_v34  ;;  %6912 = vmatprep.subr.mxu1 %v7595_v34 }
 0x459   : > { %6868 = vmatpush3.msra.mxu0 %v3049_v7  ;;  %6869 = vmatprep.mubr.msk.f32.mxu0 %vm7596_vm9, %v7595_v34  ;;  %v3711_v39 = vpop.permute.xlu0 %3710  ;;  %v3793_v1 = vpop.permute.xlu1 %3792  ;;  %v3954_v7 = vld [vmem:[#allocation5 + $0x228] sm:$0xff] }
 0x45a   : > { %6913 = vmatpush3.msra.mxu1 %v3374_v8  ;;  %6914 = vmatprep.mubr.msk.f32.mxu1 %vm7596_vm9, %v7595_v34  ;;  %v4200_v8 = vld [vmem:[#allocation5 + $0x2b8] sm:$0xff] }
 0x45b   : > { %6870 = vmatmul.mubr.msk.f32.vlgmr.msra.gmra.mxu0 %vm558_vm1, %v8477_v50  ;;  %6887 = vmatprep.subr.mxu0 %v7595_v34  ;;  %v3623_v50 = vld [vmem:[#allocation5 + $0x158] sm:$0xff] }
 0x45c   : > { %6915 = vmatmul.mubr.msk.f32.vlgmr.msra.gmra.mxu1 %vm558_vm1, %v3381_v11  ;;  %6932 = vmatprep.subr.mxu1 %v7595_v34  ;;  %v3952_v11 = vld [vmem:[#allocation5 + $0x218] sm:$0xff] }
 0x45d   : > { %6888 = vmatpush3.msra.mxu0 %v3297_v9  ;;  %6933 = vmatpush3.msra.mxu1 %v3545_v10  ;;  %v4040_v41 = vpop.permute.xlu1 %4039  ;;  %v3953_v9 = vld [vmem:[#allocation5 + $0x220] sm:$0xff]  ;;  %v4199_v10 = vld [vmem:[#allocation5 + $0x2b0] sm:$0xff] }
 0x45e   : > { %6889 = vmatprep.subr.mxu0 %v7595_v34  ;;  %6934 = vmatprep.subr.mxu1 %v7595_v34 }
 0x45f   : > { %6890 = vmatpush3.msra.mxu0 %v3296_v12  ;;  %6935 = vmatpush3.msra.mxu1 %v3544_v13  ;;  %v4198_v12 = vld [vmem:[#allocation5 + $0x2a8] sm:$0xff]  ;;  %v3951_v13 = vld [vmem:[#allocation5 + $0x210] sm:$0xff] }
 0x460   : > { %6891 = vmatprep.subr.mxu0 %v7595_v34  ;;  %6936 = vmatprep.subr.mxu1 %v7595_v34 }
 0x461   : > { %6892 = vmatpush3.msra.mxu0 %v3295_v14  ;;  %6937 = vmatpush3.msra.mxu1 %v3543_v15  ;;  %v4197_v14 = vld [vmem:[#allocation5 + $0x2a0] sm:$0xff]  ;;  %v3958_v15 = vpop.permute.xlu0 %3957 }
 0x462   : > { %6893 = vmatprep.subr.mxu0 %v7595_v34  ;;  %6938 = vmatprep.subr.mxu1 %v7595_v34 }
 0x463   : > { %6894 = vmatpush3.msra.mxu0 %v3294_v16  ;;  %6939 = vmatpush3.msra.mxu1 %v3542_v17  ;;  %v4120_v16 = vld [vmem:[#allocation5 + $0x298] sm:$0xff]  ;;  %v4367_v17 = vld [vmem:[#allocation5 + $0x328] sm:$0xff] }
 0x464   : > { %6895 = vmatprep.subr.mxu0 %v7595_v34  ;;  %6940 = vmatprep.subr.mxu1 %v7595_v34 }
 0x465   : > { %6896 = vmatpush3.msra.mxu0 %v3293_v18  ;;  %6941 = vmatpush3.msra.mxu1 %v3541_v19  ;;  %v4204_v18 = vpop.permute.xlu1 %4203  ;;  %v4119_v19 = vld [vmem:[#allocation5 + $0x290] sm:$0xff] }
 0x466   : > { %6897 = vmatprep.subr.mxu0 %v7595_v34  ;;  %6942 = vmatprep.subr.mxu1 %v7595_v34 }
 0x467   : > { %6898 = vmatpush3.msra.mxu0 %v3292_v21  ;;  %6899 = vmatprep.mubr.msk.f32.mxu0 %vm7596_vm9, %v7595_v34  ;;  %v4118_v21 = vld [vmem:[#allocation5 + $0x288] sm:$0xff] }
 0x468   : > { %6943 = vmatpush3.msra.mxu1 %v3540_v22  ;;  %6944 = vmatprep.mubr.msk.f32.mxu1 %vm7596_vm9, %v7595_v34  ;;  %v4365_v22 = vld [vmem:[#allocation5 + $0x318] sm:$0xff] }
 0x469   : > { %6900 = vmatmul.mubr.msk.f32.vlgmr.msra.gmra.mxu0 %vm558_vm1, %v3299_v20  ;;  %6917 = vmatprep.subr.mxu0 %v7595_v34  ;;  %v4366_v20 = vld [vmem:[#allocation5 + $0x320] sm:$0xff] }
 0x46a   : > { %6962 = vmatprep.subr.mxu1 %v7595_v34  ;;  %6945 = vmatmul.mubr.msk.f32.vlgmr.msra.gmra.mxu1 %vm558_vm1, %v3547_v37  ;;  %v4116_v37 = vld [vmem:[#allocation5 + $0x278] sm:$0xff] }
 0x46b   : > { %6918 = vmatpush3.msra.mxu0 %v3461_v23  ;;  %6963 = vmatpush3.msra.mxu1 %v3709_v36  ;;  %v4117_v23 = vld [vmem:[#allocation5 + $0x280] sm:$0xff]  ;;  %v4364_v36 = vld [vmem:[#allocation5 + $0x310] sm:$0xff] }
 0x46c   : > { %6919 = vmatprep.subr.mxu0 %v7595_v34  ;;  %6964 = vmatprep.subr.mxu1 %v7595_v34 }
 0x46d   : > { %6920 = vmatpush3.msra.mxu0 %v3460_v24  ;;  %6965 = vmatpush3.msra.mxu1 %v3708_v25  ;;  %v4363_v24 = vld [vmem:[#allocation5 + $0x308] sm:$0xff]  ;;  %v4122_v25 = vpop.permute.xlu0 %4121 }
 0x46e   : > { %6921 = vmatprep.subr.mxu0 %v7595_v34  ;;  %6966 = vmatprep.subr.mxu1 %v7595_v34 }
 0x46f   : > { %6922 = vmatpush3.msra.mxu0 %v3459_v26  ;;  %6967 = vmatpush3.msra.mxu1 %v3707_v27  ;;  %v4115_v26 = vld [vmem:[#allocation5 + $0x270] sm:$0xff]  ;;  %v4362_v27 = vld [vmem:[#allocation5 + $0x300] sm:$0xff] }
 0x470   : > { %6923 = vmatprep.subr.mxu0 %v7595_v34  ;;  %6968 = vmatprep.subr.mxu1 %v7595_v34 }
 0x471   : > { %6924 = vmatpush3.msra.mxu0 %v3458_v28  ;;  %6969 = vmatpush3.msra.mxu1 %v3706_v29  ;;  %v4284_v28 = vld [vmem:[#allocation5 + $0x2f8] sm:$0xff]  ;;  %v4531_v29 = vld [vmem:[#allocation5 + $0x388] sm:$0xff] }
 0x472   : > { %6925 = vmatprep.subr.mxu0 %v7595_v34  ;;  %6970 = vmatprep.subr.mxu1 %v7595_v34 }
 0x473   : > { %6926 = vmatpush3.msra.mxu0 %v3457_v32  ;;  %6971 = vmatpush3.msra.mxu1 %v3705_v33  ;;  %v4369_v32 = vpop.permute.xlu0 %4368  ;;  %v4283_v33 = vld [vmem:[#allocation5 + $0x2f0] sm:$0xff] }
 0x474   : > { %6927 = vmatprep.subr.mxu0 %v7595_v34  ;;  %6972 = vmatprep.subr.mxu1 %v7595_v34 }
 0x475   : > { %6928 = vmatpush3.msra.mxu0 %v3456_v35  ;;  %6929 = vmatprep.mubr.msk.f32.mxu0 %vm7596_vm9, %v7595_v34  ;;  %v4530_v35 = vld [vmem:[#allocation5 + $0x380] sm:$0xff] }
 0x476   : > { %6973 = vmatpush3.msra.mxu1 %v3704_v38  ;;  %6974 = vmatprep.mubr.msk.f32.mxu1 %vm7596_vm9, %v7595_v34  ;;  %v4282_v38 = vld [vmem:[#allocation5 + $0x2e8] sm:$0xff] }
 0x477   : > { %6947 = vmatprep.subr.mxu0 %v7595_v34  ;;  %6975 = vmatmul.mubr.msk.f32.vlgmr.msra.gmra.mxu1 %vm558_vm1, %v3711_v39  ;;  %v4529_v39 = vld [vmem:[#allocation5 + $0x378] sm:$0xff] }
 0x478   : > { %6992 = vmatprep.subr.mxu1 %v7595_v34  ;;  %6930 = vmatmul.mubr.msk.f32.vlgmr.msra.gmra.mxu0 %vm558_vm1, %v8487_v53  ;;  %v3868_v53 = vld [vmem:[#allocation5 + $0x1e0] sm:$0xff] }
 0x479   : > { %6948 = vmatpush3.msra.mxu0 %v3627_v40  ;;  %6993 = vmatpush3.msra.mxu1 %v3873_v43  ;;  %v4281_v40 = vld [vmem:[#allocation5 + $0x2e0] sm:$0xff]  ;;  %v4528_v43 = vld [vmem:[#allocation5 + $0x370] sm:$0xff] }
 0x47a   : > { %6949 = vmatprep.subr.mxu0 %v7595_v34  ;;  %6994 = vmatprep.subr.mxu1 %v7595_v34 }
 0x47b   : > { %6950 = vmatpush3.msra.mxu0 %v3626_v44  ;;  %6995 = vmatpush3.msra.mxu1 %v3872_v45  ;;  %v4280_v44 = vld [vmem:[#allocation5 + $0x2d8] sm:$0xff]  ;;  %v4527_v45 = vld [vmem:[#allocation5 + $0x368] sm:$0xff] }
 0x47c   : > { %6951 = vmatprep.subr.mxu0 %v7595_v34  ;;  %6996 = vmatprep.subr.mxu1 %v7595_v34 }
 0x47d   : > { %6952 = vmatpush3.msra.mxu0 %v3625_v46  ;;  %6997 = vmatpush3.msra.mxu1 %v3871_v47  ;;  %v4279_v46 = vld [vmem:[#allocation5 + $0x2d0] sm:$0xff]  ;;  %v4526_v47 = vld [vmem:[#allocation5 + $0x360] sm:$0xff] }
 0x47e   : > { %6953 = vmatprep.subr.mxu0 %v7595_v34  ;;  %6998 = vmatprep.subr.mxu1 %v7595_v34 }
 0x47f   : > { %6954 = vmatpush3.msra.mxu0 %v3624_v48  ;;  %6999 = vmatpush3.msra.mxu1 %v3870_v49  ;;  %v4449_v48 = vld [vmem:[#allocation5 + $0x358] sm:$0xff]  ;;  %v4695_v49 = vld [vmem:[#allocation5 + $0x3e8] sm:$0xff] }
 0x480   : > { %6955 = vmatprep.subr.mxu0 %v7595_v34  ;;  %7000 = vmatprep.subr.mxu1 %v7595_v34 }
 0x481   : > { %6956 = vmatpush3.msra.mxu0 %v3623_v50  ;;  %7001 = vmatpush3.msra.mxu1 %v3869_v51  ;;  %v4533_v50 = vpop.permute.xlu0 %4532  ;;  %v4448_v51 = vld [vmem:[#allocation5 + $0x350] sm:$0xff] }
 0x482   : > { %6957 = vmatprep.subr.mxu0 %v7595_v34  ;;  %7002 = vmatprep.subr.mxu1 %v7595_v34 }
 0x483   : > { %6958 = vmatpush3.msra.mxu0 %v3622_v52  ;;  %6959 = vmatprep.mubr.msk.f32.mxu0 %vm7596_vm9, %v7595_v34  ;;  %v4694_v52 = vld [vmem:[#allocation5 + $0x3e0] sm:$0xff] }
 0x484   : > { %7003 = vmatpush3.msra.mxu1 %v3868_v53  ;;  %7004 = vmatprep.mubr.msk.f32.mxu1 %vm7596_vm9, %v7595_v34  ;;  %v4447_v53 = vld [vmem:[#allocation5 + $0x348] sm:$0xff] }
 0x485   : > { %6960 = vmatmul.mubr.msk.f32.vlgmr.msra.gmra.mxu0 %vm558_vm1, %v3629_v54  ;;  %6977 = vmatprep.subr.mxu0 %v7595_v34  ;;  %v4693_v54 = vld [vmem:[#allocation5 + $0x3d8] sm:$0xff] }
 0x486   : > { %7005 = vmatmul.mubr.msk.f32.vlgmr.msra.gmra.mxu1 %vm558_vm1, %v8497_v56  ;;  %7022 = vmatprep.subr.mxu1 %v7595_v34  ;;  %v4035_v56 = vld [vmem:[#allocation5 + $0x250] sm:$0xff] }
 0x487   : > { %6978 = vmatpush3.msra.mxu0 %v3791_v55  ;;  %7023 = vmatpush3.msra.mxu1 %v4038_v57  ;;  %v4692_v55 = vld [vmem:[#allocation5 + $0x3d0] sm:$0xff]  ;;  %v4445_v57 = vld [vmem:[#allocation5 + $0x338] sm:$0xff] }
 0x488   : > { %6979 = vmatprep.subr.mxu0 %v7595_v34  ;;  %7024 = vmatprep.subr.mxu1 %v7595_v34 }
 0x489   : > { %6980 = vmatpush3.msra.mxu0 %v3790_v30  ;;  %7025 = vmatpush3.msra.mxu1 %v4037_v58  ;;  %v4691_v30 = vld [vmem:[#allocation5 + $0x3c8] sm:$0xff]  ;;  %v4444_v58 = vld [vmem:[#allocation5 + $0x330] sm:$0xff] }
 0x48a   : > { %6981 = vmatprep.subr.mxu0 %v7595_v34  ;;  %7026 = vmatprep.subr.mxu1 %v7595_v34 }
 0x48b   : > { %6982 = vmatpush3.msra.mxu0 %v3789_v59  ;;  %7027 = vmatpush3.msra.mxu1 %v4036_v61  ;;  %v4690_v59 = vld [vmem:[#allocation5 + $0x3c0] sm:$0xff]  ;;  %v4451_v61 = vpop.permute.xlu1 %4450 }
 0x48c   : > { %6983 = vmatprep.subr.mxu0 %v7595_v34  ;;  %7028 = vmatprep.subr.mxu1 %v7595_v34 }
 0x48d   : > { %6984 = vmatpush3.msra.mxu0 %v3788_v62  ;;  %7029 = vmatpush3.msra.mxu1 %v4035_v56  ;;  %v4613_v62 = vld [vmem:[#allocation5 + $0x3b8] sm:$0xff]  ;;  %v4860_v56 = vld [vmem:[#allocation5 + $0x448] sm:$0xff] }
 0x48e   : > { %6985 = vmatprep.subr.mxu0 %v7595_v34  ;;  %7030 = vmatprep.subr.mxu1 %v7595_v34 }
 0x48f   : > { %6986 = vmatpush3.msra.mxu0 %v3787_v63  ;;  %7031 = vmatpush3.msra.mxu1 %v4034_v0  ;;  %v4612_v63 = vld [vmem:[#allocation5 + $0x3b0] sm:$0xff]  ;;  %v4859_v0 = vld [vmem:[#allocation5 + $0x440] sm:$0xff] }
 0x490   : > { %6987 = vmatprep.subr.mxu0 %v7595_v34  ;;  %7032 = vmatprep.subr.mxu1 %v7595_v34 }
 0x491   : > { %6988 = vmatpush3.msra.mxu0 %v3786_v2  ;;  %6989 = vmatprep.mubr.msk.f32.mxu0 %vm7596_vm9, %v7595_v34  ;;  %v4858_v2 = vld [vmem:[#allocation5 + $0x438] sm:$0xff] }
 0x492   : > { %7033 = vmatpush3.msra.mxu1 %v4033_v3  ;;  %7034 = vmatprep.mubr.msk.f32.mxu1 %vm7596_vm9, %v7595_v34  ;;  %v4610_v3 = vld [vmem:[#allocation5 + $0x3a0] sm:$0xff] }
 0x493   : > { %6990 = vmatmul.mubr.msk.f32.vlgmr.msra.gmra.mxu0 %vm558_vm1, %v3793_v1  ;;  %7007 = vmatprep.subr.mxu0 %v7595_v34  ;;  %v4611_v1 = vld [vmem:[#allocation5 + $0x3a8] sm:$0xff] }
 0x494   : > { %7035 = vmatmul.mubr.msk.f32.vlgmr.msra.gmra.mxu1 %vm558_vm1, %v4040_v41  ;;  %7052 = vmatprep.subr.mxu1 %v7595_v34  ;;  %v4615_v41 = vpop.permute.xlu1 %4614 }
 0x495   : > { %7008 = vmatpush3.msra.mxu0 %v3956_v4  ;;  %7053 = vmatpush3.msra.mxu1 %v4202_v5  ;;  %v4609_v4 = vld [vmem:[#allocation5 + $0x398] sm:$0xff]  ;;  %v4856_v5 = vld [vmem:[#allocation5 + $0x428] sm:$0xff] }
 0x496   : > { %7009 = vmatprep.subr.mxu0 %v7595_v34  ;;  %7054 = vmatprep.subr.mxu1 %v7595_v34 }
 0x497   : > { %7010 = vmatpush3.msra.mxu0 %v3955_v42  ;;  %7055 = vmatpush3.msra.mxu1 %v4201_v6  ;;  %v4608_v42 = vld [vmem:[#allocation5 + $0x390] sm:$0xff]  ;;  %v4855_v6 = vld [vmem:[#allocation5 + $0x420] sm:$0xff] }
 0x498   : > { %7011 = vmatprep.subr.mxu0 %v7595_v34  ;;  %7056 = vmatprep.subr.mxu1 %v7595_v34 }
 0x499   : > { %7012 = vmatpush3.msra.mxu0 %v3954_v7  ;;  %7057 = vmatpush3.msra.mxu1 %v4200_v8  ;;  %v4778_v7 = vld [vmem:[#allocation5 + $0x418] sm:$0xff]  ;;  %v5024_v8 = vld [vmem:[#allocation5 + $0x4a8] sm:$0xff] }
 0x49a   : > { %7013 = vmatprep.subr.mxu0 %v7595_v34  ;;  %7058 = vmatprep.subr.mxu1 %v7595_v34 }
 0x49b   : > { %7014 = vmatpush3.msra.mxu0 %v3953_v9  ;;  %7059 = vmatpush3.msra.mxu1 %v4199_v10  ;;  %v4862_v9 = vpop.permute.xlu1 %4861  ;;  %v4777_v10 = vld [vmem:[#allocation5 + $0x410] sm:$0xff] }
 0x49c   : > { %7015 = vmatprep.subr.mxu0 %v7595_v34  ;;  %7060 = vmatprep.subr.mxu1 %v7595_v34 }
 0x49d   : > { %7016 = vmatpush3.msra.mxu0 %v3952_v11  ;;  %7061 = vmatpush3.msra.mxu1 %v4198_v12  ;;  %v5023_v11 = vld [vmem:[#allocation5 + $0x4a0] sm:$0xff]  ;;  %v4776_v12 = vld [vmem:[#allocation5 + $0x408] sm:$0xff] }
 0x49e   : > { %7017 = vmatprep.subr.mxu0 %v7595_v34  ;;  %7062 = vmatprep.subr.mxu1 %v7595_v34 }
 0x49f   : > { %7018 = vmatpush3.msra.mxu0 %v3951_v13  ;;  %7019 = vmatprep.mubr.msk.f32.mxu0 %vm7596_vm9, %v7595_v34  ;;  %v5022_v13 = vld [vmem:[#allocation5 + $0x498] sm:$0xff] }
 0x4a0   : > { %7063 = vmatpush3.msra.mxu1 %v4197_v14  ;;  %7064 = vmatprep.mubr.msk.f32.mxu1 %vm7596_vm9, %v7595_v34  ;;  %v4775_v14 = vld [vmem:[#allocation5 + $0x400] sm:$0xff] }
 0x4a1   : > { %7020 = vmatmul.mubr.msk.f32.vlgmr.msra.gmra.mxu0 %vm558_vm1, %v3958_v15  ;;  %7037 = vmatprep.subr.mxu0 %v7595_v34  ;;  %v5021_v15 = vld [vmem:[#allocation5 + $0x490] sm:$0xff] }
 0x4a2   : > { %7065 = vmatmul.mubr.msk.f32.vlgmr.msra.gmra.mxu1 %vm558_vm1, %v4204_v18  ;;  %7082 = vmatprep.subr.mxu1 %v7595_v34  ;;  %v4773_v18 = vld [vmem:[#allocation5 + $0x3f0] sm:$0xff] }
 0x4a3   : > { %7038 = vmatpush3.msra.mxu0 %v4120_v16  ;;  %7083 = vmatpush3.msra.mxu1 %v4367_v17  ;;  %v4774_v16 = vld [vmem:[#allocation5 + $0x3f8] sm:$0xff]  ;;  %v5020_v17 = vld [vmem:[#allocation5 + $0x488] sm:$0xff] }
 0x4a4   : > { %7039 = vmatprep.subr.mxu0 %v7595_v34  ;;  %7084 = vmatprep.subr.mxu1 %v7595_v34 }
 0x4a5   : > { %7040 = vmatpush3.msra.mxu0 %v4119_v19  ;;  %7085 = vmatpush3.msra.mxu1 %v4366_v20  ;;  %v5019_v19 = vld [vmem:[#allocation5 + $0x480] sm:$0xff]  ;;  %v4942_v20 = vld [vmem:[#allocation5 + $0x478] sm:$0xff] }
 0x4a6   : > { %7041 = vmatprep.subr.mxu0 %v7595_v34  ;;  %7086 = vmatprep.subr.mxu1 %v7595_v34 }
 0x4a7   : > { %7042 = vmatpush3.msra.mxu0 %v4118_v21  ;;  %7087 = vmatpush3.msra.mxu1 %v4365_v22  ;;  %v4780_v21 = vpop.permute.xlu0 %4779  ;;  %v5026_v22 = vpop.permute.xlu1 %5025 }
 0x4a8   : > { %7043 = vmatprep.subr.mxu0 %v7595_v34  ;;  %7088 = vmatprep.subr.mxu1 %v7595_v34 }
 0x4a9   : > { %7044 = vmatpush3.msra.mxu0 %v4117_v23  ;;  %7089 = vmatpush3.msra.mxu1 %v4364_v36  ;;  %v4941_v23 = vld [vmem:[#allocation5 + $0x470] sm:$0xff]  ;;  %v4940_v36 = vld [vmem:[#allocation5 + $0x468] sm:$0xff] }
 0x4aa   : > { %7045 = vmatprep.subr.mxu0 %v7595_v34  ;;  %7090 = vmatprep.subr.mxu1 %v7595_v34 }
 0x4ab   : > { %7046 = vmatpush3.msra.mxu0 %v4116_v37  ;;  %7091 = vmatpush3.msra.mxu1 %v4363_v24  ;;  %v4939_v37 = vld [vmem:[#allocation5 + $0x460] sm:$0xff]  ;;  %v4938_v24 = vld [vmem:[#allocation5 + $0x458] sm:$0xff] }
 0x4ac   : > { %7047 = vmatprep.subr.mxu0 %v7595_v34  ;;  %7092 = vmatprep.subr.mxu1 %v7595_v34 }
 0x4ad   : > { %7048 = vmatpush3.msra.mxu0 %v4115_v26  ;;  %7049 = vmatprep.mubr.msk.f32.mxu0 %vm7596_vm9, %v7595_v34  ;;  %v4944_v26 = vpop.permute.xlu0 %4943 }
 0x4ae   : > { %7093 = vmatpush3.msra.mxu1 %v4362_v27  ;;  %7094 = vmatprep.mubr.msk.f32.mxu1 %vm7596_vm9, %v7595_v34 }
 0x4af   : > { %7050 = vmatmul.mubr.msk.f32.vlgmr.msra.gmra.mxu0 %vm558_vm1, %v4122_v25  ;;  %7067 = vmatprep.subr.mxu0 %v7595_v34  ;;  %v4937_v25 = vld [vmem:[#allocation5 + $0x450] sm:$0xff] }
 0x4b0   : > { %7095 = vmatmul.mubr.msk.f32.vlgmr.msra.gmra.mxu1 %vm558_vm1, %v4369_v32  ;;  %7112 = vmatprep.subr.mxu1 %v7595_v34 }
 0x4b1   : > { %7068 = vmatpush3.msra.mxu0 %v4284_v28  ;;  %7113 = vmatpush3.msra.mxu1 %v4531_v29 }
 0x4b2   : > { %7069 = vmatprep.subr.mxu0 %v7595_v34  ;;  %7114 = vmatprep.subr.mxu1 %v7595_v34 }
 0x4b3   : > { %7070 = vmatpush3.msra.mxu0 %v4283_v33  ;;  %7115 = vmatpush3.msra.mxu1 %v4530_v35 }
 0x4b4   : > { %7071 = vmatprep.subr.mxu0 %v7595_v34  ;;  %7116 = vmatprep.subr.mxu1 %v7595_v34 }
 0x4b5   : > { %7072 = vmatpush3.msra.mxu0 %v4282_v38  ;;  %7117 = vmatpush3.msra.mxu1 %v4529_v39 }
 0x4b6   : > { %7073 = vmatprep.subr.mxu0 %v7595_v34  ;;  %7118 = vmatprep.subr.mxu1 %v7595_v34 }
 0x4b7   : > { %7074 = vmatpush3.msra.mxu0 %v4281_v40  ;;  %7119 = vmatpush3.msra.mxu1 %v4528_v43 }
 0x4b8   : > { %7075 = vmatprep.subr.mxu0 %v7595_v34  ;;  %7120 = vmatprep.subr.mxu1 %v7595_v34 }
 0x4b9   : > { %7076 = vmatpush3.msra.mxu0 %v4280_v44  ;;  %7121 = vmatpush3.msra.mxu1 %v4527_v45 }
 0x4ba   : > { %7077 = vmatprep.subr.mxu0 %v7595_v34  ;;  %7122 = vmatprep.subr.mxu1 %v7595_v34 }
 0x4bb   : > { %7078 = vmatpush3.msra.mxu0 %v4279_v46  ;;  %7079 = vmatprep.mubr.msk.f32.mxu0 %vm7596_vm9, %v7595_v34 }
 0x4bc   : > { %7123 = vmatpush3.msra.mxu1 %v4526_v47  ;;  %7124 = vmatprep.mubr.msk.f32.mxu1 %vm7596_vm9, %v7595_v34 }
 0x4bd   : > { %7080 = vmatmul.mubr.msk.f32.vlgmr.msra.gmra.mxu0 %vm558_vm1, %v8507_v31  ;;  %7097 = vmatprep.subr.mxu0 %v7595_v34  ;;  %v4446_v31 = vld [vmem:[#allocation5 + $0x340] sm:$0xff] }
 0x4be   : > { %7125 = vmatmul.mubr.msk.f32.vlgmr.msra.gmra.mxu1 %vm558_vm1, %v4533_v50  ;;  %7142 = vmatprep.subr.mxu1 %v7595_v34 }
 0x4bf   : > { %7098 = vmatpush3.msra.mxu0 %v4449_v48  ;;  %7143 = vmatpush3.msra.mxu1 %v4695_v49 }
 0x4c0   : > { %7099 = vmatprep.subr.mxu0 %v7595_v34  ;;  %7144 = vmatprep.subr.mxu1 %v7595_v34 }
 0x4c1   : > { %7100 = vmatpush3.msra.mxu0 %v4448_v51  ;;  %7145 = vmatpush3.msra.mxu1 %v4694_v52 }
 0x4c2   : > { %7101 = vmatprep.subr.mxu0 %v7595_v34  ;;  %7146 = vmatprep.subr.mxu1 %v7595_v34 }
 0x4c3   : > { %7102 = vmatpush3.msra.mxu0 %v4447_v53  ;;  %7147 = vmatpush3.msra.mxu1 %v4693_v54 }
 0x4c4   : > { %7103 = vmatprep.subr.mxu0 %v7595_v34  ;;  %7148 = vmatprep.subr.mxu1 %v7595_v34 }
 0x4c5   : > { %7104 = vmatpush3.msra.mxu0 %v4446_v31  ;;  %7149 = vmatpush3.msra.mxu1 %v4692_v55 }
 0x4c6   : > { %7105 = vmatprep.subr.mxu0 %v7595_v34  ;;  %7150 = vmatprep.subr.mxu1 %v7595_v34 }
 0x4c7   : > { %7106 = vmatpush3.msra.mxu0 %v4445_v57  ;;  %7151 = vmatpush3.msra.mxu1 %v4691_v30 }
 0x4c8   : > { %7107 = vmatprep.subr.mxu0 %v7595_v34  ;;  %7152 = vmatprep.subr.mxu1 %v7595_v34 }
 0x4c9   : > { %7108 = vmatpush3.msra.mxu0 %v4444_v58  ;;  %7109 = vmatprep.mubr.msk.f32.mxu0 %vm7596_vm9, %v7595_v34 }
 0x4ca   : > { %7153 = vmatpush3.msra.mxu1 %v4690_v59  ;;  %7154 = vmatprep.mubr.msk.f32.mxu1 %vm7596_vm9, %v7595_v34 }
 0x4cb   : > { %7110 = vmatmul.mubr.msk.f32.vlgmr.msra.gmra.mxu0 %vm558_vm1, %v4451_v61  ;;  %7127 = vmatprep.subr.mxu0 %v7595_v34 }
 0x4cc   : > { %7155 = vmatmul.mubr.msk.f32.vlgmr.msra.gmra.mxu1 %vm558_vm1, %v8517_v60  ;;  %7172 = vmatprep.subr.mxu1 %v7595_v34  ;;  %v4857_v60 = vld [vmem:[#allocation5 + $0x430] sm:$0xff] }
 0x4cd   : > { %7128 = vmatpush3.msra.mxu0 %v4613_v62  ;;  %7173 = vmatpush3.msra.mxu1 %v4860_v56 }
 0x4ce   : > { %7129 = vmatprep.subr.mxu0 %v7595_v34  ;;  %7174 = vmatprep.subr.mxu1 %v7595_v34 }
 0x4cf   : > { %7130 = vmatpush3.msra.mxu0 %v4612_v63  ;;  %7175 = vmatpush3.msra.mxu1 %v4859_v0 }
 0x4d0   : > { %7131 = vmatprep.subr.mxu0 %v7595_v34  ;;  %7176 = vmatprep.subr.mxu1 %v7595_v34 }
 0x4d1   : > { %7132 = vmatpush3.msra.mxu0 %v4611_v1  ;;  %7177 = vmatpush3.msra.mxu1 %v4858_v2 }
 0x4d2   : > { %7133 = vmatprep.subr.mxu0 %v7595_v34  ;;  %7178 = vmatprep.subr.mxu1 %v7595_v34 }
 0x4d3   : > { %7134 = vmatpush3.msra.mxu0 %v4610_v3  ;;  %7179 = vmatpush3.msra.mxu1 %v4857_v60 }
 0x4d4   : > { %7135 = vmatprep.subr.mxu0 %v7595_v34  ;;  %7180 = vmatprep.subr.mxu1 %v7595_v34 }
 0x4d5   : > { %7136 = vmatpush3.msra.mxu0 %v4609_v4  ;;  %7181 = vmatpush3.msra.mxu1 %v4856_v5 }
 0x4d6   : > { %7137 = vmatprep.subr.mxu0 %v7595_v34  ;;  %7182 = vmatprep.subr.mxu1 %v7595_v34 }
 0x4d7   : > { %7138 = vmatpush3.msra.mxu0 %v4608_v42  ;;  %7139 = vmatprep.mubr.msk.f32.mxu0 %vm7596_vm9, %v7595_v34 }
 0x4d8   : > { %7183 = vmatpush3.msra.mxu1 %v4855_v6  ;;  %7184 = vmatprep.mubr.msk.f32.mxu1 %vm7596_vm9, %v7595_v34  ;;  %v5208_v6 = vld [vmem:[%s8995_s8 + $0x78] sm:$0xff] }
 0x4d9   : > { %7140 = vmatmul.mubr.msk.f32.vlgmr.msra.gmra.mxu0 %vm558_vm1, %v4615_v41  ;;  %7157 = vmatprep.subr.mxu0 %v7595_v34 }
 0x4da   : > { %7185 = vmatmul.mubr.msk.f32.vlgmr.msra.gmra.mxu1 %vm558_vm1, %v4862_v9  ;;  %7202 = vmatprep.subr.mxu1 %v7595_v34  ;;  %v5205_v9 = vld [vmem:[%s8995_s8 + $0x60] sm:$0xff] }
 0x4db   : > { %7158 = vmatpush3.msra.mxu0 %v4778_v7  ;;  %7203 = vmatpush3.msra.mxu1 %v5024_v8  ;;  %v5207_v7 = vld [vmem:[%s8995_s8 + $0x70] sm:$0xff]  ;;  %v5206_v8 = vld [vmem:[%s8995_s8 + $0x68] sm:$0xff] }
 0x4dc   : > { %7159 = vmatprep.subr.mxu0 %v7595_v34  ;;  %7204 = vmatprep.subr.mxu1 %v7595_v34 }
 0x4dd   : > { %7160 = vmatpush3.msra.mxu0 %v4777_v10  ;;  %7205 = vmatpush3.msra.mxu1 %v5023_v11  ;;  %v5204_v10 = vld [vmem:[%s8995_s8 + $0x58] sm:$0xff]  ;;  %v5203_v11 = vld [vmem:[%s8995_s8 + $0x50] sm:$0xff] }
 0x4de   : > { %7161 = vmatprep.subr.mxu0 %v7595_v34  ;;  %7206 = vmatprep.subr.mxu1 %v7595_v34 }
 0x4df   : > { %7162 = vmatpush3.msra.mxu0 %v4776_v12  ;;  %7207 = vmatpush3.msra.mxu1 %v5022_v13  ;;  %v5202_v12 = vld [vmem:[%s8995_s8 + $0x48] sm:$0xff] }
 0x4e0   : > { %7163 = vmatprep.subr.mxu0 %v7595_v34  ;;  %7208 = vmatprep.subr.mxu1 %v7595_v34 }
 0x4e1   : > { %7164 = vmatpush3.msra.mxu0 %v4775_v14  ;;  %7209 = vmatpush3.msra.mxu1 %v5021_v15  ;;  %v5201_v15 = vld [vmem:[%s8995_s8 + $0x40] sm:$0xff] }
 0x4e2   : > { %7165 = vmatprep.subr.mxu0 %v7595_v34  ;;  %7210 = vmatprep.subr.mxu1 %v7595_v34 }
 0x4e3   : > { %7166 = vmatpush3.msra.mxu0 %v4774_v16  ;;  %7211 = vmatpush3.msra.mxu1 %v5020_v17 }
 0x4e4   : > { %7167 = vmatprep.subr.mxu0 %v7595_v34  ;;  %7212 = vmatprep.subr.mxu1 %v7595_v34 }
 0x4e5   : > { %7168 = vmatpush3.msra.mxu0 %v4773_v18  ;;  %7169 = vmatprep.mubr.msk.f32.mxu0 %vm7596_vm9, %v7595_v34  ;;  %v5200_v18 = vld [vmem:[%s8995_s8 + $0x38] sm:$0xff] }
 0x4e6   : > { %7213 = vmatpush3.msra.mxu1 %v5019_v19  ;;  %7214 = vmatprep.mubr.msk.f32.mxu1 %vm7596_vm9, %v7595_v34  ;;  %v5199_v19 = vld [vmem:[%s8995_s8 + $0x30] sm:$0xff] }
 0x4e7   : > { %7170 = vmatmul.mubr.msk.f32.vlgmr.msra.gmra.mxu0 %vm558_vm1, %v4780_v21  ;;  %7187 = vmatprep.subr.mxu0 %v7595_v34  ;;  %v5197_v21 = vld [vmem:[%s8995_s8 + $0x20] sm:$0xff] }
 0x4e8   : > { %7215 = vmatmul.mubr.msk.f32.vlgmr.msra.gmra.mxu1 %vm558_vm1, %v5026_v22  ;;  %7188 = vmatpush3.msra.mxu0 %v4942_v20  ;;  %v5198_v20 = vld [vmem:[%s8995_s8 + $0x28] sm:$0xff]  ;;  %v5196_v22 = vld [vmem:[%s8995_s8 + $0x18] sm:$0xff] }
 0x4e9   : > { %7189 = vmatprep.subr.mxu0 %v7595_v34  ;;  %7199 = vmatprep.mubr.msk.f32.mxu0 %vm7596_vm9, %v7595_v34 }
 0x4ea   : > { %7190 = vmatpush3.msra.mxu0 %v4941_v23  ;;  %7217 = vmatprep.subr.mxu1 %v7595_v34  ;;  %v5195_v23 = vld [vmem:[%s8995_s8 + $0x10] sm:$0xff] }
 0x4eb   : > { %7191 = vmatprep.subr.mxu0 %v7595_v34  ;;  %7219 = vmatprep.mubr.msk.f32.mxu1 %vm7596_vm9, %v7595_v34 }
 0x4ec   : > { %7192 = vmatpush3.msra.mxu0 %v4940_v36 }
 0x4ed   : > { %7193 = vmatprep.subr.mxu0 %v7595_v34 }
 0x4ee   : > { %7194 = vmatpush3.msra.mxu0 %v4939_v37 }
 0x4ef   : > { %7195 = vmatprep.subr.mxu0 %v7595_v34 }
 0x4f0   : > { %7196 = vmatpush3.msra.mxu0 %v4938_v24  ;;  %v5194_v24 = vld [vmem:[%s8995_s8 + $0x8] sm:$0xff] }
 0x4f1   : > { %7197 = vmatprep.subr.mxu0 %v7595_v34 }
 0x4f2   : > { %7198 = vmatpush3.msra.mxu0 %v4937_v25 }
 0x4f3   : > { %7200 = vmatmul.mubr.msk.f32.vlgmr.msra.gmra.mxu0 %vm558_vm1, %v4944_v26  ;;  %7222 = vmatprep.subr.mxu0 %v7595_v34  ;;  %vm5637_vm1 = vcmask 73728  }
 0x4f4   : > { %7254 = vmatprep.mubr.msk.f32.mxu0 %vm7596_vm9, %v7595_v34  ;;  %7223 = vmatpush3.msra.mxu0 %v5208_v6  ;;  %v5282_v6 = vld [vmem:[#allocation7 + $0x10] sm:$0xff] }
 0x4f5   : > { %7224 = vmatprep.subr.mxu0 %v7595_v34 }
 0x4f6   : > { %7225 = vmatpush3.msra.mxu0 %v5207_v7  ;;  %v5281_v7 = vld [vmem:[#allocation7 + $0x8] sm:$0xff] }
 0x4f7   : > { %7226 = vmatprep.subr.mxu0 %v7595_v34 }
 0x4f8   : > { %7227 = vmatpush3.msra.mxu0 %v5206_v8  ;;  %v5280_v8 = vld [vmem:[#allocation7] sm:$0xff] }
 0x4f9   : > { %7228 = vmatprep.subr.mxu0 %v7595_v34 }
 0x4fa   : > { %7229 = vmatpush3.msra.mxu0 %v5205_v9 }
 0x4fb   : > { %7230 = vmatprep.subr.mxu0 %v7595_v34 }
 0x4fc   : > { %7231 = vmatpush3.msra.mxu0 %v5204_v10 }
 0x4fd   : > { %7232 = vmatprep.subr.mxu0 %v7595_v34 }
 0x4fe   : > { %7233 = vmatpush3.msra.mxu0 %v5203_v11  ;;  %v5363_v11 = vld [vmem:[#allocation7 + $0x38] sm:$0xff] }
 0x4ff   : > { %7234 = vmatprep.subr.mxu0 %v7595_v34 }
 0x500   : > { %7235 = vmatpush3.msra.mxu0 %v5202_v12 }
 0x501   : > { %7236 = vmatprep.subr.mxu0 %v7595_v34 }
 0x502   : > { %7237 = vmatpush3.msra.mxu0 %v5201_v15  ;;  %v5361_v15 = vld [vmem:[#allocation7 + $0x28] sm:$0xff] }
 0x503   : > { %7238 = vmatprep.subr.mxu0 %v7595_v34 }
 0x504   : > { %7239 = vmatpush3.msra.mxu0 %v5200_v18  ;;  %v5462_v18 = vld [vmem:[%s8998_s11 + $0x70] sm:$0xff] }
 0x505   : > { %7240 = vmatprep.subr.mxu0 %v7595_v34 }
 0x506   : > { %7241 = vmatpush3.msra.mxu0 %v5199_v19  ;;  %v5461_v19 = vld [vmem:[%s8998_s11 + $0x68] sm:$0xff] }
 0x507   : > { %7242 = vmatprep.subr.mxu0 %v7595_v34 }
 0x508   : > { %7243 = vmatpush3.msra.mxu0 %v5198_v20  ;;  %v5460_v20 = vld [vmem:[%s8998_s11 + $0x60] sm:$0xff] }
 0x509   : > { %7244 = vmatprep.subr.mxu0 %v7595_v34 }
 0x50a   : > { %7245 = vmatpush3.msra.mxu0 %v5197_v21  ;;  %v5459_v21 = vld [vmem:[%s8998_s11 + $0x58] sm:$0xff] }
 0x50b   : > { %7246 = vmatprep.subr.mxu0 %v7595_v34 }
 0x50c   : > { %7247 = vmatpush3.msra.mxu0 %v5196_v22  ;;  %v5458_v22 = vld [vmem:[%s8998_s11 + $0x50] sm:$0xff] }
 0x50d   : > { %7248 = vmatprep.subr.mxu0 %v7595_v34 }
 0x50e   : > { %v3133_v27 = vpop.f32.mrf.mxu0  ;;  %v3286_v28 = vpop.f32.mrf.mxu1  ;;  %7249 = vmatpush3.msra.mxu0 %v5195_v23  ;;  %v5457_v23 = vld [vmem:[%s8998_s11 + $0x48] sm:$0xff] }
 0x50f   : > { %7250 = vmatprep.subr.mxu0 %v7595_v34 }
 0x510   : > { %v6856_v29 = vpop.f32.mrf.mxu0  ;;  %v6886_v32 = vpop.f32.mrf.mxu1  ;;  %7251 = vmatpush3.msra.mxu0 %v5194_v24  ;;  %v5454_v24 = vld [vmem:[%s8998_s11 + $0x30] sm:$0xff] }
 0x511   : > { %7252 = vmatprep.subr.mxu0 %v7595_v34 }
 0x51b   : > { %v3205_v33 = vpop.f32.mrf.mxu0 }
 0x51c   : > { %v3206_v35 = vadd.f32 %v3205_v33, %v3133_v27  ;;  %v3450_v38 = vpop.f32.mrf.mxu1 }
 0x51d   : > { %v6871_v39 = vpop.f32.mrf.mxu0 }
 0x51e   : > { %v6916_v40 = vpop.f32.mrf.mxu1  ;;  %v3290_v43 = vadd.f32 %v3286_v28, %v3206_v35 }
 0x529   : > { %v3368_v44 = vpop.f32.mrf.mxu0 }
 0x52a   : > { %v3372_v45 = vadd.f32 %v3368_v44, %v3290_v43  ;;  %v3616_v46 = vpop.f32.mrf.mxu1 }
 0x52b   : > { %v6901_v47 = vpop.f32.mrf.mxu0 }
 0x52c   : > { %v6946_v48 = vpop.f32.mrf.mxu1  ;;  %v3454_v49 = vadd.f32 %v3450_v38, %v3372_v45 }
 0x537   : > { %v3780_v50 = vpop.f32.mrf.mxu1 }
 0x538   : > { %v3534_v51 = vpop.f32.mrf.mxu0 }
 0x539   : > { %v3538_v52 = vadd.f32 %v3534_v51, %v3454_v49  ;;  %v6976_v53 = vpop.f32.mrf.mxu1 }
 0x53a   : > { %v6931_v54 = vpop.f32.mrf.mxu0 }
 0x53b   : > { %v3620_v31 = vadd.f32 %v3616_v46, %v3538_v52 }
 0x545   : > { %v3698_v55 = vpop.f32.mrf.mxu0 }
 0x546   : > { %v3702_v57 = vadd.f32 %v3698_v55, %v3620_v31  ;;  %v3945_v30 = vpop.f32.mrf.mxu1 }
 0x547   : > { %v6961_v58 = vpop.f32.mrf.mxu0 }
 0x548   : > { %v7006_v59 = vpop.f32.mrf.mxu1  ;;  %v3784_v61 = vadd.f32 %v3780_v50, %v3702_v57 }
 0x553   : > { %v3862_v62 = vpop.f32.mrf.mxu0 }
 0x554   : > { %v3866_v56 = vadd.f32 %v3862_v62, %v3784_v61  ;;  %v4109_v63 = vpop.f32.mrf.mxu1 }
 0x555   : > { %v6991_v0 = vpop.f32.mrf.mxu0 }
 0x556   : > { %v7036_v1 = vpop.f32.mrf.mxu1  ;;  %v3949_v2 = vadd.f32 %v3945_v30, %v3866_v56  ;;  %v5973_v30 = vld [vmem:[%s8993_s6] ss:$0 sm:$0xff] }
 0x561   : > { %v4027_v3 = vpop.f32.mrf.mxu0 }
 0x562   : > { %v4031_v60 = vadd.f32 %v4027_v3, %v3949_v2  ;;  %v8743_v4 = vpop.f32.mrf.mxu1 }
 0x563   : > { %v7021_v5 = vpop.f32.mrf.mxu0 }
 0x564   : > { %v7066_v41 = vpop.f32.mrf.mxu1  ;;  %v4113_v42 = vadd.f32 %v4109_v63, %v4031_v60 }
 0x565   : > { %v5193_v41 = vld [vmem:[%s8995_s8] sm:$0xff] }
 0x566   : > { %7253 = vmatpush3.msra.mxu0 %v5193_v41 }
 0x567   : > { %7312 = vmatprep.subr.mxu0 %v7595_v34 }
 0x56f   : > { %v4191_v13 = vpop.f32.mrf.mxu0 }
 0x570   : > { %v4438_v14 = vpop.f32.mrf.mxu1  ;;  %v4195_v33 = vadd.f32 %v4191_v13, %v4113_v42  ;;  %v5283_v42 = vld [vmem:[#allocation7 + $0x18] sm:$0xff]  ;;  %v5362_v13 = vld [vmem:[#allocation7 + $0x30] sm:$0xff] }
 0x571   : > { %v7051_v16 = vpop.f32.mrf.mxu0 }
 0x572   : > { %v7096_v17 = vpop.f32.mrf.mxu1  ;;  %v4277_v38 = vadd.f32 %v8743_v4, %v4195_v33  ;;  %v5118_v4 = vld [vmem:[%s8994_s7] sm:$0x3] }
 0x573   : > { %v5360_v16 = vld [vmem:[#allocation7 + $0x20] sm:$0xff] }
 0x57d   : > { %v4356_v36 = vpop.f32.mrf.mxu0 }
 0x57e   : > { %v4602_v37 = vpop.f32.mrf.mxu1  ;;  %v4360_v43 = vadd.f32 %v4356_v36, %v4277_v38  ;;  %v5456_v36 = vld [vmem:[%s8998_s11 + $0x40] sm:$0xff] }
 0x57f   : > { %v7081_v25 = vpop.f32.mrf.mxu0  ;;  %v5279_v38 = vld [vmem:[%s8997_s10] sm:$0x1] }
 0x580   : > { %v7126_v26 = vpop.f32.mrf.mxu1  ;;  %v4442_v45 = vadd.f32 %v4438_v14, %v4360_v43  ;;  %v5453_v25 = vld [vmem:[%s8998_s11 + $0x28] sm:$0xff] }
 0x581   : > { %v5452_v26 = vld [vmem:[%s8998_s11 + $0x20] sm:$0xff] }
 0x58b   : > { %v4520_v27 = vpop.f32.mrf.mxu0 }
 0x58c   : > { %v4767_v28 = vpop.f32.mrf.mxu1  ;;  %v4524_v46 = vadd.f32 %v4520_v27, %v4442_v45  ;;  %v5451_v27 = vld [vmem:[%s8998_s11 + $0x18] sm:$0xff] }
 0x58d   : > { %v7111_v29 = vpop.f32.mrf.mxu0 }
 0x58e   : > { %v7156_v32 = vpop.f32.mrf.mxu1  ;;  %v4606_v47 = vadd.f32 %v4602_v37, %v4524_v46  ;;  %v5455_v37 = vld [vmem:[%s8998_s11 + $0x38] sm:$0xff]  ;;  %v5449_v29 = vld [vmem:[%s8998_s11 + $0x8] sm:$0xff] }
 0x58f   : > { %v5448_v32 = vld [vmem:[%s8998_s11] sm:$0xff] }
 0x599   : > { %v4684_v35 = vpop.f32.mrf.mxu0 }
 0x59a   : > { %v4931_v39 = vpop.f32.mrf.mxu1  ;;  %v4688_v49 = vadd.f32 %v4684_v35, %v4606_v47 }
 0x59b   : > { %v7141_v40 = vpop.f32.mrf.mxu0 }
 0x59c   : > { %v7186_v44 = vpop.f32.mrf.mxu1  ;;  %v4771_v53 = vadd.f32 %v4767_v28, %v4688_v49  ;;  %v5450_v28 = vld [vmem:[%s8998_s11 + $0x10] sm:$0xff] }
 0x5a7   : > { %v4849_v48 = vpop.f32.mrf.mxu0 }
 0x5a8   : > { %v5095_v50 = vpop.f32.mrf.mxu1  ;;  %v4853_v54 = vadd.f32 %v4849_v48, %v4771_v53 }
 0x5a9   : > { %v7171_v51 = vpop.f32.mrf.mxu0 }
 0x5aa   : > { %v7216_v52 = vpop.f32.mrf.mxu1  ;;  %v4935_v31 = vadd.f32 %v4931_v39, %v4853_v54  ;;  %v5558_v54 = vld [vmem:[%s9000_s13 + $0x50] sm:$0xf] }
 0x5b3   : > { %v5013_v55 = vpop.f32.mrf.mxu0 }
 0x5b4   : > { %v5017_v57 = vadd.f32 %v5013_v55, %v4935_v31  ;;  %v5557_v31 = vld [vmem:[%s9000_s13 + $0x48] sm:$0xff]  ;;  %v5556_v55 = vld [vmem:[%s9000_s13 + $0x40] sm:$0xff] }
 0x5b5   : > { %v7201_v58 = vpop.f32.mrf.mxu0 }
 0x5b6   : > { %v5099_v59 = vadd.f32 %v5095_v50, %v5017_v57  ;;  %v5555_v57 = vld [vmem:[%s9000_s13 + $0x38] sm:$0xff]  ;;  %v5553_v58 = vld [vmem:[%s9000_s13 + $0x28] sm:$0xff] }
 0x5b8   : > { %v5107_v61 = vadd.f32 %v5973_v30, %v5099_v59  ;;  %v5554_v30 = vld [vmem:[%s9000_s13 + $0x30] sm:$0xff]  ;;  %v5552_v59 = vld [vmem:[%s9000_s13 + $0x20] sm:$0xff] }
 0x5ba   : > { %v5108_v62 = vand.u32 2147483647, %v5107_v61  ;;  %vm5115_vm10 = vcmp.ge.f32.partialorder %v5107_v61, 0.0  ;;  %v5551_v61 = vld [vmem:[%s9000_s13 + $0x18] sm:$0xff] }
 0x5bc   : > { %v5109_v56 = vsub.f32 0.0, %v5108_v62  ;;  %v5550_v62 = vld [vmem:[%s9000_s13 + $0x10] sm:$0xff] }
 0x5be   : > { %v5110_v63 = vmul.f32 1.442695, %v5109_v56  ;;  %v5549_v56 = vld [vmem:[%s9000_s13 + $0x8] sm:$0xff] }
 0x5c0   : > { %7426 = vpow2.f32 %v5110_v63  ;;  %v5548_v63 = vld [vmem:[%s9000_s13] sm:$0xff] }
 0x5cd   : > { %v7427_v0 = vpop.eup %7426 }
 0x5ce   : > { %v5112_v1 = vadd.f32 1.0, %v7427_v0 }
 0x5d0   : > { %7428 = vrcp.f32 %v5112_v1 }
 0x5dd   : > { %v7429_v2 = vpop.eup %7428 }
 0x5de   : > { %v5114_v3 = vmul.f32 %v7429_v2, %v7427_v0  ;;  %v5463_v0 = vld [vmem:[%s8999_s12] sm:$0x1] }
 0x5e0   : > { %v5116_v60 = vsub.f32 1.0, %v5114_v3 }
 0x5e2   : > { %v5117_v5 = vsel %vm5115_vm10, %v5116_v60, %v5114_v3 }
 0x5e3   : > { %7218 = vmatpush3.msra.mxu1 %v5117_v5 }
 0x5e4   : > { %7220 = vmatmul.mubr.msk.f32.vlgmr.msra.gmra.mxu1 %vm5119_vm11, %v5118_v4  ;;  %7257 = vmatprep.subr.mxu1 %v7595_v34 }
 0x5e5   : > { %7265 = vmatprep.mubr.msk.f32.mxu1 %vm7596_vm9, %v7595_v34  ;;  %7258 = vmatpush3.msra.mxu1 %v5283_v42 }
 0x5e6   : > { %7259 = vmatprep.subr.mxu1 %v7595_v34 }
 0x5e7   : > { %7260 = vmatpush3.msra.mxu1 %v5282_v6 }
 0x5e8   : > { %7261 = vmatprep.subr.mxu1 %v7595_v34 }
 0x5e9   : > { %7262 = vmatpush3.msra.mxu1 %v5281_v7 }
 0x5ea   : > { %7263 = vmatprep.subr.mxu1 %v7595_v34 }
 0x5eb   : > { %7264 = vmatpush3.msra.mxu1 %v5280_v8 }
 0x5ec   : > { %7268 = vmatprep.subr.mxu1 %v7595_v34 }
 0x6a4   : > { %v5189_v9 = vpop.f32.mrf.mxu1 }
 0x6a5   : > { %7255 = vmatmul.mubr.f32.vlgmr.msra.gmra.mxu0 %v5189_v9  ;;  %v5559_v9 = vld [vmem:[%s9001_s14] sm:$0x1] }
 0x6a6   : > { %v7221_v10 = vpop.f32.mrf.mxu1  ;;  %7334 = vmatprep.mubr.msk.f32.mxu0 %vm7596_vm9, %v7595_v34  ;;  %7313 = vmatpush3.msk.msra.mxu0 %vm2387_vm4, %v5558_v54 }
 0x6a7   : > { %7314 = vmatprep.subr.mxu0 %v7595_v34 }
 0x6a8   : > { %7315 = vmatpush3.msra.mxu0 %v5557_v31 }
 0x6a9   : > { %7316 = vmatprep.subr.mxu0 %v7595_v34 }
 0x6aa   : > { %7317 = vmatpush3.msra.mxu0 %v5556_v55 }
 0x6ab   : > { %7318 = vmatprep.subr.mxu0 %v7595_v34 }
 0x6ac   : > { %7319 = vmatpush3.msra.mxu0 %v5555_v57 }
 0x6ad   : > { %7320 = vmatprep.subr.mxu0 %v7595_v34 }
 0x6ae   : > { %7321 = vmatpush3.msra.mxu0 %v5554_v30 }
 0x6af   : > { %7322 = vmatprep.subr.mxu0 %v7595_v34 }
 0x6b0   : > { %7323 = vmatpush3.msra.mxu0 %v5553_v58 }
 0x6b1   : > { %7324 = vmatprep.subr.mxu0 %v7595_v34 }
 0x6b2   : > { %7325 = vmatpush3.msra.mxu0 %v5552_v59 }
 0x6b3   : > { %7326 = vmatprep.subr.mxu0 %v7595_v34 }
 0x6b4   : > { %7327 = vmatpush3.msra.mxu0 %v5551_v61 }
 0x6b5   : > { %7328 = vmatprep.subr.mxu0 %v7595_v34 }
 0x6b6   : > { %7329 = vmatpush3.msra.mxu0 %v5550_v62 }
 0x6b7   : > { %7330 = vmatprep.subr.mxu0 %v7595_v34 }
 0x6b8   : > { %7331 = vmatpush3.msra.mxu0 %v5549_v56 }
 0x6b9   : > { %7332 = vmatprep.subr.mxu0 %v7595_v34 }
 0x6ba   : > { %7333 = vmatpush3.msra.mxu0 %v5548_v63 }
 0x765   : > { %v5275_v12 = vpop.f32.mrf.mxu0 }
 0x766   : > { %7266 = vmatmul.mubr.msk.f32.vlgmr.msra.gmra.mxu1 %vm5284_vm12, %v5275_v12  ;;  %v5364_v17 = vrot.slane %v5275_v12, 1 }
 0x767   : > { %7269 = vmatpush3.msra.mxu1 %v5363_v11  ;;  %v7256_v14 = vpop.f32.mrf.mxu0  ;;  %7276 = vmatprep.mubr.msk.f32.mxu1 %vm7596_vm9, %v7595_v34 }
 0x768   : > { %7270 = vmatprep.subr.mxu1 %v7595_v34 }
 0x769   : > { %7271 = vmatpush3.msra.mxu1 %v5362_v13 }
 0x76a   : > { %7272 = vmatprep.subr.mxu1 %v7595_v34 }
 0x76b   : > { %7273 = vmatpush3.msra.mxu1 %v5361_v15 }
 0x76c   : > { %7274 = vmatprep.subr.mxu1 %v7595_v34 }
 0x76d   : > { %7275 = vmatpush3.msra.mxu1 %v5360_v16 }
 0x76e   : > { %7277 = vmatmul.mubr.msk.f32.vlgmr.msra.gmra.mxu1 %vm5284_vm12, %v5364_v17  ;;  %7279 = vmatprep.subr.mxu1 %v7595_v34 }
 0x76f   : > { %7309 = vmatprep.mubr.msk.f32.mxu1 %vm7596_vm9, %v7595_v34  ;;  %7280 = vmatpush3.msra.mxu1 %v5462_v18 }
 0x770   : > { %7281 = vmatprep.subr.mxu1 %v7595_v34 }
 0x771   : > { %7282 = vmatpush3.msra.mxu1 %v5461_v19 }
 0x772   : > { %7283 = vmatprep.subr.mxu1 %v7595_v34 }
 0x773   : > { %7284 = vmatpush3.msra.mxu1 %v5460_v20 }
 0x774   : > { %7285 = vmatprep.subr.mxu1 %v7595_v34 }
 0x775   : > { %7286 = vmatpush3.msra.mxu1 %v5459_v21 }
 0x776   : > { %7287 = vmatprep.subr.mxu1 %v7595_v34 }
 0x777   : > { %7288 = vmatpush3.msra.mxu1 %v5458_v22 }
 0x778   : > { %7289 = vmatprep.subr.mxu1 %v7595_v34 }
 0x779   : > { %7290 = vmatpush3.msra.mxu1 %v5457_v23 }
 0x77a   : > { %7291 = vmatprep.subr.mxu1 %v7595_v34 }
 0x77b   : > { %7292 = vmatpush3.msra.mxu1 %v5456_v36 }
 0x77c   : > { %7293 = vmatprep.subr.mxu1 %v7595_v34 }
 0x77d   : > { %7294 = vmatpush3.msra.mxu1 %v5455_v37 }
 0x77e   : > { %7295 = vmatprep.subr.mxu1 %v7595_v34 }
 0x77f   : > { %7296 = vmatpush3.msra.mxu1 %v5454_v24 }
 0x780   : > { %7297 = vmatprep.subr.mxu1 %v7595_v34 }
 0x781   : > { %7298 = vmatpush3.msra.mxu1 %v5453_v25 }
 0x782   : > { %7299 = vmatprep.subr.mxu1 %v7595_v34 }
 0x783   : > { %7300 = vmatpush3.msra.mxu1 %v5452_v26 }
 0x784   : > { %7301 = vmatprep.subr.mxu1 %v7595_v34 }
 0x785   : > { %7302 = vmatpush3.msra.mxu1 %v5451_v27 }
 0x786   : > { %7303 = vmatprep.subr.mxu1 %v7595_v34 }
 0x787   : > { %7304 = vmatpush3.msra.mxu1 %v5450_v28 }
 0x788   : > { %7305 = vmatprep.subr.mxu1 %v7595_v34 }
 0x789   : > { %7306 = vmatpush3.msra.mxu1 %v5449_v29 }
 0x78a   : > { %7307 = vmatprep.subr.mxu1 %v7595_v34 }
 0x78b   : > { %7308 = vmatpush3.msra.mxu1 %v5448_v32 }
 0x826   : > { %v5354_v33 = vpop.f32.mrf.mxu1 }
 0x827   : > { %v5358_v39 = vadd.f32 %v5354_v33, %v5279_v38 }
 0x828   : > { %v7267_v35 = vpop.f32.mrf.mxu1 }
 0x82e   : > { %v5433_v40 = vpop.f32.mrf.mxu1 }
 0x82f   : > { %v5437_v43 = vadd.f32 %v5433_v40, %v5358_v39 }
 0x830   : > { %v7278_v44 = vpop.f32.mrf.mxu1 }
 0x831   : > { %v5438_v45 = vand.u32 2147483647, %v5437_v43  ;;  %vm5445_vm14 = vcmp.ge.f32.partialorder %v5437_v43, 0.0 }
 0x833   : > { %v5439_v46 = vsub.f32 0.0, %v5438_v45 }
 0x835   : > { %v5440_v47 = vmul.f32 1.442695, %v5439_v46 }
 0x837   : > { %7430 = vpow2.f32 %v5440_v47 }
 0x844   : > { %v7431_v48 = vpop.eup %7430 }
 0x845   : > { %v5442_v49 = vadd.f32 1.0, %v7431_v48 }
 0x847   : > { %7432 = vrcp.f32 %v5442_v49 }
 0x854   : > { %v7433_v50 = vpop.eup %7432 }
 0x855   : > { %v5444_v51 = vmul.f32 %v7433_v50, %v7431_v48 }
 0x857   : > { %v5446_v52 = vsub.f32 1.0, %v5444_v51 }
 0x859   : > { %v5447_v53 = vsel %vm5445_vm14, %v5446_v52, %v5444_v51 }
 0x85a   : > { %7310 = vmatmul.mubr.msk.f32.vlgmr.msra.gmra.mxu1 %vm5464_vm13, %v5447_v53 }
 0x91a   : > { %v5534_v1 = vpop.f32.mrf.mxu1 }
 0x91b   : > { %v5535_v2 = vadd.f32 %v5534_v1, %v5463_v0 }
 0x91c   : > { %v7311_v3 = vpop.f32.mrf.mxu1 }
 0x91d   : > { %v5538_v60 = vand.u32 2147483647, %v5535_v2  ;;  %vm5545_vm0 = vcmp.ge.f32.partialorder %v5535_v2, 0.0 }
 0x91f   : > { %v5539_v4 = vsub.f32 0.0, %v5538_v60 }
 0x921   : > { %v5540_v5 = vmul.f32 1.442695, %v5539_v4 }
 0x923   : > { %7434 = vpow2.f32 %v5540_v5 }
 0x930   : > { %v7435_v41 = vpop.eup %7434 }
 0x931   : > { %v5542_v34 = vadd.f32 1.0, %v7435_v41 }
 0x933   : > { %7436 = vrcp.f32 %v5542_v34 }
 0x940   : > { %v7437_v42 = vpop.eup %7436 }
 0x941   : > { %v5544_v6 = vmul.f32 %v7437_v42, %v7435_v41 }
 0x943   : > { %v5546_v7 = vsub.f32 1.0, %v5544_v6 }
 0x945   : > { %v5547_v8 = vsel %vm5545_vm0, %v5546_v7, %v5544_v6 }
 0x946   : > { %7335 = vmatmul.mubr.msk.f32.vlgmr.msra.gmra.mxu0 %vm5560_vm15, %v5547_v8 }
 0xa06   : > { %v5633_v10 = vpop.f32.mrf.mxu0 }
 0xa07   : > { %v5634_v11 = vadd.f32 %v5633_v10, %v5559_v9 }
 0xa08   : > { %v7336_v12 = vpop.f32.mrf.mxu0 }
 0xa09   : > { %5638 = vst.msk [vmem:[%s530_s25] sm:$0x1] %vm5637_vm1, %v5634_v11 }
 0xa0a   : > { %7529 = shalt.err (!%p7526_p0)
}
 0xa0b   : > { %s7530_s29 = scalar_lea.hbm %s8952_s16, 16  ;;  %s7534_s25 = scalar_lea.hbm %s9002_s15, 32 }
 0xa0c   : > { %p7531_p6 = scmp.ne.s32.totalorder %s8952_s16, %s7530_s29  ;;  %p7535_p1 = scmp.lt.s32.totalorder %s8952_s16, %s9002_s15 }
 0xa0d   : > { %p7536_p5 = scmp.lt.s32.totalorder %s7534_s25, %s7530_s29 }
 0xa0e   : > { %p7532_p9 = pnand %p7531_p6, %p9025_p12 }
 0xa0f   : > { %p7537_p3 = por %p7536_p5, %p7535_p1 }
 0xa10   : > { %p7533_p13 = pneg %p7532_p9 }
 0xa12   : > { %p7538_p10 = pnand %p7537_p3, %p7533_p13 }
 0xa14   : > { %7541 = shalt.err (!%p7538_p10)
}
 0xa15   : > { %7350 = dma.vmem_to_hbm [thread:$0]  (%p9025_p12), %s5653_s20, 16, %s8952_s16, %s5640_s26  }
 0xa16 PF: > { %s9026_s23 = sld [smem:[#allocation14_spill]] }
 0xa17   : > { %s9027_s22 = sld [smem:[#allocation12_spill]] }
 0xa18   : > { %s9028_s30 = sld [smem:[#allocation17_spill]] }
 0xa1c   : > { %p7372_p2 = scmp.ge.s32.totalorder %s9026_s23, 2 }
 0xa1d   : > { %s5664_s24 = sand.u32 1, %s9027_s22  }
 0xa1e   : > { %p9029_p4 = scmp.ne.s32.totalorder %s9028_s30, 0  ;;  %s5665_s27 = scalar_lea.sflag [#allocation4], %s5664_s24 }
 0xa20   : > { %p7363_p7 = pnand %p7372_p2, %p9029_p4 }
 0xa22   : > { %p7364_p8 = pneg %p7363_p7 }
 0xa24   : > { %7567 = dma.done.wait (%p7364_p8), %s5665_s27, 16  }
 0xa25   : > { %7569 = vsyncadd (%p7364_p8), %s5665_s27, 4294967280  ;;  %s9030_s21 = sld [smem:[#allocation15_spill]]  ;;  %s9033_s18 = smov %s7576_s19 }
 0xa26   : > { %s9031_s29 = sld [smem:[#allocation13_spill]] }
 0xa27   : > { %s9032_s20 = sld [smem:[#allocation16_spill]] }
 0xa2b   : > { %p27_p11 = scmp.ge.s32.totalorder %s9030_s21, 4  }
 0xa2c   : > { %s9034_s19 = smov %s9031_s29 }
 0xa2d   :  { %29 = sbr.rel (!%p27_p11) target bundleno = 5 (0x5), region = 177 }
 0xa32   :  { %5669 = vsyncpa [#allocation3], 1 }
 0xa33   :  { %5671 = vsyncpa [#allocation3 + $0x1], 1 }
 0xa34   :  { %5672 = vsyncpa [#allocation6], 1 }
 0xa35   :  { %5673 = vsyncpa [#allocation4], 1 }
 0xa36   :  { %5675 = vsyncpa [#allocation4 + $0x1], 1 }

</bundles_post_ra>
